<compile_context>
chip_gen: v5e
topology: v5e:2x2
jax: 0.10.0
libtpu: 0.0.40
codegen_flags: <defaults>
</compile_context>

<pallas_src>
import functools

import jax
import jax.numpy as jnp
import numpy as np
from jax import lax
from jax.experimental import pallas as pl
from jax.experimental.pallas import tpu as pltpu

# ---- constants from `config` ----
B_J0 = 0.01
R_M = 1.0
DT = 1.0
BETA = 1.8  # isAdapt=1 branch


def _rc_kernel(
    # inputs
    ih1_ref,      # (tt, TB, H) f32 : (x@W_in + b_in + b_h11) * (1-a1)*R_m, time block
    w11_ref,      # (H, H) bf16 : W_h11 * (1-a1)*R_m
    w12_ref,      # (H, H) bf16 : W_h12 * (1-a2)*R_m
    w22_ref,      # (H, H) bf16 : W_h22 * (1-a2)*R_m
    wo_ref,       # (H, O) bf16 : W_out * (1-ao)*R_m
    dech_ref,     # (7, H) f32 : rows = a1, ro1, 1-ro1, a2, ro2, 1-ro2, bias2_scaled
    deco_ref,     # (2, O) f32 : rows = ao, bias_out_scaled
    h1m0_ref,     # (TB, H) f32 initial hid1 membrane
    h2m0_ref,     # (TB, H) f32 initial hid2 membrane
    om0_ref,      # (TB, O) f32 initial readout membrane
    # outputs
    spk_ref,      # (tt, TB, H) bf16 hid2 spikes
    mem_ref,      # (tt, TB, H) hid2 membranes
    outm_ref,     # (tt, TB, O) f32 readout membranes
    # scratch: recurrent state, persists across the time grid axis
    h1_mem, h1_spk, h2_mem, h2_spk, o_mem, b1_st, b2_st,
    *, unroll,
):
    t_blk = pl.program_id(1)
    tt = ih1_ref.shape[0]

    @pl.when(t_blk == 0)
    def _init():
        h1_mem[...] = h1m0_ref[...]
        h2_mem[...] = h2m0_ref[...]
        o_mem[...] = om0_ref[...]
        h1_spk[...] = jnp.zeros_like(h1_spk)
        h2_spk[...] = jnp.zeros_like(h2_spk)
        b1_st[...] = jnp.full_like(b1_st, B_J0)
        b2_st[...] = jnp.full_like(b2_st, B_J0)

    # Loop-invariant per-neuron vectors (one vreg each) — hoisted out of the loop.
    a1, ro1, nro1 = dech_ref[0:1, :], dech_ref[1:2, :], dech_ref[2:3, :]
    a2, ro2, nro2 = dech_ref[3:4, :], dech_ref[4:5, :], dech_ref[5:6, :]
    bias2 = dech_ref[6:7, :]
    ao, bias_o = deco_ref[0:1, :], deco_ref[1:2, :]

    w11 = w11_ref[...]
    w12 = w12_ref[...]
    w22 = w22_ref[...]
    wo = wo_ref[...]

    def step(s, carry):
        m1, s1, m2, s2, om, bb1, bb2 = carry

        # ----- hidden layer 1 (adaptive LIF); input projection already hoisted+scaled
        cur1 = ih1_ref[s] + jnp.dot(s1, w11, preferred_element_type=jnp.float32)
        bb1 = ro1 * bb1 + nro1 * s1            # uses OLD spike (matches reference order)
        theta1 = B_J0 + BETA * bb1
        m1 = m1 * a1 + cur1 - theta1 * s1 * DT
        s1 = (m1 - theta1 > 0.0).astype(jnp.bfloat16)

        # ----- hidden layer 2 (adaptive LIF); two small dots instead of concat+dot
        cur2 = (jnp.dot(s1, w12, preferred_element_type=jnp.float32)
                + jnp.dot(s2, w22, preferred_element_type=jnp.float32)
                + bias2)
        bb2 = ro2 * bb2 + nro2 * s2
        theta2 = B_J0 + BETA * bb2
        m2 = m2 * a2 + cur2 - theta2 * s2 * DT
        s2 = (m2 - theta2 > 0.0).astype(jnp.bfloat16)

        # ----- readout: leaky integrator, no spike (scaled weight/bias folded in wrapper)
        om = om * ao + jnp.dot(s2, wo, preferred_element_type=jnp.float32) + bias_o

        spk_ref[s] = s2
        mem_ref[s] = m2.astype(mem_ref.dtype)
        outm_ref[s] = om
        return (m1, s1, m2, s2, om, bb1, bb2)

    carry = (h1_mem[...], h1_spk[...], h2_mem[...], h2_spk[...],
             o_mem[...], b1_st[...], b2_st[...])
    m1, s1, m2, s2, om, bb1, bb2 = lax.fori_loop(0, tt, step, carry, unroll=unroll)

    h1_mem[...] = m1
    h1_spk[...] = s1
    h2_mem[...] = m2
    h2_spk[...] = s2
    o_mem[...] = om
    b1_st[...] = bb1
    b2_st[...] = bb2


def _pick_batch_block(B, max_tb):
    """Batch tile: full B if small, else the largest divisor of B that is a
    multiple of 8 and <= max_tb (fall back to full B)."""
    if B <= max_tb:
        return B
    for cand in range(min(max_tb, B), 0, -1):
        if B % cand == 0 and cand % 8 == 0:
            return cand
    return B


def rc_forward(x, params, init_state, *,
               max_time_block=32, max_batch_block=128,
               mem_dtype=jnp.bfloat16):
    """x: (B, T, D) float.  Returns (output, hid2_spk_seq, hid2_mem_seq, out_mem_seq)
    where the sequences are (T, B, ...) arrays (same content as the torch lists)."""
    B, T, D = x.shape
    H = params["w_h11"].shape[0]
    O = params["w_out"].shape[1]
    f32 = jnp.float32

    # ---- loop-invariant decay factors ----
    a1 = jnp.exp(-DT / params["tau_m_h1"]).astype(f32)       # (1, H)
    ro1 = jnp.exp(-DT / params["tau_adp_h1"]).astype(f32)
    a2 = jnp.exp(-DT / params["tau_m_h2"]).astype(f32)
    ro2 = jnp.exp(-DT / params["tau_adp_h2"]).astype(f32)
    ao = jnp.exp(-DT / params["tau_m_o"]).astype(f32)         # (1, O)
    na1, na2, nao = 1.0 - a1, 1.0 - a2, 1.0 - ao
    nro1, nro2 = 1.0 - ro1, 1.0 - ro2

    # ---- hoisted, pre-scaled input projection: one big parallel matmul ----
    xt = jnp.transpose(x.astype(f32), (1, 0, 2))              # (T, B, D)
    ih1 = (jnp.einsum("tbd,dh->tbh", xt, params["w_in"].astype(f32))
           + params["b_in"].astype(f32) + params["b_h11"].astype(f32))
    ih1 = (ih1 * (na1 * R_M)).astype(f32)                     # (T, B, H)

    # ---- fold (1-alpha)*R_m into recurrent weight columns / biases ----
    w11 = (params["w_h11"].astype(f32) * (na1 * R_M)).astype(jnp.bfloat16)
    w12 = (params["w_h12"].astype(f32) * (na2 * R_M)).astype(jnp.bfloat16)
    w22 = (params["w_h22"].astype(f32) * (na2 * R_M)).astype(jnp.bfloat16)
    wo = (params["w_out"].astype(f32) * (nao * R_M)).astype(jnp.bfloat16)
    bias2 = ((params["b_h12"] + params["b_h22"]).astype(f32) * (na2 * R_M))
    bias_o = (params["b_out"].astype(f32) * (nao * R_M))

    dec_h = jnp.concatenate([a1, ro1, nro1, a2, ro2, nro2, bias2], axis=0)  # (7, H)
    dec_o = jnp.concatenate([ao, bias_o], axis=0)                           # (2, O)

    # ---- tile sizing under a VMEM budget ----
    TB = _pick_batch_block(B, max_batch_block)
    mem_bytes = int(np.dtype(mem_dtype).itemsize)
    fixed = (3 * H * H + H * O) * 2 + (7 * H + 2 * O) * 4        # weights + packed vectors
    fixed += TB * (5 * H + O) * 4 + TB * 2 * H * 2               # recurrent-state scratch
    fixed += 2 * (2 * TB * H + TB * O) * 4                       # init-state blocks (buffered)

    def blk_bytes(tt):
        stream = tt * TB * H * 4                                  # ih1 block (f32)
        outs = tt * TB * H * 2 + tt * TB * H * mem_bytes + tt * TB * O * 4
        return 2 * (stream + outs)                                # double-buffered

    try:
        vmem_cap = int(pltpu.get_tpu_info().vmem_capacity_bytes)
    except Exception:
        vmem_cap = 64 * 1024 * 1024
    budget = min(int(0.75 * vmem_cap), 96 * 1024 * 1024)

    tt = 1
    for cand in range(min(max_time_block, T), 0, -1):
        if T % cand == 0 and fixed + blk_bytes(cand) <= budget:
            tt = cand
            break
    vmem_limit = int(min(max(1.25 * (fixed + blk_bytes(tt)), 32 * 1024 * 1024), budget))

    # Bound vreg pressure: fully unroll only when each carried (TB,H) f32 state
    # array is <= 2 vregs; otherwise unroll=2.
    state_vregs = max(1, (TB * H * 4) // 4096)
    unroll = True if state_vregs <= 2 else 2

    kernel = functools.partial(_rc_kernel, unroll=unroll)

    def full(shp):
        return pl.BlockSpec(shp, lambda b, t: (0,) * len(shp))

    grid = (B // TB, T // tt)
    in_specs = [
        pl.BlockSpec((tt, TB, H), lambda b, t: (t, b, 0)),        # ih1 stream
        full((H, H)), full((H, H)), full((H, H)), full((H, O)),   # recurrent / readout weights
        full((7, H)), full((2, O)),                               # packed decay vectors + biases
        pl.BlockSpec((TB, H), lambda b, t: (b, 0)),               # initial h1 mem
        pl.BlockSpec((TB, H), lambda b, t: (b, 0)),               # initial h2 mem
        pl.BlockSpec((TB, O), lambda b, t: (b, 0)),               # initial readout mem
    ]
    out_specs = [
        pl.BlockSpec((tt, TB, H), lambda b, t: (t, b, 0)),        # hid2 spikes (bf16)
        pl.BlockSpec((tt, TB, H), lambda b, t: (t, b, 0)),        # hid2 membranes
        pl.BlockSpec((tt, TB, O), lambda b, t: (t, b, 0)),        # readout membranes (f32)
    ]
    out_shape = (
        jax.ShapeDtypeStruct((T, B, H), jnp.bfloat16),
        jax.ShapeDtypeStruct((T, B, H), mem_dtype),
        jax.ShapeDtypeStruct((T, B, O), jnp.float32),
    )
    scratch_shapes = [
        pltpu.VMEM((TB, H), jnp.float32),   # h1_mem
        pltpu.VMEM((TB, H), jnp.bfloat16),  # h1_spk
        pltpu.VMEM((TB, H), jnp.float32),   # h2_mem
        pltpu.VMEM((TB, H), jnp.bfloat16),  # h2_spk
        pltpu.VMEM((TB, O), jnp.float32),   # o_mem
        pltpu.VMEM((TB, H), jnp.float32),   # b1
        pltpu.VMEM((TB, H), jnp.float32),   # b2
    ]

    spk_seq, mem_seq, outm_seq = pl.pallas_call(
        kernel,
        out_shape=out_shape,
        grid_spec=pltpu.PrefetchScalarGridSpec(
            num_scalar_prefetch=0,
            grid=grid,
            in_specs=in_specs,
            out_specs=out_specs,
            scratch_shapes=scratch_shapes,
        ),
        compiler_params=pltpu.CompilerParams(
            # batch tiles are independent -> shard across TCs (v7x megacore);
            # time carries the recurrence -> sequential.
            dimension_semantics=("parallel", "arbitrary"),
            vmem_limit_bytes=vmem_limit,
        ),
    )(
        ih1, w11, w12, w22, wo, dec_h, dec_o,
        init_state["h1_mem"].astype(f32),
        init_state["h2_mem"].astype(f32),
        init_state["out_mem"].astype(f32),
    )

    # Exact softmax accumulation for global t > 10 (moved out of the kernel).
    sm = jax.nn.softmax(outm_seq, axis=-1)                       # (T, B, O) f32
    gate = (jnp.arange(T) > 10).astype(sm.dtype)
    output = jnp.einsum("t,tbo->bo", gate, sm)

    # TODO(synk): A_norm (L1 norm of recurrent weights) is computed in the torch
    # forward but never returned; omitted here.
    return output, spk_seq, mem_seq, outm_seq


def make_params(key, D, H, O):
    """Deterministic synthetic init (shapes match RC.__init__; weight matrices
    stored in (in, out) layout, i.e. already transposed vs torch)."""
    ks = jax.random.split(key, 12)

    def xavier(k, shape):
        fan_in, fan_out = shape
        lim = jnp.sqrt(6.0 / (fan_in + fan_out))
        return jax.random.uniform(k, shape, jnp.float32, -lim, lim)

    def orthogonal(k, n):
        a = jax.random.normal(k, (n, n), jnp.float32)
        q, _ = jnp.linalg.qr(a)
        return q

    return dict(
        w_in=xavier(ks[0], (D, H)), b_in=jnp.zeros((1, H), jnp.float32),
        w_h11=orthogonal(ks[1], H), b_h11=jnp.zeros((1, H), jnp.float32),
        w_h12=xavier(ks[2], (H, H)), b_h12=jnp.zeros((1, H), jnp.float32),
        w_h22=orthogonal(ks[3], H), b_h22=jnp.zeros((1, H), jnp.float32),
        w_out=xavier(ks[4], (H, O)),
        b_out=jax.random.uniform(ks[5], (1, O), jnp.float32, -0.1, 0.1),
        tau_adp_h1=150.0 + 10.0 * jax.random.normal(ks[6], (1, H), jnp.float32),
        tau_adp_h2=150.0 + 10.0 * jax.random.normal(ks[7], (1, H), jnp.float32),
        # tau_adp_o exists in the module but output_Neuron never uses it.
        tau_adp_o=150.0 + 10.0 * jax.random.normal(ks[8], (1, O), jnp.float32),
        tau_m_h1=20.0 + 5.0 * jax.random.normal(ks[9], (1, H), jnp.float32),
        tau_m_h2=20.0 + 5.0 * jax.random.normal(ks[10], (1, H), jnp.float32),
        tau_m_o=20.0 + 5.0 * jax.random.normal(ks[11], (1, O), jnp.float32),
    )


if __name__ == "__main__":
    # Small shapes consistent with the module (real config: input=700, hid=128,
    # output=20, time_step=250, batch=256) — H/O kept at the real values,
    # D/T/B scaled down.  D no longer needs lane alignment (the input
    # projection is hoisted to the wrapper).
    B, T, D, H, O = 8, 16, 140, 128, 20

    key = jax.random.PRNGKey(0)
    kx, kp, k1, k2, k3 = jax.random.split(key, 5)

    x = jax.random.uniform(kx, (B, T, D), jnp.float32)   # spike-train-like input
    params = make_params(kp, D, H, O)
    init_state = dict(                                    # torch.rand initial membranes
        h1_mem=jax.random.uniform(k1, (B, H), jnp.float32),
        h2_mem=jax.random.uniform(k2, (B, H), jnp.float32),
        out_mem=jax.random.uniform(k3, (B, O), jnp.float32),
    )
    # NOTE: config.dropout == 0, so forward()'s `mask` argument is unused.

    output, spk_seq, mem_seq, outm_seq = jax.block_until_ready(
        rc_forward(x, params, init_state)
    )

    out_np = np.asarray(output, dtype=np.float32)
    spk_np = np.asarray(spk_seq, dtype=np.float32)
    mem_np = np.asarray(mem_seq, dtype=np.float32)
    om_np = np.asarray(outm_seq, dtype=np.float32)

    # Sanity checks independent of matmul rounding:
    #  - shapes, finiteness
    #  - spikes are exactly binary
    #  - accumulated softmax rows sum to (#steps with t > 10) = T - 11
    #    (exact softmax outside the kernel -> tight tolerance)
    assert out_np.shape == (B, O) and spk_np.shape == (T, B, H)
    assert mem_np.shape == (T, B, H) and om_np.shape == (T, B, O)
    assert np.all(np.isfinite(out_np)) and np.all(np.isfinite(mem_np))
    assert np.all(np.isfinite(om_np))
    assert np.all(np.isin(spk_np, [0.0, 1.0]))
    np.testing.assert_allclose(out_np.sum(-1), float(T - 11), rtol=1e-5, atol=1e-4)

    print("KERNEL_OK")
</pallas_src>

<mosaic_0001>
module attributes {stable_mosaic.version = 11 : i64} {
  func.func @_rc_kernel(%arg0: i32, %arg1: i32, %arg2: memref<16x8x128xf32, #tpu.memory_space<vmem>>, %arg3: memref<128x128xbf16, #tpu.memory_space<vmem>>, %arg4: memref<128x128xbf16, #tpu.memory_space<vmem>>, %arg5: memref<128x128xbf16, #tpu.memory_space<vmem>>, %arg6: memref<128x20xbf16, #tpu.memory_space<vmem>>, %arg7: memref<7x128xf32, #tpu.memory_space<vmem>>, %arg8: memref<2x20xf32, #tpu.memory_space<vmem>>, %arg9: memref<8x128xf32, #tpu.memory_space<vmem>>, %arg10: memref<8x128xf32, #tpu.memory_space<vmem>>, %arg11: memref<8x20xf32, #tpu.memory_space<vmem>>, %arg12: memref<16x8x128xbf16, #tpu.memory_space<vmem>>, %arg13: memref<16x8x128xbf16, #tpu.memory_space<vmem>>, %arg14: memref<16x8x20xf32, #tpu.memory_space<vmem>>, %arg15: memref<8x128xf32, #tpu.memory_space<vmem>>, %arg16: memref<8x128xbf16, #tpu.memory_space<vmem>>, %arg17: memref<8x128xf32, #tpu.memory_space<vmem>>, %arg18: memref<8x128xbf16, #tpu.memory_space<vmem>>, %arg19: memref<8x20xf32, #tpu.memory_space<vmem>>, %arg20: memref<8x128xf32, #tpu.memory_space<vmem>>, %arg21: memref<8x128xf32, #tpu.memory_space<vmem>>) attributes {dimension_semantics = [#tpu.dimension_semantics<parallel>, #tpu.dimension_semantics<arbitrary>], iteration_bounds = array<i64: 1, 1>, scalar_prefetch = 0 : i64, scratch_operands = 7 : i64, tpu.core_type = #tpu.core_type<tc>, window_params = [{transform_indices = @transform_0, window_bounds = array<i64: 16, 8, 128>}, {pipeline_mode = #tpu.pipeline_mode<synchronous>, transform_indices = @transform_1, window_bounds = array<i64: 128, 128>}, {pipeline_mode = #tpu.pipeline_mode<synchronous>, transform_indices = @transform_2, window_bounds = array<i64: 128, 128>}, {pipeline_mode = #tpu.pipeline_mode<synchronous>, transform_indices = @transform_3, window_bounds = array<i64: 128, 128>}, {pipeline_mode = #tpu.pipeline_mode<synchronous>, transform_indices = @transform_4, window_bounds = array<i64: 128, 20>}, {pipeline_mode = #tpu.pipeline_mode<synchronous>, transform_indices = @transform_5, window_bounds = array<i64: 7, 128>}, {pipeline_mode = #tpu.pipeline_mode<synchronous>, transform_indices = @transform_6, window_bounds = array<i64: 2, 20>}, {transform_indices = @transform_7, window_bounds = array<i64: 8, 128>}, {transform_indices = @transform_8, window_bounds = array<i64: 8, 128>}, {transform_indices = @transform_9, window_bounds = array<i64: 8, 20>}, {transform_indices = @transform_10, window_bounds = array<i64: 16, 8, 128>}, {transform_indices = @transform_11, window_bounds = array<i64: 16, 8, 128>}, {transform_indices = @transform_12, window_bounds = array<i64: 16, 8, 20>}]} {
    %c0_i32 = arith.constant 0 : i32
    %0 = arith.cmpi eq, %arg1, %c0_i32 : i32
    %1 = arith.extui %0 : i1 to i32
    %c0_i32_0 = arith.constant 0 : i32
    %2 = arith.cmpi ne, %1, %c0_i32_0 : i32
    scf.if %2 {
      %c0_368 = arith.constant 0 : index
      %c0_369 = arith.constant 0 : index
      %1262 = vector.load %arg9[%c0_368, %c0_369] : memref<8x128xf32, #tpu.memory_space<vmem>>, vector<8x128xf32>
      %c0_370 = arith.constant 0 : index
      %c0_371 = arith.constant 0 : index
      %1263 = vector.load %arg15[%c0_370, %c0_371] : memref<8x128xf32, #tpu.memory_space<vmem>>, vector<8x128xf32>
      tpu.vector_store %arg15[%c0_370, %c0_371], %1262 {strides = array<i32>} : memref<8x128xf32, #tpu.memory_space<vmem>>, vector<8x128xf32>,
      %c0_372 = arith.constant 0 : index
      %c0_373 = arith.constant 0 : index
      %1264 = vector.load %arg10[%c0_372, %c0_373] : memref<8x128xf32, #tpu.memory_space<vmem>>, vector<8x128xf32>
      %c0_374 = arith.constant 0 : index
      %c0_375 = arith.constant 0 : index
      %1265 = vector.load %arg17[%c0_374, %c0_375] : memref<8x128xf32, #tpu.memory_space<vmem>>, vector<8x128xf32>
      tpu.vector_store %arg17[%c0_374, %c0_375], %1264 {strides = array<i32>} : memref<8x128xf32, #tpu.memory_space<vmem>>, vector<8x128xf32>,
      %c0_376 = arith.constant 0 : index
      %c0_377 = arith.constant 0 : index
      %1266 = vector.load %arg11[%c0_376, %c0_377] : memref<8x20xf32, #tpu.memory_space<vmem>>, vector<8x20xf32>
      %c0_378 = arith.constant 0 : index
      %c0_379 = arith.constant 0 : index
      %1267 = vector.load %arg19[%c0_378, %c0_379] : memref<8x20xf32, #tpu.memory_space<vmem>>, vector<8x20xf32>
      tpu.vector_store %arg19[%c0_378, %c0_379], %1266 {strides = array<i32>} : memref<8x20xf32, #tpu.memory_space<vmem>>, vector<8x20xf32>,
      %cst_380 = arith.constant 0.000000e+00 : bf16
      %1268 = vector.broadcast %cst_380 : bf16 to vector<8x128xbf16>
      %c0_381 = arith.constant 0 : index
      %c0_382 = arith.constant 0 : index
      %1269 = vector.load %arg16[%c0_381, %c0_382] : memref<8x128xbf16, #tpu.memory_space<vmem>>, vector<8x128xbf16>
      tpu.vector_store %arg16[%c0_381, %c0_382], %1268 {strides = array<i32>} : memref<8x128xbf16, #tpu.memory_space<vmem>>, vector<8x128xbf16>,
      %cst_383 = arith.constant 0.000000e+00 : bf16
      %1270 = vector.broadcast %cst_383 : bf16 to vector<8x128xbf16>
      %c0_384 = arith.constant 0 : index
      %c0_385 = arith.constant 0 : index
      %1271 = vector.load %arg18[%c0_384, %c0_385] : memref<8x128xbf16, #tpu.memory_space<vmem>>, vector<8x128xbf16>
      tpu.vector_store %arg18[%c0_384, %c0_385], %1270 {strides = array<i32>} : memref<8x128xbf16, #tpu.memory_space<vmem>>, vector<8x128xbf16>,
      %cst_386 = arith.constant 0.00999999977 : f32
      %1272 = vector.broadcast %cst_386 : f32 to vector<8x128xf32>
      %c0_387 = arith.constant 0 : index
      %c0_388 = arith.constant 0 : index
      %1273 = vector.load %arg20[%c0_387, %c0_388] : memref<8x128xf32, #tpu.memory_space<vmem>>, vector<8x128xf32>
      tpu.vector_store %arg20[%c0_387, %c0_388], %1272 {strides = array<i32>} : memref<8x128xf32, #tpu.memory_space<vmem>>, vector<8x128xf32>,
      %cst_389 = arith.constant 0.00999999977 : f32
      %1274 = vector.broadcast %cst_389 : f32 to vector<8x128xf32>
      %c0_390 = arith.constant 0 : index
      %c0_391 = arith.constant 0 : index
      %1275 = vector.load %arg21[%c0_390, %c0_391] : memref<8x128xf32, #tpu.memory_space<vmem>>, vector<8x128xf32>
      tpu.vector_store %arg21[%c0_390, %c0_391], %1274 {strides = array<i32>} : memref<8x128xf32, #tpu.memory_space<vmem>>, vector<8x128xf32>,
    } else {
    }
    %c0 = arith.constant 0 : index
    %c0_1 = arith.constant 0 : index
    %3 = vector.load %arg7[%c0, %c0_1] : memref<7x128xf32, #tpu.memory_space<vmem>>, vector<1x128xf32>
    %c1 = arith.constant 1 : index
    %c0_2 = arith.constant 0 : index
    %4 = vector.load %arg7[%c1, %c0_2] : memref<7x128xf32, #tpu.memory_space<vmem>>, vector<1x128xf32>
    %c2 = arith.constant 2 : index
    %c0_3 = arith.constant 0 : index
    %5 = vector.load %arg7[%c2, %c0_3] : memref<7x128xf32, #tpu.memory_space<vmem>>, vector<1x128xf32>
    %c3 = arith.constant 3 : index
    %c0_4 = arith.constant 0 : index
    %6 = vector.load %arg7[%c3, %c0_4] : memref<7x128xf32, #tpu.memory_space<vmem>>, vector<1x128xf32>
    %c4 = arith.constant 4 : index
    %c0_5 = arith.constant 0 : index
    %7 = vector.load %arg7[%c4, %c0_5] : memref<7x128xf32, #tpu.memory_space<vmem>>, vector<1x128xf32>
    %c5 = arith.constant 5 : index
    %c0_6 = arith.constant 0 : index
    %8 = vector.load %arg7[%c5, %c0_6] : memref<7x128xf32, #tpu.memory_space<vmem>>, vector<1x128xf32>
    %c6 = arith.constant 6 : index
    %c0_7 = arith.constant 0 : index
    %9 = vector.load %arg7[%c6, %c0_7] : memref<7x128xf32, #tpu.memory_space<vmem>>, vector<1x128xf32>
    %c0_8 = arith.constant 0 : index
    %c0_9 = arith.constant 0 : index
    %10 = vector.load %arg8[%c0_8, %c0_9] : memref<2x20xf32, #tpu.memory_space<vmem>>, vector<1x20xf32>
    %c1_10 = arith.constant 1 : index
    %c0_11 = arith.constant 0 : index
    %11 = vector.load %arg8[%c1_10, %c0_11] : memref<2x20xf32, #tpu.memory_space<vmem>>, vector<1x20xf32>
    %c0_12 = arith.constant 0 : index
    %c0_13 = arith.constant 0 : index
    %12 = vector.load %arg3[%c0_12, %c0_13] : memref<128x128xbf16, #tpu.memory_space<vmem>>, vector<128x128xbf16>
    %c0_14 = arith.constant 0 : index
    %c0_15 = arith.constant 0 : index
    %13 = vector.load %arg4[%c0_14, %c0_15] : memref<128x128xbf16, #tpu.memory_space<vmem>>, vector<128x128xbf16>
    %c0_16 = arith.constant 0 : index
    %c0_17 = arith.constant 0 : index
    %14 = vector.load %arg5[%c0_16, %c0_17] : memref<128x128xbf16, #tpu.memory_space<vmem>>, vector<128x128xbf16>
    %c0_18 = arith.constant 0 : index
    %c0_19 = arith.constant 0 : index
    %15 = vector.load %arg6[%c0_18, %c0_19] : memref<128x20xbf16, #tpu.memory_space<vmem>>, vector<128x20xbf16>
    %c0_20 = arith.constant 0 : index
    %c0_21 = arith.constant 0 : index
    %16 = vector.load %arg15[%c0_20, %c0_21] : memref<8x128xf32, #tpu.memory_space<vmem>>, vector<8x128xf32>
    %c0_22 = arith.constant 0 : index
    %c0_23 = arith.constant 0 : index
    %17 = vector.load %arg16[%c0_22, %c0_23] : memref<8x128xbf16, #tpu.memory_space<vmem>>, vector<8x128xbf16>
    %c0_24 = arith.constant 0 : index
    %c0_25 = arith.constant 0 : index
    %18 = vector.load %arg17[%c0_24, %c0_25] : memref<8x128xf32, #tpu.memory_space<vmem>>, vector<8x128xf32>
    %c0_26 = arith.constant 0 : index
    %c0_27 = arith.constant 0 : index
    %19 = vector.load %arg18[%c0_26, %c0_27] : memref<8x128xbf16, #tpu.memory_space<vmem>>, vector<8x128xbf16>
    %c0_28 = arith.constant 0 : index
    %c0_29 = arith.constant 0 : index
    %20 = vector.load %arg19[%c0_28, %c0_29] : memref<8x20xf32, #tpu.memory_space<vmem>>, vector<8x20xf32>
    %c0_30 = arith.constant 0 : index
    %c0_31 = arith.constant 0 : index
    %21 = vector.load %arg20[%c0_30, %c0_31] : memref<8x128xf32, #tpu.memory_space<vmem>>, vector<8x128xf32>
    %c0_32 = arith.constant 0 : index
    %c0_33 = arith.constant 0 : index
    %22 = vector.load %arg21[%c0_32, %c0_33] : memref<8x128xf32, #tpu.memory_space<vmem>>, vector<8x128xf32>
    %c0_i32_34 = arith.constant 0 : i32
    %23 = arith.index_cast %c0_i32_34 : i32 to index
    %c0_35 = arith.constant 0 : index
    %c0_36 = arith.constant 0 : index
    %24 = vector.load %arg2[%23, %c0_35, %c0_36] : memref<16x8x128xf32, #tpu.memory_space<vmem>>, vector<1x8x128xf32>
    %25 = vector.shape_cast %24 : vector<1x8x128xf32> to vector<8x128xf32>
    %cst = arith.constant dense<0.000000e+00> : vector<8x128xf32>
    %26 = tpu.matmul %17, %12, %cst {dimension_numbers = #tpu.dot_dimension_numbers<[1], [0], [0], [1], [0, 0, 1, 1], [], []>} : vector<8x128xbf16>, vector<128x128xbf16>, vector<8x128xf32> -> vector<8x128xf32>
    %27 = arith.addf %25, %26 : vector<8x128xf32>
    %28 = vector.broadcast %4 : vector<1x128xf32> to vector<8x128xf32>
    %29 = arith.mulf %28, %21 : vector<8x128xf32>
    %30 = arith.extf %17 : vector<8x128xbf16> to vector<8x128xf32>
    %31 = vector.broadcast %5 : vector<1x128xf32> to vector<8x128xf32>
    %32 = arith.mulf %31, %30 : vector<8x128xf32>
    %33 = arith.addf %29, %32 : vector<8x128xf32>
    %cst_37 = arith.constant 1.800000e+00 : f32
    %34 = vector.broadcast %cst_37 : f32 to vector<8x128xf32>
    %35 = arith.mulf %34, %33 : vector<8x128xf32>
    %cst_38 = arith.constant 0.00999999977 : f32
    %36 = vector.broadcast %cst_38 : f32 to vector<8x128xf32>
    %37 = arith.addf %36, %35 : vector<8x128xf32>
    %38 = vector.broadcast %3 : vector<1x128xf32> to vector<8x128xf32>
    %39 = arith.mulf %16, %38 : vector<8x128xf32>
    %40 = arith.addf %39, %27 : vector<8x128xf32>
    %41 = arith.extf %17 : vector<8x128xbf16> to vector<8x128xf32>
    %42 = arith.mulf %37, %41 : vector<8x128xf32>
    %cst_39 = arith.constant 1.000000e+00 : f32
    %43 = vector.broadcast %cst_39 : f32 to vector<8x128xf32>
    %44 = arith.mulf %42, %43 : vector<8x128xf32>
    %45 = arith.subf %40, %44 : vector<8x128xf32>
    %46 = arith.subf %45, %37 : vector<8x128xf32>
    %cst_40 = arith.constant 0.000000e+00 : f32
    %47 = vector.broadcast %cst_40 : f32 to vector<8x128xf32>
    %48 = arith.cmpf ogt, %46, %47 : vector<8x128xf32>
    %49 = arith.extui %48 : vector<8x128xi1> to vector<8x128xi32>
    %50 = arith.sitofp %49 : vector<8x128xi32> to vector<8x128xf32>
    %51 = arith.truncf %50 : vector<8x128xf32> to vector<8x128xbf16>
    %cst_41 = arith.constant dense<0.000000e+00> : vector<8x128xf32>
    %52 = tpu.matmul %51, %13, %cst_41 {dimension_numbers = #tpu.dot_dimension_numbers<[1], [0], [0], [1], [0, 0, 1, 1], [], []>} : vector<8x128xbf16>, vector<128x128xbf16>, vector<8x128xf32> -> vector<8x128xf32>
    %cst_42 = arith.constant dense<0.000000e+00> : vector<8x128xf32>
    %53 = tpu.matmul %19, %14, %cst_42 {dimension_numbers = #tpu.dot_dimension_numbers<[1], [0], [0], [1], [0, 0, 1, 1], [], []>} : vector<8x128xbf16>, vector<128x128xbf16>, vector<8x128xf32> -> vector<8x128xf32>
    %54 = arith.addf %52, %53 : vector<8x128xf32>
    %55 = vector.broadcast %9 : vector<1x128xf32> to vector<8x128xf32>
    %56 = arith.addf %54, %55 : vector<8x128xf32>
    %57 = vector.broadcast %7 : vector<1x128xf32> to vector<8x128xf32>
    %58 = arith.mulf %57, %22 : vector<8x128xf32>
    %59 = arith.extf %19 : vector<8x128xbf16> to vector<8x128xf32>
    %60 = vector.broadcast %8 : vector<1x128xf32> to vector<8x128xf32>
    %61 = arith.mulf %60, %59 : vector<8x128xf32>
    %62 = arith.addf %58, %61 : vector<8x128xf32>
    %cst_43 = arith.constant 1.800000e+00 : f32
    %63 = vector.broadcast %cst_43 : f32 to vector<8x128xf32>
    %64 = arith.mulf %63, %62 : vector<8x128xf32>
    %cst_44 = arith.constant 0.00999999977 : f32
    %65 = vector.broadcast %cst_44 : f32 to vector<8x128xf32>
    %66 = arith.addf %65, %64 : vector<8x128xf32>
    %67 = vector.broadcast %6 : vector<1x128xf32> to vector<8x128xf32>
    %68 = arith.mulf %18, %67 : vector<8x128xf32>
    %69 = arith.addf %68, %56 : vector<8x128xf32>
    %70 = arith.extf %19 : vector<8x128xbf16> to vector<8x128xf32>
    %71 = arith.mulf %66, %70 : vector<8x128xf32>
    %cst_45 = arith.constant 1.000000e+00 : f32
    %72 = vector.broadcast %cst_45 : f32 to vector<8x128xf32>
    %73 = arith.mulf %71, %72 : vector<8x128xf32>
    %74 = arith.subf %69, %73 : vector<8x128xf32>
    %75 = arith.subf %74, %66 : vector<8x128xf32>
    %cst_46 = arith.constant 0.000000e+00 : f32
    %76 = vector.broadcast %cst_46 : f32 to vector<8x128xf32>
    %77 = arith.cmpf ogt, %75, %76 : vector<8x128xf32>
    %78 = arith.extui %77 : vector<8x128xi1> to vector<8x128xi32>
    %79 = arith.sitofp %78 : vector<8x128xi32> to vector<8x128xf32>
    %80 = arith.truncf %79 : vector<8x128xf32> to vector<8x128xbf16>
    %81 = vector.broadcast %10 : vector<1x20xf32> to vector<8x20xf32>
    %82 = arith.mulf %20, %81 : vector<8x20xf32>
    %cst_47 = arith.constant dense<0.000000e+00> : vector<8x20xf32>
    %83 = tpu.matmul %80, %15, %cst_47 {dimension_numbers = #tpu.dot_dimension_numbers<[1], [0], [0], [1], [0, 0, 1, 1], [], []>} : vector<8x128xbf16>, vector<128x20xbf16>, vector<8x20xf32> -> vector<8x20xf32>
    %84 = arith.addf %82, %83 : vector<8x20xf32>
    %85 = vector.broadcast %11 : vector<1x20xf32> to vector<8x20xf32>
    %86 = arith.addf %84, %85 : vector<8x20xf32>
    %87 = arith.index_cast %c0_i32_34 : i32 to index
    %c0_48 = arith.constant 0 : index
    %c0_49 = arith.constant 0 : index
    %88 = vector.load %arg12[%87, %c0_48, %c0_49] : memref<16x8x128xbf16, #tpu.memory_space<vmem>>, vector<1x8x128xbf16>
    %89 = vector.shape_cast %88 : vector<1x8x128xbf16> to vector<8x128xbf16>
    %90 = vector.shape_cast %80 : vector<8x128xbf16> to vector<1x8x128xbf16>
    tpu.vector_store %arg12[%87, %c0_48, %c0_49], %90 {strides = array<i32>} : memref<16x8x128xbf16, #tpu.memory_space<vmem>>, vector<1x8x128xbf16>,
    %91 = arith.truncf %74 : vector<8x128xf32> to vector<8x128xbf16>
    %92 = arith.index_cast %c0_i32_34 : i32 to index
    %c0_50 = arith.constant 0 : index
    %c0_51 = arith.constant 0 : index
    %93 = vector.load %arg13[%92, %c0_50, %c0_51] : memref<16x8x128xbf16, #tpu.memory_space<vmem>>, vector<1x8x128xbf16>
    %94 = vector.shape_cast %93 : vector<1x8x128xbf16> to vector<8x128xbf16>
    %95 = vector.shape_cast %91 : vector<8x128xbf16> to vector<1x8x128xbf16>
    tpu.vector_store %arg13[%92, %c0_50, %c0_51], %95 {strides = array<i32>} : memref<16x8x128xbf16, #tpu.memory_space<vmem>>, vector<1x8x128xbf16>,
    %96 = arith.index_cast %c0_i32_34 : i32 to index
    %c0_52 = arith.constant 0 : index
    %c0_53 = arith.constant 0 : index
    %97 = vector.load %arg14[%96, %c0_52, %c0_53] : memref<16x8x20xf32, #tpu.memory_space<vmem>>, vector<1x8x20xf32>
    %98 = vector.shape_cast %97 : vector<1x8x20xf32> to vector<8x20xf32>
    %99 = vector.shape_cast %86 : vector<8x20xf32> to vector<1x8x20xf32>
    tpu.vector_store %arg14[%96, %c0_52, %c0_53], %99 {strides = array<i32>} : memref<16x8x20xf32, #tpu.memory_space<vmem>>, vector<1x8x20xf32>,
    %c1_i32 = arith.constant 1 : i32
    %100 = arith.index_cast %c1_i32 : i32 to index
    %c0_54 = arith.constant 0 : index
    %c0_55 = arith.constant 0 : index
    %101 = vector.load %arg2[%100, %c0_54, %c0_55] : memref<16x8x128xf32, #tpu.memory_space<vmem>>, vector<1x8x128xf32>
    %102 = vector.shape_cast %101 : vector<1x8x128xf32> to vector<8x128xf32>
    %cst_56 = arith.constant dense<0.000000e+00> : vector<8x128xf32>
    %103 = tpu.matmul %51, %12, %cst_56 {dimension_numbers = #tpu.dot_dimension_numbers<[1], [0], [0], [1], [0, 0, 1, 1], [], []>} : vector<8x128xbf16>, vector<128x128xbf16>, vector<8x128xf32> -> vector<8x128xf32>
    %104 = arith.addf %102, %103 : vector<8x128xf32>
    %105 = vector.broadcast %4 : vector<1x128xf32> to vector<8x128xf32>
    %106 = arith.mulf %105, %33 : vector<8x128xf32>
    %107 = arith.extf %51 : vector<8x128xbf16> to vector<8x128xf32>
    %108 = vector.broadcast %5 : vector<1x128xf32> to vector<8x128xf32>
    %109 = arith.mulf %108, %107 : vector<8x128xf32>
    %110 = arith.addf %106, %109 : vector<8x128xf32>
    %cst_57 = arith.constant 1.800000e+00 : f32
    %111 = vector.broadcast %cst_57 : f32 to vector<8x128xf32>
    %112 = arith.mulf %111, %110 : vector<8x128xf32>
    %cst_58 = arith.constant 0.00999999977 : f32
    %113 = vector.broadcast %cst_58 : f32 to vector<8x128xf32>
    %114 = arith.addf %113, %112 : vector<8x128xf32>
    %115 = vector.broadcast %3 : vector<1x128xf32> to vector<8x128xf32>
    %116 = arith.mulf %45, %115 : vector<8x128xf32>
    %117 = arith.addf %116, %104 : vector<8x128xf32>
    %118 = arith.extf %51 : vector<8x128xbf16> to vector<8x128xf32>
    %119 = arith.mulf %114, %118 : vector<8x128xf32>
    %cst_59 = arith.constant 1.000000e+00 : f32
    %120 = vector.broadcast %cst_59 : f32 to vector<8x128xf32>
    %121 = arith.mulf %119, %120 : vector<8x128xf32>
    %122 = arith.subf %117, %121 : vector<8x128xf32>
    %123 = arith.subf %122, %114 : vector<8x128xf32>
    %cst_60 = arith.constant 0.000000e+00 : f32
    %124 = vector.broadcast %cst_60 : f32 to vector<8x128xf32>
    %125 = arith.cmpf ogt, %123, %124 : vector<8x128xf32>
    %126 = arith.extui %125 : vector<8x128xi1> to vector<8x128xi32>
    %127 = arith.sitofp %126 : vector<8x128xi32> to vector<8x128xf32>
    %128 = arith.truncf %127 : vector<8x128xf32> to vector<8x128xbf16>
    %cst_61 = arith.constant dense<0.000000e+00> : vector<8x128xf32>
    %129 = tpu.matmul %128, %13, %cst_61 {dimension_numbers = #tpu.dot_dimension_numbers<[1], [0], [0], [1], [0, 0, 1, 1], [], []>} : vector<8x128xbf16>, vector<128x128xbf16>, vector<8x128xf32> -> vector<8x128xf32>
    %cst_62 = arith.constant dense<0.000000e+00> : vector<8x128xf32>
    %130 = tpu.matmul %80, %14, %cst_62 {dimension_numbers = #tpu.dot_dimension_numbers<[1], [0], [0], [1], [0, 0, 1, 1], [], []>} : vector<8x128xbf16>, vector<128x128xbf16>, vector<8x128xf32> -> vector<8x128xf32>
    %131 = arith.addf %129, %130 : vector<8x128xf32>
    %132 = vector.broadcast %9 : vector<1x128xf32> to vector<8x128xf32>
    %133 = arith.addf %131, %132 : vector<8x128xf32>
    %134 = vector.broadcast %7 : vector<1x128xf32> to vector<8x128xf32>
    %135 = arith.mulf %134, %62 : vector<8x128xf32>
    %136 = arith.extf %80 : vector<8x128xbf16> to vector<8x128xf32>
    %137 = vector.broadcast %8 : vector<1x128xf32> to vector<8x128xf32>
    %138 = arith.mulf %137, %136 : vector<8x128xf32>
    %139 = arith.addf %135, %138 : vector<8x128xf32>
    %cst_63 = arith.constant 1.800000e+00 : f32
    %140 = vector.broadcast %cst_63 : f32 to vector<8x128xf32>
    %141 = arith.mulf %140, %139 : vector<8x128xf32>
    %cst_64 = arith.constant 0.00999999977 : f32
    %142 = vector.broadcast %cst_64 : f32 to vector<8x128xf32>
    %143 = arith.addf %142, %141 : vector<8x128xf32>
    %144 = vector.broadcast %6 : vector<1x128xf32> to vector<8x128xf32>
    %145 = arith.mulf %74, %144 : vector<8x128xf32>
    %146 = arith.addf %145, %133 : vector<8x128xf32>
    %147 = arith.extf %80 : vector<8x128xbf16> to vector<8x128xf32>
    %148 = arith.mulf %143, %147 : vector<8x128xf32>
    %cst_65 = arith.constant 1.000000e+00 : f32
    %149 = vector.broadcast %cst_65 : f32 to vector<8x128xf32>
    %150 = arith.mulf %148, %149 : vector<8x128xf32>
    %151 = arith.subf %146, %150 : vector<8x128xf32>
    %152 = arith.subf %151, %143 : vector<8x128xf32>
    %cst_66 = arith.constant 0.000000e+00 : f32
    %153 = vector.broadcast %cst_66 : f32 to vector<8x128xf32>
    %154 = arith.cmpf ogt, %152, %153 : vector<8x128xf32>
    %155 = arith.extui %154 : vector<8x128xi1> to vector<8x128xi32>
    %156 = arith.sitofp %155 : vector<8x128xi32> to vector<8x128xf32>
    %157 = arith.truncf %156 : vector<8x128xf32> to vector<8x128xbf16>
    %158 = vector.broadcast %10 : vector<1x20xf32> to vector<8x20xf32>
    %159 = arith.mulf %86, %158 : vector<8x20xf32>
    %cst_67 = arith.constant dense<0.000000e+00> : vector<8x20xf32>
    %160 = tpu.matmul %157, %15, %cst_67 {dimension_numbers = #tpu.dot_dimension_numbers<[1], [0], [0], [1], [0, 0, 1, 1], [], []>} : vector<8x128xbf16>, vector<128x20xbf16>, vector<8x20xf32> -> vector<8x20xf32>
    %161 = arith.addf %159, %160 : vector<8x20xf32>
    %162 = vector.broadcast %11 : vector<1x20xf32> to vector<8x20xf32>
    %163 = arith.addf %161, %162 : vector<8x20xf32>
    %164 = arith.index_cast %c1_i32 : i32 to index
    %c0_68 = arith.constant 0 : index
    %c0_69 = arith.constant 0 : index
    %165 = vector.load %arg12[%164, %c0_68, %c0_69] : memref<16x8x128xbf16, #tpu.memory_space<vmem>>, vector<1x8x128xbf16>
    %166 = vector.shape_cast %165 : vector<1x8x128xbf16> to vector<8x128xbf16>
    %167 = vector.shape_cast %157 : vector<8x128xbf16> to vector<1x8x128xbf16>
    tpu.vector_store %arg12[%164, %c0_68, %c0_69], %167 {strides = array<i32>} : memref<16x8x128xbf16, #tpu.memory_space<vmem>>, vector<1x8x128xbf16>,
    %168 = arith.truncf %151 : vector<8x128xf32> to vector<8x128xbf16>
    %169 = arith.index_cast %c1_i32 : i32 to index
    %c0_70 = arith.constant 0 : index
    %c0_71 = arith.constant 0 : index
    %170 = vector.load %arg13[%169, %c0_70, %c0_71] : memref<16x8x128xbf16, #tpu.memory_space<vmem>>, vector<1x8x128xbf16>
    %171 = vector.shape_cast %170 : vector<1x8x128xbf16> to vector<8x128xbf16>
    %172 = vector.shape_cast %168 : vector<8x128xbf16> to vector<1x8x128xbf16>
    tpu.vector_store %arg13[%169, %c0_70, %c0_71], %172 {strides = array<i32>} : memref<16x8x128xbf16, #tpu.memory_space<vmem>>, vector<1x8x128xbf16>,
    %173 = arith.index_cast %c1_i32 : i32 to index
    %c0_72 = arith.constant 0 : index
    %c0_73 = arith.constant 0 : index
    %174 = vector.load %arg14[%173, %c0_72, %c0_73] : memref<16x8x20xf32, #tpu.memory_space<vmem>>, vector<1x8x20xf32>
    %175 = vector.shape_cast %174 : vector<1x8x20xf32> to vector<8x20xf32>
    %176 = vector.shape_cast %163 : vector<8x20xf32> to vector<1x8x20xf32>
    tpu.vector_store %arg14[%173, %c0_72, %c0_73], %176 {strides = array<i32>} : memref<16x8x20xf32, #tpu.memory_space<vmem>>, vector<1x8x20xf32>,
    %c2_i32 = arith.constant 2 : i32
    %177 = arith.index_cast %c2_i32 : i32 to index
    %c0_74 = arith.constant 0 : index
    %c0_75 = arith.constant 0 : index
    %178 = vector.load %arg2[%177, %c0_74, %c0_75] : memref<16x8x128xf32, #tpu.memory_space<vmem>>, vector<1x8x128xf32>
    %179 = vector.shape_cast %178 : vector<1x8x128xf32> to vector<8x128xf32>
    %cst_76 = arith.constant dense<0.000000e+00> : vector<8x128xf32>
    %180 = tpu.matmul %128, %12, %cst_76 {dimension_numbers = #tpu.dot_dimension_numbers<[1], [0], [0], [1], [0, 0, 1, 1], [], []>} : vector<8x128xbf16>, vector<128x128xbf16>, vector<8x128xf32> -> vector<8x128xf32>
    %181 = arith.addf %179, %180 : vector<8x128xf32>
    %182 = vector.broadcast %4 : vector<1x128xf32> to vector<8x128xf32>
    %183 = arith.mulf %182, %110 : vector<8x128xf32>
    %184 = arith.extf %128 : vector<8x128xbf16> to vector<8x128xf32>
    %185 = vector.broadcast %5 : vector<1x128xf32> to vector<8x128xf32>
    %186 = arith.mulf %185, %184 : vector<8x128xf32>
    %187 = arith.addf %183, %186 : vector<8x128xf32>
    %cst_77 = arith.constant 1.800000e+00 : f32
    %188 = vector.broadcast %cst_77 : f32 to vector<8x128xf32>
    %189 = arith.mulf %188, %187 : vector<8x128xf32>
    %cst_78 = arith.constant 0.00999999977 : f32
    %190 = vector.broadcast %cst_78 : f32 to vector<8x128xf32>
    %191 = arith.addf %190, %189 : vector<8x128xf32>
    %192 = vector.broadcast %3 : vector<1x128xf32> to vector<8x128xf32>
    %193 = arith.mulf %122, %192 : vector<8x128xf32>
    %194 = arith.addf %193, %181 : vector<8x128xf32>
    %195 = arith.extf %128 : vector<8x128xbf16> to vector<8x128xf32>
    %196 = arith.mulf %191, %195 : vector<8x128xf32>
    %cst_79 = arith.constant 1.000000e+00 : f32
    %197 = vector.broadcast %cst_79 : f32 to vector<8x128xf32>
    %198 = arith.mulf %196, %197 : vector<8x128xf32>
    %199 = arith.subf %194, %198 : vector<8x128xf32>
    %200 = arith.subf %199, %191 : vector<8x128xf32>
    %cst_80 = arith.constant 0.000000e+00 : f32
    %201 = vector.broadcast %cst_80 : f32 to vector<8x128xf32>
    %202 = arith.cmpf ogt, %200, %201 : vector<8x128xf32>
    %203 = arith.extui %202 : vector<8x128xi1> to vector<8x128xi32>
    %204 = arith.sitofp %203 : vector<8x128xi32> to vector<8x128xf32>
    %205 = arith.truncf %204 : vector<8x128xf32> to vector<8x128xbf16>
    %cst_81 = arith.constant dense<0.000000e+00> : vector<8x128xf32>
    %206 = tpu.matmul %205, %13, %cst_81 {dimension_numbers = #tpu.dot_dimension_numbers<[1], [0], [0], [1], [0, 0, 1, 1], [], []>} : vector<8x128xbf16>, vector<128x128xbf16>, vector<8x128xf32> -> vector<8x128xf32>
    %cst_82 = arith.constant dense<0.000000e+00> : vector<8x128xf32>
    %207 = tpu.matmul %157, %14, %cst_82 {dimension_numbers = #tpu.dot_dimension_numbers<[1], [0], [0], [1], [0, 0, 1, 1], [], []>} : vector<8x128xbf16>, vector<128x128xbf16>, vector<8x128xf32> -> vector<8x128xf32>
    %208 = arith.addf %206, %207 : vector<8x128xf32>
    %209 = vector.broadcast %9 : vector<1x128xf32> to vector<8x128xf32>
    %210 = arith.addf %208, %209 : vector<8x128xf32>
    %211 = vector.broadcast %7 : vector<1x128xf32> to vector<8x128xf32>
    %212 = arith.mulf %211, %139 : vector<8x128xf32>
    %213 = arith.extf %157 : vector<8x128xbf16> to vector<8x128xf32>
    %214 = vector.broadcast %8 : vector<1x128xf32> to vector<8x128xf32>
    %215 = arith.mulf %214, %213 : vector<8x128xf32>
    %216 = arith.addf %212, %215 : vector<8x128xf32>
    %cst_83 = arith.constant 1.800000e+00 : f32
    %217 = vector.broadcast %cst_83 : f32 to vector<8x128xf32>
    %218 = arith.mulf %217, %216 : vector<8x128xf32>
    %cst_84 = arith.constant 0.00999999977 : f32
    %219 = vector.broadcast %cst_84 : f32 to vector<8x128xf32>
    %220 = arith.addf %219, %218 : vector<8x128xf32>
    %221 = vector.broadcast %6 : vector<1x128xf32> to vector<8x128xf32>
    %222 = arith.mulf %151, %221 : vector<8x128xf32>
    %223 = arith.addf %222, %210 : vector<8x128xf32>
    %224 = arith.extf %157 : vector<8x128xbf16> to vector<8x128xf32>
    %225 = arith.mulf %220, %224 : vector<8x128xf32>
    %cst_85 = arith.constant 1.000000e+00 : f32
    %226 = vector.broadcast %cst_85 : f32 to vector<8x128xf32>
    %227 = arith.mulf %225, %226 : vector<8x128xf32>
    %228 = arith.subf %223, %227 : vector<8x128xf32>
    %229 = arith.subf %228, %220 : vector<8x128xf32>
    %cst_86 = arith.constant 0.000000e+00 : f32
    %230 = vector.broadcast %cst_86 : f32 to vector<8x128xf32>
    %231 = arith.cmpf ogt, %229, %230 : vector<8x128xf32>
    %232 = arith.extui %231 : vector<8x128xi1> to vector<8x128xi32>
    %233 = arith.sitofp %232 : vector<8x128xi32> to vector<8x128xf32>
    %234 = arith.truncf %233 : vector<8x128xf32> to vector<8x128xbf16>
    %235 = vector.broadcast %10 : vector<1x20xf32> to vector<8x20xf32>
    %236 = arith.mulf %163, %235 : vector<8x20xf32>
    %cst_87 = arith.constant dense<0.000000e+00> : vector<8x20xf32>
    %237 = tpu.matmul %234, %15, %cst_87 {dimension_numbers = #tpu.dot_dimension_numbers<[1], [0], [0], [1], [0, 0, 1, 1], [], []>} : vector<8x128xbf16>, vector<128x20xbf16>, vector<8x20xf32> -> vector<8x20xf32>
    %238 = arith.addf %236, %237 : vector<8x20xf32>
    %239 = vector.broadcast %11 : vector<1x20xf32> to vector<8x20xf32>
    %240 = arith.addf %238, %239 : vector<8x20xf32>
    %241 = arith.index_cast %c2_i32 : i32 to index
    %c0_88 = arith.constant 0 : index
    %c0_89 = arith.constant 0 : index
    %242 = vector.load %arg12[%241, %c0_88, %c0_89] : memref<16x8x128xbf16, #tpu.memory_space<vmem>>, vector<1x8x128xbf16>
    %243 = vector.shape_cast %242 : vector<1x8x128xbf16> to vector<8x128xbf16>
    %244 = vector.shape_cast %234 : vector<8x128xbf16> to vector<1x8x128xbf16>
    tpu.vector_store %arg12[%241, %c0_88, %c0_89], %244 {strides = array<i32>} : memref<16x8x128xbf16, #tpu.memory_space<vmem>>, vector<1x8x128xbf16>,
    %245 = arith.truncf %228 : vector<8x128xf32> to vector<8x128xbf16>
    %246 = arith.index_cast %c2_i32 : i32 to index
    %c0_90 = arith.constant 0 : index
    %c0_91 = arith.constant 0 : index
    %247 = vector.load %arg13[%246, %c0_90, %c0_91] : memref<16x8x128xbf16, #tpu.memory_space<vmem>>, vector<1x8x128xbf16>
    %248 = vector.shape_cast %247 : vector<1x8x128xbf16> to vector<8x128xbf16>
    %249 = vector.shape_cast %245 : vector<8x128xbf16> to vector<1x8x128xbf16>
    tpu.vector_store %arg13[%246, %c0_90, %c0_91], %249 {strides = array<i32>} : memref<16x8x128xbf16, #tpu.memory_space<vmem>>, vector<1x8x128xbf16>,
    %250 = arith.index_cast %c2_i32 : i32 to index
    %c0_92 = arith.constant 0 : index
    %c0_93 = arith.constant 0 : index
    %251 = vector.load %arg14[%250, %c0_92, %c0_93] : memref<16x8x20xf32, #tpu.memory_space<vmem>>, vector<1x8x20xf32>
    %252 = vector.shape_cast %251 : vector<1x8x20xf32> to vector<8x20xf32>
    %253 = vector.shape_cast %240 : vector<8x20xf32> to vector<1x8x20xf32>
    tpu.vector_store %arg14[%250, %c0_92, %c0_93], %253 {strides = array<i32>} : memref<16x8x20xf32, #tpu.memory_space<vmem>>, vector<1x8x20xf32>,
    %c3_i32 = arith.constant 3 : i32
    %254 = arith.index_cast %c3_i32 : i32 to index
    %c0_94 = arith.constant 0 : index
    %c0_95 = arith.constant 0 : index
    %255 = vector.load %arg2[%254, %c0_94, %c0_95] : memref<16x8x128xf32, #tpu.memory_space<vmem>>, vector<1x8x128xf32>
    %256 = vector.shape_cast %255 : vector<1x8x128xf32> to vector<8x128xf32>
    %cst_96 = arith.constant dense<0.000000e+00> : vector<8x128xf32>
    %257 = tpu.matmul %205, %12, %cst_96 {dimension_numbers = #tpu.dot_dimension_numbers<[1], [0], [0], [1], [0, 0, 1, 1], [], []>} : vector<8x128xbf16>, vector<128x128xbf16>, vector<8x128xf32> -> vector<8x128xf32>
    %258 = arith.addf %256, %257 : vector<8x128xf32>
    %259 = vector.broadcast %4 : vector<1x128xf32> to vector<8x128xf32>
    %260 = arith.mulf %259, %187 : vector<8x128xf32>
    %261 = arith.extf %205 : vector<8x128xbf16> to vector<8x128xf32>
    %262 = vector.broadcast %5 : vector<1x128xf32> to vector<8x128xf32>
    %263 = arith.mulf %262, %261 : vector<8x128xf32>
    %264 = arith.addf %260, %263 : vector<8x128xf32>
    %cst_97 = arith.constant 1.800000e+00 : f32
    %265 = vector.broadcast %cst_97 : f32 to vector<8x128xf32>
    %266 = arith.mulf %265, %264 : vector<8x128xf32>
    %cst_98 = arith.constant 0.00999999977 : f32
    %267 = vector.broadcast %cst_98 : f32 to vector<8x128xf32>
    %268 = arith.addf %267, %266 : vector<8x128xf32>
    %269 = vector.broadcast %3 : vector<1x128xf32> to vector<8x128xf32>
    %270 = arith.mulf %199, %269 : vector<8x128xf32>
    %271 = arith.addf %270, %258 : vector<8x128xf32>
    %272 = arith.extf %205 : vector<8x128xbf16> to vector<8x128xf32>
    %273 = arith.mulf %268, %272 : vector<8x128xf32>
    %cst_99 = arith.constant 1.000000e+00 : f32
    %274 = vector.broadcast %cst_99 : f32 to vector<8x128xf32>
    %275 = arith.mulf %273, %274 : vector<8x128xf32>
    %276 = arith.subf %271, %275 : vector<8x128xf32>
    %277 = arith.subf %276, %268 : vector<8x128xf32>
    %cst_100 = arith.constant 0.000000e+00 : f32
    %278 = vector.broadcast %cst_100 : f32 to vector<8x128xf32>
    %279 = arith.cmpf ogt, %277, %278 : vector<8x128xf32>
    %280 = arith.extui %279 : vector<8x128xi1> to vector<8x128xi32>
    %281 = arith.sitofp %280 : vector<8x128xi32> to vector<8x128xf32>
    %282 = arith.truncf %281 : vector<8x128xf32> to vector<8x128xbf16>
    %cst_101 = arith.constant dense<0.000000e+00> : vector<8x128xf32>
    %283 = tpu.matmul %282, %13, %cst_101 {dimension_numbers = #tpu.dot_dimension_numbers<[1], [0], [0], [1], [0, 0, 1, 1], [], []>} : vector<8x128xbf16>, vector<128x128xbf16>, vector<8x128xf32> -> vector<8x128xf32>
    %cst_102 = arith.constant dense<0.000000e+00> : vector<8x128xf32>
    %284 = tpu.matmul %234, %14, %cst_102 {dimension_numbers = #tpu.dot_dimension_numbers<[1], [0], [0], [1], [0, 0, 1, 1], [], []>} : vector<8x128xbf16>, vector<128x128xbf16>, vector<8x128xf32> -> vector<8x128xf32>
    %285 = arith.addf %283, %284 : vector<8x128xf32>
    %286 = vector.broadcast %9 : vector<1x128xf32> to vector<8x128xf32>
    %287 = arith.addf %285, %286 : vector<8x128xf32>
    %288 = vector.broadcast %7 : vector<1x128xf32> to vector<8x128xf32>
    %289 = arith.mulf %288, %216 : vector<8x128xf32>
    %290 = arith.extf %234 : vector<8x128xbf16> to vector<8x128xf32>
    %291 = vector.broadcast %8 : vector<1x128xf32> to vector<8x128xf32>
    %292 = arith.mulf %291, %290 : vector<8x128xf32>
    %293 = arith.addf %289, %292 : vector<8x128xf32>
    %cst_103 = arith.constant 1.800000e+00 : f32
    %294 = vector.broadcast %cst_103 : f32 to vector<8x128xf32>
    %295 = arith.mulf %294, %293 : vector<8x128xf32>
    %cst_104 = arith.constant 0.00999999977 : f32
    %296 = vector.broadcast %cst_104 : f32 to vector<8x128xf32>
    %297 = arith.addf %296, %295 : vector<8x128xf32>
    %298 = vector.broadcast %6 : vector<1x128xf32> to vector<8x128xf32>
    %299 = arith.mulf %228, %298 : vector<8x128xf32>
    %300 = arith.addf %299, %287 : vector<8x128xf32>
    %301 = arith.extf %234 : vector<8x128xbf16> to vector<8x128xf32>
    %302 = arith.mulf %297, %301 : vector<8x128xf32>
    %cst_105 = arith.constant 1.000000e+00 : f32
    %303 = vector.broadcast %cst_105 : f32 to vector<8x128xf32>
    %304 = arith.mulf %302, %303 : vector<8x128xf32>
    %305 = arith.subf %300, %304 : vector<8x128xf32>
    %306 = arith.subf %305, %297 : vector<8x128xf32>
    %cst_106 = arith.constant 0.000000e+00 : f32
    %307 = vector.broadcast %cst_106 : f32 to vector<8x128xf32>
    %308 = arith.cmpf ogt, %306, %307 : vector<8x128xf32>
    %309 = arith.extui %308 : vector<8x128xi1> to vector<8x128xi32>
    %310 = arith.sitofp %309 : vector<8x128xi32> to vector<8x128xf32>
    %311 = arith.truncf %310 : vector<8x128xf32> to vector<8x128xbf16>
    %312 = vector.broadcast %10 : vector<1x20xf32> to vector<8x20xf32>
    %313 = arith.mulf %240, %312 : vector<8x20xf32>
    %cst_107 = arith.constant dense<0.000000e+00> : vector<8x20xf32>
    %314 = tpu.matmul %311, %15, %cst_107 {dimension_numbers = #tpu.dot_dimension_numbers<[1], [0], [0], [1], [0, 0, 1, 1], [], []>} : vector<8x128xbf16>, vector<128x20xbf16>, vector<8x20xf32> -> vector<8x20xf32>
    %315 = arith.addf %313, %314 : vector<8x20xf32>
    %316 = vector.broadcast %11 : vector<1x20xf32> to vector<8x20xf32>
    %317 = arith.addf %315, %316 : vector<8x20xf32>
    %318 = arith.index_cast %c3_i32 : i32 to index
    %c0_108 = arith.constant 0 : index
    %c0_109 = arith.constant 0 : index
    %319 = vector.load %arg12[%318, %c0_108, %c0_109] : memref<16x8x128xbf16, #tpu.memory_space<vmem>>, vector<1x8x128xbf16>
    %320 = vector.shape_cast %319 : vector<1x8x128xbf16> to vector<8x128xbf16>
    %321 = vector.shape_cast %311 : vector<8x128xbf16> to vector<1x8x128xbf16>
    tpu.vector_store %arg12[%318, %c0_108, %c0_109], %321 {strides = array<i32>} : memref<16x8x128xbf16, #tpu.memory_space<vmem>>, vector<1x8x128xbf16>,
    %322 = arith.truncf %305 : vector<8x128xf32> to vector<8x128xbf16>
    %323 = arith.index_cast %c3_i32 : i32 to index
    %c0_110 = arith.constant 0 : index
    %c0_111 = arith.constant 0 : index
    %324 = vector.load %arg13[%323, %c0_110, %c0_111] : memref<16x8x128xbf16, #tpu.memory_space<vmem>>, vector<1x8x128xbf16>
    %325 = vector.shape_cast %324 : vector<1x8x128xbf16> to vector<8x128xbf16>
    %326 = vector.shape_cast %322 : vector<8x128xbf16> to vector<1x8x128xbf16>
    tpu.vector_store %arg13[%323, %c0_110, %c0_111], %326 {strides = array<i32>} : memref<16x8x128xbf16, #tpu.memory_space<vmem>>, vector<1x8x128xbf16>,
    %327 = arith.index_cast %c3_i32 : i32 to index
    %c0_112 = arith.constant 0 : index
    %c0_113 = arith.constant 0 : index
    %328 = vector.load %arg14[%327, %c0_112, %c0_113] : memref<16x8x20xf32, #tpu.memory_space<vmem>>, vector<1x8x20xf32>
    %329 = vector.shape_cast %328 : vector<1x8x20xf32> to vector<8x20xf32>
    %330 = vector.shape_cast %317 : vector<8x20xf32> to vector<1x8x20xf32>
    tpu.vector_store %arg14[%327, %c0_112, %c0_113], %330 {strides = array<i32>} : memref<16x8x20xf32, #tpu.memory_space<vmem>>, vector<1x8x20xf32>,
    %c4_i32 = arith.constant 4 : i32
    %331 = arith.index_cast %c4_i32 : i32 to index
    %c0_114 = arith.constant 0 : index
    %c0_115 = arith.constant 0 : index
    %332 = vector.load %arg2[%331, %c0_114, %c0_115] : memref<16x8x128xf32, #tpu.memory_space<vmem>>, vector<1x8x128xf32>
    %333 = vector.shape_cast %332 : vector<1x8x128xf32> to vector<8x128xf32>
    %cst_116 = arith.constant dense<0.000000e+00> : vector<8x128xf32>
    %334 = tpu.matmul %282, %12, %cst_116 {dimension_numbers = #tpu.dot_dimension_numbers<[1], [0], [0], [1], [0, 0, 1, 1], [], []>} : vector<8x128xbf16>, vector<128x128xbf16>, vector<8x128xf32> -> vector<8x128xf32>
    %335 = arith.addf %333, %334 : vector<8x128xf32>
    %336 = vector.broadcast %4 : vector<1x128xf32> to vector<8x128xf32>
    %337 = arith.mulf %336, %264 : vector<8x128xf32>
    %338 = arith.extf %282 : vector<8x128xbf16> to vector<8x128xf32>
    %339 = vector.broadcast %5 : vector<1x128xf32> to vector<8x128xf32>
    %340 = arith.mulf %339, %338 : vector<8x128xf32>
    %341 = arith.addf %337, %340 : vector<8x128xf32>
    %cst_117 = arith.constant 1.800000e+00 : f32
    %342 = vector.broadcast %cst_117 : f32 to vector<8x128xf32>
    %343 = arith.mulf %342, %341 : vector<8x128xf32>
    %cst_118 = arith.constant 0.00999999977 : f32
    %344 = vector.broadcast %cst_118 : f32 to vector<8x128xf32>
    %345 = arith.addf %344, %343 : vector<8x128xf32>
    %346 = vector.broadcast %3 : vector<1x128xf32> to vector<8x128xf32>
    %347 = arith.mulf %276, %346 : vector<8x128xf32>
    %348 = arith.addf %347, %335 : vector<8x128xf32>
    %349 = arith.extf %282 : vector<8x128xbf16> to vector<8x128xf32>
    %350 = arith.mulf %345, %349 : vector<8x128xf32>
    %cst_119 = arith.constant 1.000000e+00 : f32
    %351 = vector.broadcast %cst_119 : f32 to vector<8x128xf32>
    %352 = arith.mulf %350, %351 : vector<8x128xf32>
    %353 = arith.subf %348, %352 : vector<8x128xf32>
    %354 = arith.subf %353, %345 : vector<8x128xf32>
    %cst_120 = arith.constant 0.000000e+00 : f32
    %355 = vector.broadcast %cst_120 : f32 to vector<8x128xf32>
    %356 = arith.cmpf ogt, %354, %355 : vector<8x128xf32>
    %357 = arith.extui %356 : vector<8x128xi1> to vector<8x128xi32>
    %358 = arith.sitofp %357 : vector<8x128xi32> to vector<8x128xf32>
    %359 = arith.truncf %358 : vector<8x128xf32> to vector<8x128xbf16>
    %cst_121 = arith.constant dense<0.000000e+00> : vector<8x128xf32>
    %360 = tpu.matmul %359, %13, %cst_121 {dimension_numbers = #tpu.dot_dimension_numbers<[1], [0], [0], [1], [0, 0, 1, 1], [], []>} : vector<8x128xbf16>, vector<128x128xbf16>, vector<8x128xf32> -> vector<8x128xf32>
    %cst_122 = arith.constant dense<0.000000e+00> : vector<8x128xf32>
    %361 = tpu.matmul %311, %14, %cst_122 {dimension_numbers = #tpu.dot_dimension_numbers<[1], [0], [0], [1], [0, 0, 1, 1], [], []>} : vector<8x128xbf16>, vector<128x128xbf16>, vector<8x128xf32> -> vector<8x128xf32>
    %362 = arith.addf %360, %361 : vector<8x128xf32>
    %363 = vector.broadcast %9 : vector<1x128xf32> to vector<8x128xf32>
    %364 = arith.addf %362, %363 : vector<8x128xf32>
    %365 = vector.broadcast %7 : vector<1x128xf32> to vector<8x128xf32>
    %366 = arith.mulf %365, %293 : vector<8x128xf32>
    %367 = arith.extf %311 : vector<8x128xbf16> to vector<8x128xf32>
    %368 = vector.broadcast %8 : vector<1x128xf32> to vector<8x128xf32>
    %369 = arith.mulf %368, %367 : vector<8x128xf32>
    %370 = arith.addf %366, %369 : vector<8x128xf32>
    %cst_123 = arith.constant 1.800000e+00 : f32
    %371 = vector.broadcast %cst_123 : f32 to vector<8x128xf32>
    %372 = arith.mulf %371, %370 : vector<8x128xf32>
    %cst_124 = arith.constant 0.00999999977 : f32
    %373 = vector.broadcast %cst_124 : f32 to vector<8x128xf32>
    %374 = arith.addf %373, %372 : vector<8x128xf32>
    %375 = vector.broadcast %6 : vector<1x128xf32> to vector<8x128xf32>
    %376 = arith.mulf %305, %375 : vector<8x128xf32>
    %377 = arith.addf %376, %364 : vector<8x128xf32>
    %378 = arith.extf %311 : vector<8x128xbf16> to vector<8x128xf32>
    %379 = arith.mulf %374, %378 : vector<8x128xf32>
    %cst_125 = arith.constant 1.000000e+00 : f32
    %380 = vector.broadcast %cst_125 : f32 to vector<8x128xf32>
    %381 = arith.mulf %379, %380 : vector<8x128xf32>
    %382 = arith.subf %377, %381 : vector<8x128xf32>
    %383 = arith.subf %382, %374 : vector<8x128xf32>
    %cst_126 = arith.constant 0.000000e+00 : f32
    %384 = vector.broadcast %cst_126 : f32 to vector<8x128xf32>
    %385 = arith.cmpf ogt, %383, %384 : vector<8x128xf32>
    %386 = arith.extui %385 : vector<8x128xi1> to vector<8x128xi32>
    %387 = arith.sitofp %386 : vector<8x128xi32> to vector<8x128xf32>
    %388 = arith.truncf %387 : vector<8x128xf32> to vector<8x128xbf16>
    %389 = vector.broadcast %10 : vector<1x20xf32> to vector<8x20xf32>
    %390 = arith.mulf %317, %389 : vector<8x20xf32>
    %cst_127 = arith.constant dense<0.000000e+00> : vector<8x20xf32>
    %391 = tpu.matmul %388, %15, %cst_127 {dimension_numbers = #tpu.dot_dimension_numbers<[1], [0], [0], [1], [0, 0, 1, 1], [], []>} : vector<8x128xbf16>, vector<128x20xbf16>, vector<8x20xf32> -> vector<8x20xf32>
    %392 = arith.addf %390, %391 : vector<8x20xf32>
    %393 = vector.broadcast %11 : vector<1x20xf32> to vector<8x20xf32>
    %394 = arith.addf %392, %393 : vector<8x20xf32>
    %395 = arith.index_cast %c4_i32 : i32 to index
    %c0_128 = arith.constant 0 : index
    %c0_129 = arith.constant 0 : index
    %396 = vector.load %arg12[%395, %c0_128, %c0_129] : memref<16x8x128xbf16, #tpu.memory_space<vmem>>, vector<1x8x128xbf16>
    %397 = vector.shape_cast %396 : vector<1x8x128xbf16> to vector<8x128xbf16>
    %398 = vector.shape_cast %388 : vector<8x128xbf16> to vector<1x8x128xbf16>
    tpu.vector_store %arg12[%395, %c0_128, %c0_129], %398 {strides = array<i32>} : memref<16x8x128xbf16, #tpu.memory_space<vmem>>, vector<1x8x128xbf16>,
    %399 = arith.truncf %382 : vector<8x128xf32> to vector<8x128xbf16>
    %400 = arith.index_cast %c4_i32 : i32 to index
    %c0_130 = arith.constant 0 : index
    %c0_131 = arith.constant 0 : index
    %401 = vector.load %arg13[%400, %c0_130, %c0_131] : memref<16x8x128xbf16, #tpu.memory_space<vmem>>, vector<1x8x128xbf16>
    %402 = vector.shape_cast %401 : vector<1x8x128xbf16> to vector<8x128xbf16>
    %403 = vector.shape_cast %399 : vector<8x128xbf16> to vector<1x8x128xbf16>
    tpu.vector_store %arg13[%400, %c0_130, %c0_131], %403 {strides = array<i32>} : memref<16x8x128xbf16, #tpu.memory_space<vmem>>, vector<1x8x128xbf16>,
    %404 = arith.index_cast %c4_i32 : i32 to index
    %c0_132 = arith.constant 0 : index
    %c0_133 = arith.constant 0 : index
    %405 = vector.load %arg14[%404, %c0_132, %c0_133] : memref<16x8x20xf32, #tpu.memory_space<vmem>>, vector<1x8x20xf32>
    %406 = vector.shape_cast %405 : vector<1x8x20xf32> to vector<8x20xf32>
    %407 = vector.shape_cast %394 : vector<8x20xf32> to vector<1x8x20xf32>
    tpu.vector_store %arg14[%404, %c0_132, %c0_133], %407 {strides = array<i32>} : memref<16x8x20xf32, #tpu.memory_space<vmem>>, vector<1x8x20xf32>,
    %c5_i32 = arith.constant 5 : i32
    %408 = arith.index_cast %c5_i32 : i32 to index
    %c0_134 = arith.constant 0 : index
    %c0_135 = arith.constant 0 : index
    %409 = vector.load %arg2[%408, %c0_134, %c0_135] : memref<16x8x128xf32, #tpu.memory_space<vmem>>, vector<1x8x128xf32>
    %410 = vector.shape_cast %409 : vector<1x8x128xf32> to vector<8x128xf32>
    %cst_136 = arith.constant dense<0.000000e+00> : vector<8x128xf32>
    %411 = tpu.matmul %359, %12, %cst_136 {dimension_numbers = #tpu.dot_dimension_numbers<[1], [0], [0], [1], [0, 0, 1, 1], [], []>} : vector<8x128xbf16>, vector<128x128xbf16>, vector<8x128xf32> -> vector<8x128xf32>
    %412 = arith.addf %410, %411 : vector<8x128xf32>
    %413 = vector.broadcast %4 : vector<1x128xf32> to vector<8x128xf32>
    %414 = arith.mulf %413, %341 : vector<8x128xf32>
    %415 = arith.extf %359 : vector<8x128xbf16> to vector<8x128xf32>
    %416 = vector.broadcast %5 : vector<1x128xf32> to vector<8x128xf32>
    %417 = arith.mulf %416, %415 : vector<8x128xf32>
    %418 = arith.addf %414, %417 : vector<8x128xf32>
    %cst_137 = arith.constant 1.800000e+00 : f32
    %419 = vector.broadcast %cst_137 : f32 to vector<8x128xf32>
    %420 = arith.mulf %419, %418 : vector<8x128xf32>
    %cst_138 = arith.constant 0.00999999977 : f32
    %421 = vector.broadcast %cst_138 : f32 to vector<8x128xf32>
    %422 = arith.addf %421, %420 : vector<8x128xf32>
    %423 = vector.broadcast %3 : vector<1x128xf32> to vector<8x128xf32>
    %424 = arith.mulf %353, %423 : vector<8x128xf32>
    %425 = arith.addf %424, %412 : vector<8x128xf32>
    %426 = arith.extf %359 : vector<8x128xbf16> to vector<8x128xf32>
    %427 = arith.mulf %422, %426 : vector<8x128xf32>
    %cst_139 = arith.constant 1.000000e+00 : f32
    %428 = vector.broadcast %cst_139 : f32 to vector<8x128xf32>
    %429 = arith.mulf %427, %428 : vector<8x128xf32>
    %430 = arith.subf %425, %429 : vector<8x128xf32>
    %431 = arith.subf %430, %422 : vector<8x128xf32>
    %cst_140 = arith.constant 0.000000e+00 : f32
    %432 = vector.broadcast %cst_140 : f32 to vector<8x128xf32>
    %433 = arith.cmpf ogt, %431, %432 : vector<8x128xf32>
    %434 = arith.extui %433 : vector<8x128xi1> to vector<8x128xi32>
    %435 = arith.sitofp %434 : vector<8x128xi32> to vector<8x128xf32>
    %436 = arith.truncf %435 : vector<8x128xf32> to vector<8x128xbf16>
    %cst_141 = arith.constant dense<0.000000e+00> : vector<8x128xf32>
    %437 = tpu.matmul %436, %13, %cst_141 {dimension_numbers = #tpu.dot_dimension_numbers<[1], [0], [0], [1], [0, 0, 1, 1], [], []>} : vector<8x128xbf16>, vector<128x128xbf16>, vector<8x128xf32> -> vector<8x128xf32>
    %cst_142 = arith.constant dense<0.000000e+00> : vector<8x128xf32>
    %438 = tpu.matmul %388, %14, %cst_142 {dimension_numbers = #tpu.dot_dimension_numbers<[1], [0], [0], [1], [0, 0, 1, 1], [], []>} : vector<8x128xbf16>, vector<128x128xbf16>, vector<8x128xf32> -> vector<8x128xf32>
    %439 = arith.addf %437, %438 : vector<8x128xf32>
    %440 = vector.broadcast %9 : vector<1x128xf32> to vector<8x128xf32>
    %441 = arith.addf %439, %440 : vector<8x128xf32>
    %442 = vector.broadcast %7 : vector<1x128xf32> to vector<8x128xf32>
    %443 = arith.mulf %442, %370 : vector<8x128xf32>
    %444 = arith.extf %388 : vector<8x128xbf16> to vector<8x128xf32>
    %445 = vector.broadcast %8 : vector<1x128xf32> to vector<8x128xf32>
    %446 = arith.mulf %445, %444 : vector<8x128xf32>
    %447 = arith.addf %443, %446 : vector<8x128xf32>
    %cst_143 = arith.constant 1.800000e+00 : f32
    %448 = vector.broadcast %cst_143 : f32 to vector<8x128xf32>
    %449 = arith.mulf %448, %447 : vector<8x128xf32>
    %cst_144 = arith.constant 0.00999999977 : f32
    %450 = vector.broadcast %cst_144 : f32 to vector<8x128xf32>
    %451 = arith.addf %450, %449 : vector<8x128xf32>
    %452 = vector.broadcast %6 : vector<1x128xf32> to vector<8x128xf32>
    %453 = arith.mulf %382, %452 : vector<8x128xf32>
    %454 = arith.addf %453, %441 : vector<8x128xf32>
    %455 = arith.extf %388 : vector<8x128xbf16> to vector<8x128xf32>
    %456 = arith.mulf %451, %455 : vector<8x128xf32>
    %cst_145 = arith.constant 1.000000e+00 : f32
    %457 = vector.broadcast %cst_145 : f32 to vector<8x128xf32>
    %458 = arith.mulf %456, %457 : vector<8x128xf32>
    %459 = arith.subf %454, %458 : vector<8x128xf32>
    %460 = arith.subf %459, %451 : vector<8x128xf32>
    %cst_146 = arith.constant 0.000000e+00 : f32
    %461 = vector.broadcast %cst_146 : f32 to vector<8x128xf32>
    %462 = arith.cmpf ogt, %460, %461 : vector<8x128xf32>
    %463 = arith.extui %462 : vector<8x128xi1> to vector<8x128xi32>
    %464 = arith.sitofp %463 : vector<8x128xi32> to vector<8x128xf32>
    %465 = arith.truncf %464 : vector<8x128xf32> to vector<8x128xbf16>
    %466 = vector.broadcast %10 : vector<1x20xf32> to vector<8x20xf32>
    %467 = arith.mulf %394, %466 : vector<8x20xf32>
    %cst_147 = arith.constant dense<0.000000e+00> : vector<8x20xf32>
    %468 = tpu.matmul %465, %15, %cst_147 {dimension_numbers = #tpu.dot_dimension_numbers<[1], [0], [0], [1], [0, 0, 1, 1], [], []>} : vector<8x128xbf16>, vector<128x20xbf16>, vector<8x20xf32> -> vector<8x20xf32>
    %469 = arith.addf %467, %468 : vector<8x20xf32>
    %470 = vector.broadcast %11 : vector<1x20xf32> to vector<8x20xf32>
    %471 = arith.addf %469, %470 : vector<8x20xf32>
    %472 = arith.index_cast %c5_i32 : i32 to index
    %c0_148 = arith.constant 0 : index
    %c0_149 = arith.constant 0 : index
    %473 = vector.load %arg12[%472, %c0_148, %c0_149] : memref<16x8x128xbf16, #tpu.memory_space<vmem>>, vector<1x8x128xbf16>
    %474 = vector.shape_cast %473 : vector<1x8x128xbf16> to vector<8x128xbf16>
    %475 = vector.shape_cast %465 : vector<8x128xbf16> to vector<1x8x128xbf16>
    tpu.vector_store %arg12[%472, %c0_148, %c0_149], %475 {strides = array<i32>} : memref<16x8x128xbf16, #tpu.memory_space<vmem>>, vector<1x8x128xbf16>,
    %476 = arith.truncf %459 : vector<8x128xf32> to vector<8x128xbf16>
    %477 = arith.index_cast %c5_i32 : i32 to index
    %c0_150 = arith.constant 0 : index
    %c0_151 = arith.constant 0 : index
    %478 = vector.load %arg13[%477, %c0_150, %c0_151] : memref<16x8x128xbf16, #tpu.memory_space<vmem>>, vector<1x8x128xbf16>
    %479 = vector.shape_cast %478 : vector<1x8x128xbf16> to vector<8x128xbf16>
    %480 = vector.shape_cast %476 : vector<8x128xbf16> to vector<1x8x128xbf16>
    tpu.vector_store %arg13[%477, %c0_150, %c0_151], %480 {strides = array<i32>} : memref<16x8x128xbf16, #tpu.memory_space<vmem>>, vector<1x8x128xbf16>,
    %481 = arith.index_cast %c5_i32 : i32 to index
    %c0_152 = arith.constant 0 : index
    %c0_153 = arith.constant 0 : index
    %482 = vector.load %arg14[%481, %c0_152, %c0_153] : memref<16x8x20xf32, #tpu.memory_space<vmem>>, vector<1x8x20xf32>
    %483 = vector.shape_cast %482 : vector<1x8x20xf32> to vector<8x20xf32>
    %484 = vector.shape_cast %471 : vector<8x20xf32> to vector<1x8x20xf32>
    tpu.vector_store %arg14[%481, %c0_152, %c0_153], %484 {strides = array<i32>} : memref<16x8x20xf32, #tpu.memory_space<vmem>>, vector<1x8x20xf32>,
    %c6_i32 = arith.constant 6 : i32
    %485 = arith.index_cast %c6_i32 : i32 to index
    %c0_154 = arith.constant 0 : index
    %c0_155 = arith.constant 0 : index
    %486 = vector.load %arg2[%485, %c0_154, %c0_155] : memref<16x8x128xf32, #tpu.memory_space<vmem>>, vector<1x8x128xf32>
    %487 = vector.shape_cast %486 : vector<1x8x128xf32> to vector<8x128xf32>
    %cst_156 = arith.constant dense<0.000000e+00> : vector<8x128xf32>
    %488 = tpu.matmul %436, %12, %cst_156 {dimension_numbers = #tpu.dot_dimension_numbers<[1], [0], [0], [1], [0, 0, 1, 1], [], []>} : vector<8x128xbf16>, vector<128x128xbf16>, vector<8x128xf32> -> vector<8x128xf32>
    %489 = arith.addf %487, %488 : vector<8x128xf32>
    %490 = vector.broadcast %4 : vector<1x128xf32> to vector<8x128xf32>
    %491 = arith.mulf %490, %418 : vector<8x128xf32>
    %492 = arith.extf %436 : vector<8x128xbf16> to vector<8x128xf32>
    %493 = vector.broadcast %5 : vector<1x128xf32> to vector<8x128xf32>
    %494 = arith.mulf %493, %492 : vector<8x128xf32>
    %495 = arith.addf %491, %494 : vector<8x128xf32>
    %cst_157 = arith.constant 1.800000e+00 : f32
    %496 = vector.broadcast %cst_157 : f32 to vector<8x128xf32>
    %497 = arith.mulf %496, %495 : vector<8x128xf32>
    %cst_158 = arith.constant 0.00999999977 : f32
    %498 = vector.broadcast %cst_158 : f32 to vector<8x128xf32>
    %499 = arith.addf %498, %497 : vector<8x128xf32>
    %500 = vector.broadcast %3 : vector<1x128xf32> to vector<8x128xf32>
    %501 = arith.mulf %430, %500 : vector<8x128xf32>
    %502 = arith.addf %501, %489 : vector<8x128xf32>
    %503 = arith.extf %436 : vector<8x128xbf16> to vector<8x128xf32>
    %504 = arith.mulf %499, %503 : vector<8x128xf32>
    %cst_159 = arith.constant 1.000000e+00 : f32
    %505 = vector.broadcast %cst_159 : f32 to vector<8x128xf32>
    %506 = arith.mulf %504, %505 : vector<8x128xf32>
    %507 = arith.subf %502, %506 : vector<8x128xf32>
    %508 = arith.subf %507, %499 : vector<8x128xf32>
    %cst_160 = arith.constant 0.000000e+00 : f32
    %509 = vector.broadcast %cst_160 : f32 to vector<8x128xf32>
    %510 = arith.cmpf ogt, %508, %509 : vector<8x128xf32>
    %511 = arith.extui %510 : vector<8x128xi1> to vector<8x128xi32>
    %512 = arith.sitofp %511 : vector<8x128xi32> to vector<8x128xf32>
    %513 = arith.truncf %512 : vector<8x128xf32> to vector<8x128xbf16>
    %cst_161 = arith.constant dense<0.000000e+00> : vector<8x128xf32>
    %514 = tpu.matmul %513, %13, %cst_161 {dimension_numbers = #tpu.dot_dimension_numbers<[1], [0], [0], [1], [0, 0, 1, 1], [], []>} : vector<8x128xbf16>, vector<128x128xbf16>, vector<8x128xf32> -> vector<8x128xf32>
    %cst_162 = arith.constant dense<0.000000e+00> : vector<8x128xf32>
    %515 = tpu.matmul %465, %14, %cst_162 {dimension_numbers = #tpu.dot_dimension_numbers<[1], [0], [0], [1], [0, 0, 1, 1], [], []>} : vector<8x128xbf16>, vector<128x128xbf16>, vector<8x128xf32> -> vector<8x128xf32>
    %516 = arith.addf %514, %515 : vector<8x128xf32>
    %517 = vector.broadcast %9 : vector<1x128xf32> to vector<8x128xf32>
    %518 = arith.addf %516, %517 : vector<8x128xf32>
    %519 = vector.broadcast %7 : vector<1x128xf32> to vector<8x128xf32>
    %520 = arith.mulf %519, %447 : vector<8x128xf32>
    %521 = arith.extf %465 : vector<8x128xbf16> to vector<8x128xf32>
    %522 = vector.broadcast %8 : vector<1x128xf32> to vector<8x128xf32>
    %523 = arith.mulf %522, %521 : vector<8x128xf32>
    %524 = arith.addf %520, %523 : vector<8x128xf32>
    %cst_163 = arith.constant 1.800000e+00 : f32
    %525 = vector.broadcast %cst_163 : f32 to vector<8x128xf32>
    %526 = arith.mulf %525, %524 : vector<8x128xf32>
    %cst_164 = arith.constant 0.00999999977 : f32
    %527 = vector.broadcast %cst_164 : f32 to vector<8x128xf32>
    %528 = arith.addf %527, %526 : vector<8x128xf32>
    %529 = vector.broadcast %6 : vector<1x128xf32> to vector<8x128xf32>
    %530 = arith.mulf %459, %529 : vector<8x128xf32>
    %531 = arith.addf %530, %518 : vector<8x128xf32>
    %532 = arith.extf %465 : vector<8x128xbf16> to vector<8x128xf32>
    %533 = arith.mulf %528, %532 : vector<8x128xf32>
    %cst_165 = arith.constant 1.000000e+00 : f32
    %534 = vector.broadcast %cst_165 : f32 to vector<8x128xf32>
    %535 = arith.mulf %533, %534 : vector<8x128xf32>
    %536 = arith.subf %531, %535 : vector<8x128xf32>
    %537 = arith.subf %536, %528 : vector<8x128xf32>
    %cst_166 = arith.constant 0.000000e+00 : f32
    %538 = vector.broadcast %cst_166 : f32 to vector<8x128xf32>
    %539 = arith.cmpf ogt, %537, %538 : vector<8x128xf32>
    %540 = arith.extui %539 : vector<8x128xi1> to vector<8x128xi32>
    %541 = arith.sitofp %540 : vector<8x128xi32> to vector<8x128xf32>
    %542 = arith.truncf %541 : vector<8x128xf32> to vector<8x128xbf16>
    %543 = vector.broadcast %10 : vector<1x20xf32> to vector<8x20xf32>
    %544 = arith.mulf %471, %543 : vector<8x20xf32>
    %cst_167 = arith.constant dense<0.000000e+00> : vector<8x20xf32>
    %545 = tpu.matmul %542, %15, %cst_167 {dimension_numbers = #tpu.dot_dimension_numbers<[1], [0], [0], [1], [0, 0, 1, 1], [], []>} : vector<8x128xbf16>, vector<128x20xbf16>, vector<8x20xf32> -> vector<8x20xf32>
    %546 = arith.addf %544, %545 : vector<8x20xf32>
    %547 = vector.broadcast %11 : vector<1x20xf32> to vector<8x20xf32>
    %548 = arith.addf %546, %547 : vector<8x20xf32>
    %549 = arith.index_cast %c6_i32 : i32 to index
    %c0_168 = arith.constant 0 : index
    %c0_169 = arith.constant 0 : index
    %550 = vector.load %arg12[%549, %c0_168, %c0_169] : memref<16x8x128xbf16, #tpu.memory_space<vmem>>, vector<1x8x128xbf16>
    %551 = vector.shape_cast %550 : vector<1x8x128xbf16> to vector<8x128xbf16>
    %552 = vector.shape_cast %542 : vector<8x128xbf16> to vector<1x8x128xbf16>
    tpu.vector_store %arg12[%549, %c0_168, %c0_169], %552 {strides = array<i32>} : memref<16x8x128xbf16, #tpu.memory_space<vmem>>, vector<1x8x128xbf16>,
    %553 = arith.truncf %536 : vector<8x128xf32> to vector<8x128xbf16>
    %554 = arith.index_cast %c6_i32 : i32 to index
    %c0_170 = arith.constant 0 : index
    %c0_171 = arith.constant 0 : index
    %555 = vector.load %arg13[%554, %c0_170, %c0_171] : memref<16x8x128xbf16, #tpu.memory_space<vmem>>, vector<1x8x128xbf16>
    %556 = vector.shape_cast %555 : vector<1x8x128xbf16> to vector<8x128xbf16>
    %557 = vector.shape_cast %553 : vector<8x128xbf16> to vector<1x8x128xbf16>
    tpu.vector_store %arg13[%554, %c0_170, %c0_171], %557 {strides = array<i32>} : memref<16x8x128xbf16, #tpu.memory_space<vmem>>, vector<1x8x128xbf16>,
    %558 = arith.index_cast %c6_i32 : i32 to index
    %c0_172 = arith.constant 0 : index
    %c0_173 = arith.constant 0 : index
    %559 = vector.load %arg14[%558, %c0_172, %c0_173] : memref<16x8x20xf32, #tpu.memory_space<vmem>>, vector<1x8x20xf32>
    %560 = vector.shape_cast %559 : vector<1x8x20xf32> to vector<8x20xf32>
    %561 = vector.shape_cast %548 : vector<8x20xf32> to vector<1x8x20xf32>
    tpu.vector_store %arg14[%558, %c0_172, %c0_173], %561 {strides = array<i32>} : memref<16x8x20xf32, #tpu.memory_space<vmem>>, vector<1x8x20xf32>,
    %c7_i32 = arith.constant 7 : i32
    %562 = arith.index_cast %c7_i32 : i32 to index
    %c0_174 = arith.constant 0 : index
    %c0_175 = arith.constant 0 : index
    %563 = vector.load %arg2[%562, %c0_174, %c0_175] : memref<16x8x128xf32, #tpu.memory_space<vmem>>, vector<1x8x128xf32>
    %564 = vector.shape_cast %563 : vector<1x8x128xf32> to vector<8x128xf32>
    %cst_176 = arith.constant dense<0.000000e+00> : vector<8x128xf32>
    %565 = tpu.matmul %513, %12, %cst_176 {dimension_numbers = #tpu.dot_dimension_numbers<[1], [0], [0], [1], [0, 0, 1, 1], [], []>} : vector<8x128xbf16>, vector<128x128xbf16>, vector<8x128xf32> -> vector<8x128xf32>
    %566 = arith.addf %564, %565 : vector<8x128xf32>
    %567 = vector.broadcast %4 : vector<1x128xf32> to vector<8x128xf32>
    %568 = arith.mulf %567, %495 : vector<8x128xf32>
    %569 = arith.extf %513 : vector<8x128xbf16> to vector<8x128xf32>
    %570 = vector.broadcast %5 : vector<1x128xf32> to vector<8x128xf32>
    %571 = arith.mulf %570, %569 : vector<8x128xf32>
    %572 = arith.addf %568, %571 : vector<8x128xf32>
    %cst_177 = arith.constant 1.800000e+00 : f32
    %573 = vector.broadcast %cst_177 : f32 to vector<8x128xf32>
    %574 = arith.mulf %573, %572 : vector<8x128xf32>
    %cst_178 = arith.constant 0.00999999977 : f32
    %575 = vector.broadcast %cst_178 : f32 to vector<8x128xf32>
    %576 = arith.addf %575, %574 : vector<8x128xf32>
    %577 = vector.broadcast %3 : vector<1x128xf32> to vector<8x128xf32>
    %578 = arith.mulf %507, %577 : vector<8x128xf32>
    %579 = arith.addf %578, %566 : vector<8x128xf32>
    %580 = arith.extf %513 : vector<8x128xbf16> to vector<8x128xf32>
    %581 = arith.mulf %576, %580 : vector<8x128xf32>
    %cst_179 = arith.constant 1.000000e+00 : f32
    %582 = vector.broadcast %cst_179 : f32 to vector<8x128xf32>
    %583 = arith.mulf %581, %582 : vector<8x128xf32>
    %584 = arith.subf %579, %583 : vector<8x128xf32>
    %585 = arith.subf %584, %576 : vector<8x128xf32>
    %cst_180 = arith.constant 0.000000e+00 : f32
    %586 = vector.broadcast %cst_180 : f32 to vector<8x128xf32>
    %587 = arith.cmpf ogt, %585, %586 : vector<8x128xf32>
    %588 = arith.extui %587 : vector<8x128xi1> to vector<8x128xi32>
    %589 = arith.sitofp %588 : vector<8x128xi32> to vector<8x128xf32>
    %590 = arith.truncf %589 : vector<8x128xf32> to vector<8x128xbf16>
    %cst_181 = arith.constant dense<0.000000e+00> : vector<8x128xf32>
    %591 = tpu.matmul %590, %13, %cst_181 {dimension_numbers = #tpu.dot_dimension_numbers<[1], [0], [0], [1], [0, 0, 1, 1], [], []>} : vector<8x128xbf16>, vector<128x128xbf16>, vector<8x128xf32> -> vector<8x128xf32>
    %cst_182 = arith.constant dense<0.000000e+00> : vector<8x128xf32>
    %592 = tpu.matmul %542, %14, %cst_182 {dimension_numbers = #tpu.dot_dimension_numbers<[1], [0], [0], [1], [0, 0, 1, 1], [], []>} : vector<8x128xbf16>, vector<128x128xbf16>, vector<8x128xf32> -> vector<8x128xf32>
    %593 = arith.addf %591, %592 : vector<8x128xf32>
    %594 = vector.broadcast %9 : vector<1x128xf32> to vector<8x128xf32>
    %595 = arith.addf %593, %594 : vector<8x128xf32>
    %596 = vector.broadcast %7 : vector<1x128xf32> to vector<8x128xf32>
    %597 = arith.mulf %596, %524 : vector<8x128xf32>
    %598 = arith.extf %542 : vector<8x128xbf16> to vector<8x128xf32>
    %599 = vector.broadcast %8 : vector<1x128xf32> to vector<8x128xf32>
    %600 = arith.mulf %599, %598 : vector<8x128xf32>
    %601 = arith.addf %597, %600 : vector<8x128xf32>
    %cst_183 = arith.constant 1.800000e+00 : f32
    %602 = vector.broadcast %cst_183 : f32 to vector<8x128xf32>
    %603 = arith.mulf %602, %601 : vector<8x128xf32>
    %cst_184 = arith.constant 0.00999999977 : f32
    %604 = vector.broadcast %cst_184 : f32 to vector<8x128xf32>
    %605 = arith.addf %604, %603 : vector<8x128xf32>
    %606 = vector.broadcast %6 : vector<1x128xf32> to vector<8x128xf32>
    %607 = arith.mulf %536, %606 : vector<8x128xf32>
    %608 = arith.addf %607, %595 : vector<8x128xf32>
    %609 = arith.extf %542 : vector<8x128xbf16> to vector<8x128xf32>
    %610 = arith.mulf %605, %609 : vector<8x128xf32>
    %cst_185 = arith.constant 1.000000e+00 : f32
    %611 = vector.broadcast %cst_185 : f32 to vector<8x128xf32>
    %612 = arith.mulf %610, %611 : vector<8x128xf32>
    %613 = arith.subf %608, %612 : vector<8x128xf32>
    %614 = arith.subf %613, %605 : vector<8x128xf32>
    %cst_186 = arith.constant 0.000000e+00 : f32
    %615 = vector.broadcast %cst_186 : f32 to vector<8x128xf32>
    %616 = arith.cmpf ogt, %614, %615 : vector<8x128xf32>
    %617 = arith.extui %616 : vector<8x128xi1> to vector<8x128xi32>
    %618 = arith.sitofp %617 : vector<8x128xi32> to vector<8x128xf32>
    %619 = arith.truncf %618 : vector<8x128xf32> to vector<8x128xbf16>
    %620 = vector.broadcast %10 : vector<1x20xf32> to vector<8x20xf32>
    %621 = arith.mulf %548, %620 : vector<8x20xf32>
    %cst_187 = arith.constant dense<0.000000e+00> : vector<8x20xf32>
    %622 = tpu.matmul %619, %15, %cst_187 {dimension_numbers = #tpu.dot_dimension_numbers<[1], [0], [0], [1], [0, 0, 1, 1], [], []>} : vector<8x128xbf16>, vector<128x20xbf16>, vector<8x20xf32> -> vector<8x20xf32>
    %623 = arith.addf %621, %622 : vector<8x20xf32>
    %624 = vector.broadcast %11 : vector<1x20xf32> to vector<8x20xf32>
    %625 = arith.addf %623, %624 : vector<8x20xf32>
    %626 = arith.index_cast %c7_i32 : i32 to index
    %c0_188 = arith.constant 0 : index
    %c0_189 = arith.constant 0 : index
    %627 = vector.load %arg12[%626, %c0_188, %c0_189] : memref<16x8x128xbf16, #tpu.memory_space<vmem>>, vector<1x8x128xbf16>
    %628 = vector.shape_cast %627 : vector<1x8x128xbf16> to vector<8x128xbf16>
    %629 = vector.shape_cast %619 : vector<8x128xbf16> to vector<1x8x128xbf16>
    tpu.vector_store %arg12[%626, %c0_188, %c0_189], %629 {strides = array<i32>} : memref<16x8x128xbf16, #tpu.memory_space<vmem>>, vector<1x8x128xbf16>,
    %630 = arith.truncf %613 : vector<8x128xf32> to vector<8x128xbf16>
    %631 = arith.index_cast %c7_i32 : i32 to index
    %c0_190 = arith.constant 0 : index
    %c0_191 = arith.constant 0 : index
    %632 = vector.load %arg13[%631, %c0_190, %c0_191] : memref<16x8x128xbf16, #tpu.memory_space<vmem>>, vector<1x8x128xbf16>
    %633 = vector.shape_cast %632 : vector<1x8x128xbf16> to vector<8x128xbf16>
    %634 = vector.shape_cast %630 : vector<8x128xbf16> to vector<1x8x128xbf16>
    tpu.vector_store %arg13[%631, %c0_190, %c0_191], %634 {strides = array<i32>} : memref<16x8x128xbf16, #tpu.memory_space<vmem>>, vector<1x8x128xbf16>,
    %635 = arith.index_cast %c7_i32 : i32 to index
    %c0_192 = arith.constant 0 : index
    %c0_193 = arith.constant 0 : index
    %636 = vector.load %arg14[%635, %c0_192, %c0_193] : memref<16x8x20xf32, #tpu.memory_space<vmem>>, vector<1x8x20xf32>
    %637 = vector.shape_cast %636 : vector<1x8x20xf32> to vector<8x20xf32>
    %638 = vector.shape_cast %625 : vector<8x20xf32> to vector<1x8x20xf32>
    tpu.vector_store %arg14[%635, %c0_192, %c0_193], %638 {strides = array<i32>} : memref<16x8x20xf32, #tpu.memory_space<vmem>>, vector<1x8x20xf32>,
    %c8_i32 = arith.constant 8 : i32
    %639 = arith.index_cast %c8_i32 : i32 to index
    %c0_194 = arith.constant 0 : index
    %c0_195 = arith.constant 0 : index
    %640 = vector.load %arg2[%639, %c0_194, %c0_195] : memref<16x8x128xf32, #tpu.memory_space<vmem>>, vector<1x8x128xf32>
    %641 = vector.shape_cast %640 : vector<1x8x128xf32> to vector<8x128xf32>
    %cst_196 = arith.constant dense<0.000000e+00> : vector<8x128xf32>
    %642 = tpu.matmul %590, %12, %cst_196 {dimension_numbers = #tpu.dot_dimension_numbers<[1], [0], [0], [1], [0, 0, 1, 1], [], []>} : vector<8x128xbf16>, vector<128x128xbf16>, vector<8x128xf32> -> vector<8x128xf32>
    %643 = arith.addf %641, %642 : vector<8x128xf32>
    %644 = vector.broadcast %4 : vector<1x128xf32> to vector<8x128xf32>
    %645 = arith.mulf %644, %572 : vector<8x128xf32>
    %646 = arith.extf %590 : vector<8x128xbf16> to vector<8x128xf32>
    %647 = vector.broadcast %5 : vector<1x128xf32> to vector<8x128xf32>
    %648 = arith.mulf %647, %646 : vector<8x128xf32>
    %649 = arith.addf %645, %648 : vector<8x128xf32>
    %cst_197 = arith.constant 1.800000e+00 : f32
    %650 = vector.broadcast %cst_197 : f32 to vector<8x128xf32>
    %651 = arith.mulf %650, %649 : vector<8x128xf32>
    %cst_198 = arith.constant 0.00999999977 : f32
    %652 = vector.broadcast %cst_198 : f32 to vector<8x128xf32>
    %653 = arith.addf %652, %651 : vector<8x128xf32>
    %654 = vector.broadcast %3 : vector<1x128xf32> to vector<8x128xf32>
    %655 = arith.mulf %584, %654 : vector<8x128xf32>
    %656 = arith.addf %655, %643 : vector<8x128xf32>
    %657 = arith.extf %590 : vector<8x128xbf16> to vector<8x128xf32>
    %658 = arith.mulf %653, %657 : vector<8x128xf32>
    %cst_199 = arith.constant 1.000000e+00 : f32
    %659 = vector.broadcast %cst_199 : f32 to vector<8x128xf32>
    %660 = arith.mulf %658, %659 : vector<8x128xf32>
    %661 = arith.subf %656, %660 : vector<8x128xf32>
    %662 = arith.subf %661, %653 : vector<8x128xf32>
    %cst_200 = arith.constant 0.000000e+00 : f32
    %663 = vector.broadcast %cst_200 : f32 to vector<8x128xf32>
    %664 = arith.cmpf ogt, %662, %663 : vector<8x128xf32>
    %665 = arith.extui %664 : vector<8x128xi1> to vector<8x128xi32>
    %666 = arith.sitofp %665 : vector<8x128xi32> to vector<8x128xf32>
    %667 = arith.truncf %666 : vector<8x128xf32> to vector<8x128xbf16>
    %cst_201 = arith.constant dense<0.000000e+00> : vector<8x128xf32>
    %668 = tpu.matmul %667, %13, %cst_201 {dimension_numbers = #tpu.dot_dimension_numbers<[1], [0], [0], [1], [0, 0, 1, 1], [], []>} : vector<8x128xbf16>, vector<128x128xbf16>, vector<8x128xf32> -> vector<8x128xf32>
    %cst_202 = arith.constant dense<0.000000e+00> : vector<8x128xf32>
    %669 = tpu.matmul %619, %14, %cst_202 {dimension_numbers = #tpu.dot_dimension_numbers<[1], [0], [0], [1], [0, 0, 1, 1], [], []>} : vector<8x128xbf16>, vector<128x128xbf16>, vector<8x128xf32> -> vector<8x128xf32>
    %670 = arith.addf %668, %669 : vector<8x128xf32>
    %671 = vector.broadcast %9 : vector<1x128xf32> to vector<8x128xf32>
    %672 = arith.addf %670, %671 : vector<8x128xf32>
    %673 = vector.broadcast %7 : vector<1x128xf32> to vector<8x128xf32>
    %674 = arith.mulf %673, %601 : vector<8x128xf32>
    %675 = arith.extf %619 : vector<8x128xbf16> to vector<8x128xf32>
    %676 = vector.broadcast %8 : vector<1x128xf32> to vector<8x128xf32>
    %677 = arith.mulf %676, %675 : vector<8x128xf32>
    %678 = arith.addf %674, %677 : vector<8x128xf32>
    %cst_203 = arith.constant 1.800000e+00 : f32
    %679 = vector.broadcast %cst_203 : f32 to vector<8x128xf32>
    %680 = arith.mulf %679, %678 : vector<8x128xf32>
    %cst_204 = arith.constant 0.00999999977 : f32
    %681 = vector.broadcast %cst_204 : f32 to vector<8x128xf32>
    %682 = arith.addf %681, %680 : vector<8x128xf32>
    %683 = vector.broadcast %6 : vector<1x128xf32> to vector<8x128xf32>
    %684 = arith.mulf %613, %683 : vector<8x128xf32>
    %685 = arith.addf %684, %672 : vector<8x128xf32>
    %686 = arith.extf %619 : vector<8x128xbf16> to vector<8x128xf32>
    %687 = arith.mulf %682, %686 : vector<8x128xf32>
    %cst_205 = arith.constant 1.000000e+00 : f32
    %688 = vector.broadcast %cst_205 : f32 to vector<8x128xf32>
    %689 = arith.mulf %687, %688 : vector<8x128xf32>
    %690 = arith.subf %685, %689 : vector<8x128xf32>
    %691 = arith.subf %690, %682 : vector<8x128xf32>
    %cst_206 = arith.constant 0.000000e+00 : f32
    %692 = vector.broadcast %cst_206 : f32 to vector<8x128xf32>
    %693 = arith.cmpf ogt, %691, %692 : vector<8x128xf32>
    %694 = arith.extui %693 : vector<8x128xi1> to vector<8x128xi32>
    %695 = arith.sitofp %694 : vector<8x128xi32> to vector<8x128xf32>
    %696 = arith.truncf %695 : vector<8x128xf32> to vector<8x128xbf16>
    %697 = vector.broadcast %10 : vector<1x20xf32> to vector<8x20xf32>
    %698 = arith.mulf %625, %697 : vector<8x20xf32>
    %cst_207 = arith.constant dense<0.000000e+00> : vector<8x20xf32>
    %699 = tpu.matmul %696, %15, %cst_207 {dimension_numbers = #tpu.dot_dimension_numbers<[1], [0], [0], [1], [0, 0, 1, 1], [], []>} : vector<8x128xbf16>, vector<128x20xbf16>, vector<8x20xf32> -> vector<8x20xf32>
    %700 = arith.addf %698, %699 : vector<8x20xf32>
    %701 = vector.broadcast %11 : vector<1x20xf32> to vector<8x20xf32>
    %702 = arith.addf %700, %701 : vector<8x20xf32>
    %703 = arith.index_cast %c8_i32 : i32 to index
    %c0_208 = arith.constant 0 : index
    %c0_209 = arith.constant 0 : index
    %704 = vector.load %arg12[%703, %c0_208, %c0_209] : memref<16x8x128xbf16, #tpu.memory_space<vmem>>, vector<1x8x128xbf16>
    %705 = vector.shape_cast %704 : vector<1x8x128xbf16> to vector<8x128xbf16>
    %706 = vector.shape_cast %696 : vector<8x128xbf16> to vector<1x8x128xbf16>
    tpu.vector_store %arg12[%703, %c0_208, %c0_209], %706 {strides = array<i32>} : memref<16x8x128xbf16, #tpu.memory_space<vmem>>, vector<1x8x128xbf16>,
    %707 = arith.truncf %690 : vector<8x128xf32> to vector<8x128xbf16>
    %708 = arith.index_cast %c8_i32 : i32 to index
    %c0_210 = arith.constant 0 : index
    %c0_211 = arith.constant 0 : index
    %709 = vector.load %arg13[%708, %c0_210, %c0_211] : memref<16x8x128xbf16, #tpu.memory_space<vmem>>, vector<1x8x128xbf16>
    %710 = vector.shape_cast %709 : vector<1x8x128xbf16> to vector<8x128xbf16>
    %711 = vector.shape_cast %707 : vector<8x128xbf16> to vector<1x8x128xbf16>
    tpu.vector_store %arg13[%708, %c0_210, %c0_211], %711 {strides = array<i32>} : memref<16x8x128xbf16, #tpu.memory_space<vmem>>, vector<1x8x128xbf16>,
    %712 = arith.index_cast %c8_i32 : i32 to index
    %c0_212 = arith.constant 0 : index
    %c0_213 = arith.constant 0 : index
    %713 = vector.load %arg14[%712, %c0_212, %c0_213] : memref<16x8x20xf32, #tpu.memory_space<vmem>>, vector<1x8x20xf32>
    %714 = vector.shape_cast %713 : vector<1x8x20xf32> to vector<8x20xf32>
    %715 = vector.shape_cast %702 : vector<8x20xf32> to vector<1x8x20xf32>
    tpu.vector_store %arg14[%712, %c0_212, %c0_213], %715 {strides = array<i32>} : memref<16x8x20xf32, #tpu.memory_space<vmem>>, vector<1x8x20xf32>,
    %c9_i32 = arith.constant 9 : i32
    %716 = arith.index_cast %c9_i32 : i32 to index
    %c0_214 = arith.constant 0 : index
    %c0_215 = arith.constant 0 : index
    %717 = vector.load %arg2[%716, %c0_214, %c0_215] : memref<16x8x128xf32, #tpu.memory_space<vmem>>, vector<1x8x128xf32>
    %718 = vector.shape_cast %717 : vector<1x8x128xf32> to vector<8x128xf32>
    %cst_216 = arith.constant dense<0.000000e+00> : vector<8x128xf32>
    %719 = tpu.matmul %667, %12, %cst_216 {dimension_numbers = #tpu.dot_dimension_numbers<[1], [0], [0], [1], [0, 0, 1, 1], [], []>} : vector<8x128xbf16>, vector<128x128xbf16>, vector<8x128xf32> -> vector<8x128xf32>
    %720 = arith.addf %718, %719 : vector<8x128xf32>
    %721 = vector.broadcast %4 : vector<1x128xf32> to vector<8x128xf32>
    %722 = arith.mulf %721, %649 : vector<8x128xf32>
    %723 = arith.extf %667 : vector<8x128xbf16> to vector<8x128xf32>
    %724 = vector.broadcast %5 : vector<1x128xf32> to vector<8x128xf32>
    %725 = arith.mulf %724, %723 : vector<8x128xf32>
    %726 = arith.addf %722, %725 : vector<8x128xf32>
    %cst_217 = arith.constant 1.800000e+00 : f32
    %727 = vector.broadcast %cst_217 : f32 to vector<8x128xf32>
    %728 = arith.mulf %727, %726 : vector<8x128xf32>
    %cst_218 = arith.constant 0.00999999977 : f32
    %729 = vector.broadcast %cst_218 : f32 to vector<8x128xf32>
    %730 = arith.addf %729, %728 : vector<8x128xf32>
    %731 = vector.broadcast %3 : vector<1x128xf32> to vector<8x128xf32>
    %732 = arith.mulf %661, %731 : vector<8x128xf32>
    %733 = arith.addf %732, %720 : vector<8x128xf32>
    %734 = arith.extf %667 : vector<8x128xbf16> to vector<8x128xf32>
    %735 = arith.mulf %730, %734 : vector<8x128xf32>
    %cst_219 = arith.constant 1.000000e+00 : f32
    %736 = vector.broadcast %cst_219 : f32 to vector<8x128xf32>
    %737 = arith.mulf %735, %736 : vector<8x128xf32>
    %738 = arith.subf %733, %737 : vector<8x128xf32>
    %739 = arith.subf %738, %730 : vector<8x128xf32>
    %cst_220 = arith.constant 0.000000e+00 : f32
    %740 = vector.broadcast %cst_220 : f32 to vector<8x128xf32>
    %741 = arith.cmpf ogt, %739, %740 : vector<8x128xf32>
    %742 = arith.extui %741 : vector<8x128xi1> to vector<8x128xi32>
    %743 = arith.sitofp %742 : vector<8x128xi32> to vector<8x128xf32>
    %744 = arith.truncf %743 : vector<8x128xf32> to vector<8x128xbf16>
    %cst_221 = arith.constant dense<0.000000e+00> : vector<8x128xf32>
    %745 = tpu.matmul %744, %13, %cst_221 {dimension_numbers = #tpu.dot_dimension_numbers<[1], [0], [0], [1], [0, 0, 1, 1], [], []>} : vector<8x128xbf16>, vector<128x128xbf16>, vector<8x128xf32> -> vector<8x128xf32>
    %cst_222 = arith.constant dense<0.000000e+00> : vector<8x128xf32>
    %746 = tpu.matmul %696, %14, %cst_222 {dimension_numbers = #tpu.dot_dimension_numbers<[1], [0], [0], [1], [0, 0, 1, 1], [], []>} : vector<8x128xbf16>, vector<128x128xbf16>, vector<8x128xf32> -> vector<8x128xf32>
    %747 = arith.addf %745, %746 : vector<8x128xf32>
    %748 = vector.broadcast %9 : vector<1x128xf32> to vector<8x128xf32>
    %749 = arith.addf %747, %748 : vector<8x128xf32>
    %750 = vector.broadcast %7 : vector<1x128xf32> to vector<8x128xf32>
    %751 = arith.mulf %750, %678 : vector<8x128xf32>
    %752 = arith.extf %696 : vector<8x128xbf16> to vector<8x128xf32>
    %753 = vector.broadcast %8 : vector<1x128xf32> to vector<8x128xf32>
    %754 = arith.mulf %753, %752 : vector<8x128xf32>
    %755 = arith.addf %751, %754 : vector<8x128xf32>
    %cst_223 = arith.constant 1.800000e+00 : f32
    %756 = vector.broadcast %cst_223 : f32 to vector<8x128xf32>
    %757 = arith.mulf %756, %755 : vector<8x128xf32>
    %cst_224 = arith.constant 0.00999999977 : f32
    %758 = vector.broadcast %cst_224 : f32 to vector<8x128xf32>
    %759 = arith.addf %758, %757 : vector<8x128xf32>
    %760 = vector.broadcast %6 : vector<1x128xf32> to vector<8x128xf32>
    %761 = arith.mulf %690, %760 : vector<8x128xf32>
    %762 = arith.addf %761, %749 : vector<8x128xf32>
    %763 = arith.extf %696 : vector<8x128xbf16> to vector<8x128xf32>
    %764 = arith.mulf %759, %763 : vector<8x128xf32>
    %cst_225 = arith.constant 1.000000e+00 : f32
    %765 = vector.broadcast %cst_225 : f32 to vector<8x128xf32>
    %766 = arith.mulf %764, %765 : vector<8x128xf32>
    %767 = arith.subf %762, %766 : vector<8x128xf32>
    %768 = arith.subf %767, %759 : vector<8x128xf32>
    %cst_226 = arith.constant 0.000000e+00 : f32
    %769 = vector.broadcast %cst_226 : f32 to vector<8x128xf32>
    %770 = arith.cmpf ogt, %768, %769 : vector<8x128xf32>
    %771 = arith.extui %770 : vector<8x128xi1> to vector<8x128xi32>
    %772 = arith.sitofp %771 : vector<8x128xi32> to vector<8x128xf32>
    %773 = arith.truncf %772 : vector<8x128xf32> to vector<8x128xbf16>
    %774 = vector.broadcast %10 : vector<1x20xf32> to vector<8x20xf32>
    %775 = arith.mulf %702, %774 : vector<8x20xf32>
    %cst_227 = arith.constant dense<0.000000e+00> : vector<8x20xf32>
    %776 = tpu.matmul %773, %15, %cst_227 {dimension_numbers = #tpu.dot_dimension_numbers<[1], [0], [0], [1], [0, 0, 1, 1], [], []>} : vector<8x128xbf16>, vector<128x20xbf16>, vector<8x20xf32> -> vector<8x20xf32>
    %777 = arith.addf %775, %776 : vector<8x20xf32>
    %778 = vector.broadcast %11 : vector<1x20xf32> to vector<8x20xf32>
    %779 = arith.addf %777, %778 : vector<8x20xf32>
    %780 = arith.index_cast %c9_i32 : i32 to index
    %c0_228 = arith.constant 0 : index
    %c0_229 = arith.constant 0 : index
    %781 = vector.load %arg12[%780, %c0_228, %c0_229] : memref<16x8x128xbf16, #tpu.memory_space<vmem>>, vector<1x8x128xbf16>
    %782 = vector.shape_cast %781 : vector<1x8x128xbf16> to vector<8x128xbf16>
    %783 = vector.shape_cast %773 : vector<8x128xbf16> to vector<1x8x128xbf16>
    tpu.vector_store %arg12[%780, %c0_228, %c0_229], %783 {strides = array<i32>} : memref<16x8x128xbf16, #tpu.memory_space<vmem>>, vector<1x8x128xbf16>,
    %784 = arith.truncf %767 : vector<8x128xf32> to vector<8x128xbf16>
    %785 = arith.index_cast %c9_i32 : i32 to index
    %c0_230 = arith.constant 0 : index
    %c0_231 = arith.constant 0 : index
    %786 = vector.load %arg13[%785, %c0_230, %c0_231] : memref<16x8x128xbf16, #tpu.memory_space<vmem>>, vector<1x8x128xbf16>
    %787 = vector.shape_cast %786 : vector<1x8x128xbf16> to vector<8x128xbf16>
    %788 = vector.shape_cast %784 : vector<8x128xbf16> to vector<1x8x128xbf16>
    tpu.vector_store %arg13[%785, %c0_230, %c0_231], %788 {strides = array<i32>} : memref<16x8x128xbf16, #tpu.memory_space<vmem>>, vector<1x8x128xbf16>,
    %789 = arith.index_cast %c9_i32 : i32 to index
    %c0_232 = arith.constant 0 : index
    %c0_233 = arith.constant 0 : index
    %790 = vector.load %arg14[%789, %c0_232, %c0_233] : memref<16x8x20xf32, #tpu.memory_space<vmem>>, vector<1x8x20xf32>
    %791 = vector.shape_cast %790 : vector<1x8x20xf32> to vector<8x20xf32>
    %792 = vector.shape_cast %779 : vector<8x20xf32> to vector<1x8x20xf32>
    tpu.vector_store %arg14[%789, %c0_232, %c0_233], %792 {strides = array<i32>} : memref<16x8x20xf32, #tpu.memory_space<vmem>>, vector<1x8x20xf32>,
    %c10_i32 = arith.constant 10 : i32
    %793 = arith.index_cast %c10_i32 : i32 to index
    %c0_234 = arith.constant 0 : index
    %c0_235 = arith.constant 0 : index
    %794 = vector.load %arg2[%793, %c0_234, %c0_235] : memref<16x8x128xf32, #tpu.memory_space<vmem>>, vector<1x8x128xf32>
    %795 = vector.shape_cast %794 : vector<1x8x128xf32> to vector<8x128xf32>
    %cst_236 = arith.constant dense<0.000000e+00> : vector<8x128xf32>
    %796 = tpu.matmul %744, %12, %cst_236 {dimension_numbers = #tpu.dot_dimension_numbers<[1], [0], [0], [1], [0, 0, 1, 1], [], []>} : vector<8x128xbf16>, vector<128x128xbf16>, vector<8x128xf32> -> vector<8x128xf32>
    %797 = arith.addf %795, %796 : vector<8x128xf32>
    %798 = vector.broadcast %4 : vector<1x128xf32> to vector<8x128xf32>
    %799 = arith.mulf %798, %726 : vector<8x128xf32>
    %800 = arith.extf %744 : vector<8x128xbf16> to vector<8x128xf32>
    %801 = vector.broadcast %5 : vector<1x128xf32> to vector<8x128xf32>
    %802 = arith.mulf %801, %800 : vector<8x128xf32>
    %803 = arith.addf %799, %802 : vector<8x128xf32>
    %cst_237 = arith.constant 1.800000e+00 : f32
    %804 = vector.broadcast %cst_237 : f32 to vector<8x128xf32>
    %805 = arith.mulf %804, %803 : vector<8x128xf32>
    %cst_238 = arith.constant 0.00999999977 : f32
    %806 = vector.broadcast %cst_238 : f32 to vector<8x128xf32>
    %807 = arith.addf %806, %805 : vector<8x128xf32>
    %808 = vector.broadcast %3 : vector<1x128xf32> to vector<8x128xf32>
    %809 = arith.mulf %738, %808 : vector<8x128xf32>
    %810 = arith.addf %809, %797 : vector<8x128xf32>
    %811 = arith.extf %744 : vector<8x128xbf16> to vector<8x128xf32>
    %812 = arith.mulf %807, %811 : vector<8x128xf32>
    %cst_239 = arith.constant 1.000000e+00 : f32
    %813 = vector.broadcast %cst_239 : f32 to vector<8x128xf32>
    %814 = arith.mulf %812, %813 : vector<8x128xf32>
    %815 = arith.subf %810, %814 : vector<8x128xf32>
    %816 = arith.subf %815, %807 : vector<8x128xf32>
    %cst_240 = arith.constant 0.000000e+00 : f32
    %817 = vector.broadcast %cst_240 : f32 to vector<8x128xf32>
    %818 = arith.cmpf ogt, %816, %817 : vector<8x128xf32>
    %819 = arith.extui %818 : vector<8x128xi1> to vector<8x128xi32>
    %820 = arith.sitofp %819 : vector<8x128xi32> to vector<8x128xf32>
    %821 = arith.truncf %820 : vector<8x128xf32> to vector<8x128xbf16>
    %cst_241 = arith.constant dense<0.000000e+00> : vector<8x128xf32>
    %822 = tpu.matmul %821, %13, %cst_241 {dimension_numbers = #tpu.dot_dimension_numbers<[1], [0], [0], [1], [0, 0, 1, 1], [], []>} : vector<8x128xbf16>, vector<128x128xbf16>, vector<8x128xf32> -> vector<8x128xf32>
    %cst_242 = arith.constant dense<0.000000e+00> : vector<8x128xf32>
    %823 = tpu.matmul %773, %14, %cst_242 {dimension_numbers = #tpu.dot_dimension_numbers<[1], [0], [0], [1], [0, 0, 1, 1], [], []>} : vector<8x128xbf16>, vector<128x128xbf16>, vector<8x128xf32> -> vector<8x128xf32>
    %824 = arith.addf %822, %823 : vector<8x128xf32>
    %825 = vector.broadcast %9 : vector<1x128xf32> to vector<8x128xf32>
    %826 = arith.addf %824, %825 : vector<8x128xf32>
    %827 = vector.broadcast %7 : vector<1x128xf32> to vector<8x128xf32>
    %828 = arith.mulf %827, %755 : vector<8x128xf32>
    %829 = arith.extf %773 : vector<8x128xbf16> to vector<8x128xf32>
    %830 = vector.broadcast %8 : vector<1x128xf32> to vector<8x128xf32>
    %831 = arith.mulf %830, %829 : vector<8x128xf32>
    %832 = arith.addf %828, %831 : vector<8x128xf32>
    %cst_243 = arith.constant 1.800000e+00 : f32
    %833 = vector.broadcast %cst_243 : f32 to vector<8x128xf32>
    %834 = arith.mulf %833, %832 : vector<8x128xf32>
    %cst_244 = arith.constant 0.00999999977 : f32
    %835 = vector.broadcast %cst_244 : f32 to vector<8x128xf32>
    %836 = arith.addf %835, %834 : vector<8x128xf32>
    %837 = vector.broadcast %6 : vector<1x128xf32> to vector<8x128xf32>
    %838 = arith.mulf %767, %837 : vector<8x128xf32>
    %839 = arith.addf %838, %826 : vector<8x128xf32>
    %840 = arith.extf %773 : vector<8x128xbf16> to vector<8x128xf32>
    %841 = arith.mulf %836, %840 : vector<8x128xf32>
    %cst_245 = arith.constant 1.000000e+00 : f32
    %842 = vector.broadcast %cst_245 : f32 to vector<8x128xf32>
    %843 = arith.mulf %841, %842 : vector<8x128xf32>
    %844 = arith.subf %839, %843 : vector<8x128xf32>
    %845 = arith.subf %844, %836 : vector<8x128xf32>
    %cst_246 = arith.constant 0.000000e+00 : f32
    %846 = vector.broadcast %cst_246 : f32 to vector<8x128xf32>
    %847 = arith.cmpf ogt, %845, %846 : vector<8x128xf32>
    %848 = arith.extui %847 : vector<8x128xi1> to vector<8x128xi32>
    %849 = arith.sitofp %848 : vector<8x128xi32> to vector<8x128xf32>
    %850 = arith.truncf %849 : vector<8x128xf32> to vector<8x128xbf16>
    %851 = vector.broadcast %10 : vector<1x20xf32> to vector<8x20xf32>
    %852 = arith.mulf %779, %851 : vector<8x20xf32>
    %cst_247 = arith.constant dense<0.000000e+00> : vector<8x20xf32>
    %853 = tpu.matmul %850, %15, %cst_247 {dimension_numbers = #tpu.dot_dimension_numbers<[1], [0], [0], [1], [0, 0, 1, 1], [], []>} : vector<8x128xbf16>, vector<128x20xbf16>, vector<8x20xf32> -> vector<8x20xf32>
    %854 = arith.addf %852, %853 : vector<8x20xf32>
    %855 = vector.broadcast %11 : vector<1x20xf32> to vector<8x20xf32>
    %856 = arith.addf %854, %855 : vector<8x20xf32>
    %857 = arith.index_cast %c10_i32 : i32 to index
    %c0_248 = arith.constant 0 : index
    %c0_249 = arith.constant 0 : index
    %858 = vector.load %arg12[%857, %c0_248, %c0_249] : memref<16x8x128xbf16, #tpu.memory_space<vmem>>, vector<1x8x128xbf16>
    %859 = vector.shape_cast %858 : vector<1x8x128xbf16> to vector<8x128xbf16>
    %860 = vector.shape_cast %850 : vector<8x128xbf16> to vector<1x8x128xbf16>
    tpu.vector_store %arg12[%857, %c0_248, %c0_249], %860 {strides = array<i32>} : memref<16x8x128xbf16, #tpu.memory_space<vmem>>, vector<1x8x128xbf16>,
    %861 = arith.truncf %844 : vector<8x128xf32> to vector<8x128xbf16>
    %862 = arith.index_cast %c10_i32 : i32 to index
    %c0_250 = arith.constant 0 : index
    %c0_251 = arith.constant 0 : index
    %863 = vector.load %arg13[%862, %c0_250, %c0_251] : memref<16x8x128xbf16, #tpu.memory_space<vmem>>, vector<1x8x128xbf16>
    %864 = vector.shape_cast %863 : vector<1x8x128xbf16> to vector<8x128xbf16>
    %865 = vector.shape_cast %861 : vector<8x128xbf16> to vector<1x8x128xbf16>
    tpu.vector_store %arg13[%862, %c0_250, %c0_251], %865 {strides = array<i32>} : memref<16x8x128xbf16, #tpu.memory_space<vmem>>, vector<1x8x128xbf16>,
    %866 = arith.index_cast %c10_i32 : i32 to index
    %c0_252 = arith.constant 0 : index
    %c0_253 = arith.constant 0 : index
    %867 = vector.load %arg14[%866, %c0_252, %c0_253] : memref<16x8x20xf32, #tpu.memory_space<vmem>>, vector<1x8x20xf32>
    %868 = vector.shape_cast %867 : vector<1x8x20xf32> to vector<8x20xf32>
    %869 = vector.shape_cast %856 : vector<8x20xf32> to vector<1x8x20xf32>
    tpu.vector_store %arg14[%866, %c0_252, %c0_253], %869 {strides = array<i32>} : memref<16x8x20xf32, #tpu.memory_space<vmem>>, vector<1x8x20xf32>,
    %c11_i32 = arith.constant 11 : i32
    %870 = arith.index_cast %c11_i32 : i32 to index
    %c0_254 = arith.constant 0 : index
    %c0_255 = arith.constant 0 : index
    %871 = vector.load %arg2[%870, %c0_254, %c0_255] : memref<16x8x128xf32, #tpu.memory_space<vmem>>, vector<1x8x128xf32>
    %872 = vector.shape_cast %871 : vector<1x8x128xf32> to vector<8x128xf32>
    %cst_256 = arith.constant dense<0.000000e+00> : vector<8x128xf32>
    %873 = tpu.matmul %821, %12, %cst_256 {dimension_numbers = #tpu.dot_dimension_numbers<[1], [0], [0], [1], [0, 0, 1, 1], [], []>} : vector<8x128xbf16>, vector<128x128xbf16>, vector<8x128xf32> -> vector<8x128xf32>
    %874 = arith.addf %872, %873 : vector<8x128xf32>
    %875 = vector.broadcast %4 : vector<1x128xf32> to vector<8x128xf32>
    %876 = arith.mulf %875, %803 : vector<8x128xf32>
    %877 = arith.extf %821 : vector<8x128xbf16> to vector<8x128xf32>
    %878 = vector.broadcast %5 : vector<1x128xf32> to vector<8x128xf32>
    %879 = arith.mulf %878, %877 : vector<8x128xf32>
    %880 = arith.addf %876, %879 : vector<8x128xf32>
    %cst_257 = arith.constant 1.800000e+00 : f32
    %881 = vector.broadcast %cst_257 : f32 to vector<8x128xf32>
    %882 = arith.mulf %881, %880 : vector<8x128xf32>
    %cst_258 = arith.constant 0.00999999977 : f32
    %883 = vector.broadcast %cst_258 : f32 to vector<8x128xf32>
    %884 = arith.addf %883, %882 : vector<8x128xf32>
    %885 = vector.broadcast %3 : vector<1x128xf32> to vector<8x128xf32>
    %886 = arith.mulf %815, %885 : vector<8x128xf32>
    %887 = arith.addf %886, %874 : vector<8x128xf32>
    %888 = arith.extf %821 : vector<8x128xbf16> to vector<8x128xf32>
    %889 = arith.mulf %884, %888 : vector<8x128xf32>
    %cst_259 = arith.constant 1.000000e+00 : f32
    %890 = vector.broadcast %cst_259 : f32 to vector<8x128xf32>
    %891 = arith.mulf %889, %890 : vector<8x128xf32>
    %892 = arith.subf %887, %891 : vector<8x128xf32>
    %893 = arith.subf %892, %884 : vector<8x128xf32>
    %cst_260 = arith.constant 0.000000e+00 : f32
    %894 = vector.broadcast %cst_260 : f32 to vector<8x128xf32>
    %895 = arith.cmpf ogt, %893, %894 : vector<8x128xf32>
    %896 = arith.extui %895 : vector<8x128xi1> to vector<8x128xi32>
    %897 = arith.sitofp %896 : vector<8x128xi32> to vector<8x128xf32>
    %898 = arith.truncf %897 : vector<8x128xf32> to vector<8x128xbf16>
    %cst_261 = arith.constant dense<0.000000e+00> : vector<8x128xf32>
    %899 = tpu.matmul %898, %13, %cst_261 {dimension_numbers = #tpu.dot_dimension_numbers<[1], [0], [0], [1], [0, 0, 1, 1], [], []>} : vector<8x128xbf16>, vector<128x128xbf16>, vector<8x128xf32> -> vector<8x128xf32>
    %cst_262 = arith.constant dense<0.000000e+00> : vector<8x128xf32>
    %900 = tpu.matmul %850, %14, %cst_262 {dimension_numbers = #tpu.dot_dimension_numbers<[1], [0], [0], [1], [0, 0, 1, 1], [], []>} : vector<8x128xbf16>, vector<128x128xbf16>, vector<8x128xf32> -> vector<8x128xf32>
    %901 = arith.addf %899, %900 : vector<8x128xf32>
    %902 = vector.broadcast %9 : vector<1x128xf32> to vector<8x128xf32>
    %903 = arith.addf %901, %902 : vector<8x128xf32>
    %904 = vector.broadcast %7 : vector<1x128xf32> to vector<8x128xf32>
    %905 = arith.mulf %904, %832 : vector<8x128xf32>
    %906 = arith.extf %850 : vector<8x128xbf16> to vector<8x128xf32>
    %907 = vector.broadcast %8 : vector<1x128xf32> to vector<8x128xf32>
    %908 = arith.mulf %907, %906 : vector<8x128xf32>
    %909 = arith.addf %905, %908 : vector<8x128xf32>
    %cst_263 = arith.constant 1.800000e+00 : f32
    %910 = vector.broadcast %cst_263 : f32 to vector<8x128xf32>
    %911 = arith.mulf %910, %909 : vector<8x128xf32>
    %cst_264 = arith.constant 0.00999999977 : f32
    %912 = vector.broadcast %cst_264 : f32 to vector<8x128xf32>
    %913 = arith.addf %912, %911 : vector<8x128xf32>
    %914 = vector.broadcast %6 : vector<1x128xf32> to vector<8x128xf32>
    %915 = arith.mulf %844, %914 : vector<8x128xf32>
    %916 = arith.addf %915, %903 : vector<8x128xf32>
    %917 = arith.extf %850 : vector<8x128xbf16> to vector<8x128xf32>
    %918 = arith.mulf %913, %917 : vector<8x128xf32>
    %cst_265 = arith.constant 1.000000e+00 : f32
    %919 = vector.broadcast %cst_265 : f32 to vector<8x128xf32>
    %920 = arith.mulf %918, %919 : vector<8x128xf32>
    %921 = arith.subf %916, %920 : vector<8x128xf32>
    %922 = arith.subf %921, %913 : vector<8x128xf32>
    %cst_266 = arith.constant 0.000000e+00 : f32
    %923 = vector.broadcast %cst_266 : f32 to vector<8x128xf32>
    %924 = arith.cmpf ogt, %922, %923 : vector<8x128xf32>
    %925 = arith.extui %924 : vector<8x128xi1> to vector<8x128xi32>
    %926 = arith.sitofp %925 : vector<8x128xi32> to vector<8x128xf32>
    %927 = arith.truncf %926 : vector<8x128xf32> to vector<8x128xbf16>
    %928 = vector.broadcast %10 : vector<1x20xf32> to vector<8x20xf32>
    %929 = arith.mulf %856, %928 : vector<8x20xf32>
    %cst_267 = arith.constant dense<0.000000e+00> : vector<8x20xf32>
    %930 = tpu.matmul %927, %15, %cst_267 {dimension_numbers = #tpu.dot_dimension_numbers<[1], [0], [0], [1], [0, 0, 1, 1], [], []>} : vector<8x128xbf16>, vector<128x20xbf16>, vector<8x20xf32> -> vector<8x20xf32>
    %931 = arith.addf %929, %930 : vector<8x20xf32>
    %932 = vector.broadcast %11 : vector<1x20xf32> to vector<8x20xf32>
    %933 = arith.addf %931, %932 : vector<8x20xf32>
    %934 = arith.index_cast %c11_i32 : i32 to index
    %c0_268 = arith.constant 0 : index
    %c0_269 = arith.constant 0 : index
    %935 = vector.load %arg12[%934, %c0_268, %c0_269] : memref<16x8x128xbf16, #tpu.memory_space<vmem>>, vector<1x8x128xbf16>
    %936 = vector.shape_cast %935 : vector<1x8x128xbf16> to vector<8x128xbf16>
    %937 = vector.shape_cast %927 : vector<8x128xbf16> to vector<1x8x128xbf16>
    tpu.vector_store %arg12[%934, %c0_268, %c0_269], %937 {strides = array<i32>} : memref<16x8x128xbf16, #tpu.memory_space<vmem>>, vector<1x8x128xbf16>,
    %938 = arith.truncf %921 : vector<8x128xf32> to vector<8x128xbf16>
    %939 = arith.index_cast %c11_i32 : i32 to index
    %c0_270 = arith.constant 0 : index
    %c0_271 = arith.constant 0 : index
    %940 = vector.load %arg13[%939, %c0_270, %c0_271] : memref<16x8x128xbf16, #tpu.memory_space<vmem>>, vector<1x8x128xbf16>
    %941 = vector.shape_cast %940 : vector<1x8x128xbf16> to vector<8x128xbf16>
    %942 = vector.shape_cast %938 : vector<8x128xbf16> to vector<1x8x128xbf16>
    tpu.vector_store %arg13[%939, %c0_270, %c0_271], %942 {strides = array<i32>} : memref<16x8x128xbf16, #tpu.memory_space<vmem>>, vector<1x8x128xbf16>,
    %943 = arith.index_cast %c11_i32 : i32 to index
    %c0_272 = arith.constant 0 : index
    %c0_273 = arith.constant 0 : index
    %944 = vector.load %arg14[%943, %c0_272, %c0_273] : memref<16x8x20xf32, #tpu.memory_space<vmem>>, vector<1x8x20xf32>
    %945 = vector.shape_cast %944 : vector<1x8x20xf32> to vector<8x20xf32>
    %946 = vector.shape_cast %933 : vector<8x20xf32> to vector<1x8x20xf32>
    tpu.vector_store %arg14[%943, %c0_272, %c0_273], %946 {strides = array<i32>} : memref<16x8x20xf32, #tpu.memory_space<vmem>>, vector<1x8x20xf32>,
    %c12_i32 = arith.constant 12 : i32
    %947 = arith.index_cast %c12_i32 : i32 to index
    %c0_274 = arith.constant 0 : index
    %c0_275 = arith.constant 0 : index
    %948 = vector.load %arg2[%947, %c0_274, %c0_275] : memref<16x8x128xf32, #tpu.memory_space<vmem>>, vector<1x8x128xf32>
    %949 = vector.shape_cast %948 : vector<1x8x128xf32> to vector<8x128xf32>
    %cst_276 = arith.constant dense<0.000000e+00> : vector<8x128xf32>
    %950 = tpu.matmul %898, %12, %cst_276 {dimension_numbers = #tpu.dot_dimension_numbers<[1], [0], [0], [1], [0, 0, 1, 1], [], []>} : vector<8x128xbf16>, vector<128x128xbf16>, vector<8x128xf32> -> vector<8x128xf32>
    %951 = arith.addf %949, %950 : vector<8x128xf32>
    %952 = vector.broadcast %4 : vector<1x128xf32> to vector<8x128xf32>
    %953 = arith.mulf %952, %880 : vector<8x128xf32>
    %954 = arith.extf %898 : vector<8x128xbf16> to vector<8x128xf32>
    %955 = vector.broadcast %5 : vector<1x128xf32> to vector<8x128xf32>
    %956 = arith.mulf %955, %954 : vector<8x128xf32>
    %957 = arith.addf %953, %956 : vector<8x128xf32>
    %cst_277 = arith.constant 1.800000e+00 : f32
    %958 = vector.broadcast %cst_277 : f32 to vector<8x128xf32>
    %959 = arith.mulf %958, %957 : vector<8x128xf32>
    %cst_278 = arith.constant 0.00999999977 : f32
    %960 = vector.broadcast %cst_278 : f32 to vector<8x128xf32>
    %961 = arith.addf %960, %959 : vector<8x128xf32>
    %962 = vector.broadcast %3 : vector<1x128xf32> to vector<8x128xf32>
    %963 = arith.mulf %892, %962 : vector<8x128xf32>
    %964 = arith.addf %963, %951 : vector<8x128xf32>
    %965 = arith.extf %898 : vector<8x128xbf16> to vector<8x128xf32>
    %966 = arith.mulf %961, %965 : vector<8x128xf32>
    %cst_279 = arith.constant 1.000000e+00 : f32
    %967 = vector.broadcast %cst_279 : f32 to vector<8x128xf32>
    %968 = arith.mulf %966, %967 : vector<8x128xf32>
    %969 = arith.subf %964, %968 : vector<8x128xf32>
    %970 = arith.subf %969, %961 : vector<8x128xf32>
    %cst_280 = arith.constant 0.000000e+00 : f32
    %971 = vector.broadcast %cst_280 : f32 to vector<8x128xf32>
    %972 = arith.cmpf ogt, %970, %971 : vector<8x128xf32>
    %973 = arith.extui %972 : vector<8x128xi1> to vector<8x128xi32>
    %974 = arith.sitofp %973 : vector<8x128xi32> to vector<8x128xf32>
    %975 = arith.truncf %974 : vector<8x128xf32> to vector<8x128xbf16>
    %cst_281 = arith.constant dense<0.000000e+00> : vector<8x128xf32>
    %976 = tpu.matmul %975, %13, %cst_281 {dimension_numbers = #tpu.dot_dimension_numbers<[1], [0], [0], [1], [0, 0, 1, 1], [], []>} : vector<8x128xbf16>, vector<128x128xbf16>, vector<8x128xf32> -> vector<8x128xf32>
    %cst_282 = arith.constant dense<0.000000e+00> : vector<8x128xf32>
    %977 = tpu.matmul %927, %14, %cst_282 {dimension_numbers = #tpu.dot_dimension_numbers<[1], [0], [0], [1], [0, 0, 1, 1], [], []>} : vector<8x128xbf16>, vector<128x128xbf16>, vector<8x128xf32> -> vector<8x128xf32>
    %978 = arith.addf %976, %977 : vector<8x128xf32>
    %979 = vector.broadcast %9 : vector<1x128xf32> to vector<8x128xf32>
    %980 = arith.addf %978, %979 : vector<8x128xf32>
    %981 = vector.broadcast %7 : vector<1x128xf32> to vector<8x128xf32>
    %982 = arith.mulf %981, %909 : vector<8x128xf32>
    %983 = arith.extf %927 : vector<8x128xbf16> to vector<8x128xf32>
    %984 = vector.broadcast %8 : vector<1x128xf32> to vector<8x128xf32>
    %985 = arith.mulf %984, %983 : vector<8x128xf32>
    %986 = arith.addf %982, %985 : vector<8x128xf32>
    %cst_283 = arith.constant 1.800000e+00 : f32
    %987 = vector.broadcast %cst_283 : f32 to vector<8x128xf32>
    %988 = arith.mulf %987, %986 : vector<8x128xf32>
    %cst_284 = arith.constant 0.00999999977 : f32
    %989 = vector.broadcast %cst_284 : f32 to vector<8x128xf32>
    %990 = arith.addf %989, %988 : vector<8x128xf32>
    %991 = vector.broadcast %6 : vector<1x128xf32> to vector<8x128xf32>
    %992 = arith.mulf %921, %991 : vector<8x128xf32>
    %993 = arith.addf %992, %980 : vector<8x128xf32>
    %994 = arith.extf %927 : vector<8x128xbf16> to vector<8x128xf32>
    %995 = arith.mulf %990, %994 : vector<8x128xf32>
    %cst_285 = arith.constant 1.000000e+00 : f32
    %996 = vector.broadcast %cst_285 : f32 to vector<8x128xf32>
    %997 = arith.mulf %995, %996 : vector<8x128xf32>
    %998 = arith.subf %993, %997 : vector<8x128xf32>
    %999 = arith.subf %998, %990 : vector<8x128xf32>
    %cst_286 = arith.constant 0.000000e+00 : f32
    %1000 = vector.broadcast %cst_286 : f32 to vector<8x128xf32>
    %1001 = arith.cmpf ogt, %999, %1000 : vector<8x128xf32>
    %1002 = arith.extui %1001 : vector<8x128xi1> to vector<8x128xi32>
    %1003 = arith.sitofp %1002 : vector<8x128xi32> to vector<8x128xf32>
    %1004 = arith.truncf %1003 : vector<8x128xf32> to vector<8x128xbf16>
    %1005 = vector.broadcast %10 : vector<1x20xf32> to vector<8x20xf32>
    %1006 = arith.mulf %933, %1005 : vector<8x20xf32>
    %cst_287 = arith.constant dense<0.000000e+00> : vector<8x20xf32>
    %1007 = tpu.matmul %1004, %15, %cst_287 {dimension_numbers = #tpu.dot_dimension_numbers<[1], [0], [0], [1], [0, 0, 1, 1], [], []>} : vector<8x128xbf16>, vector<128x20xbf16>, vector<8x20xf32> -> vector<8x20xf32>
    %1008 = arith.addf %1006, %1007 : vector<8x20xf32>
    %1009 = vector.broadcast %11 : vector<1x20xf32> to vector<8x20xf32>
    %1010 = arith.addf %1008, %1009 : vector<8x20xf32>
    %1011 = arith.index_cast %c12_i32 : i32 to index
    %c0_288 = arith.constant 0 : index
    %c0_289 = arith.constant 0 : index
    %1012 = vector.load %arg12[%1011, %c0_288, %c0_289] : memref<16x8x128xbf16, #tpu.memory_space<vmem>>, vector<1x8x128xbf16>
    %1013 = vector.shape_cast %1012 : vector<1x8x128xbf16> to vector<8x128xbf16>
    %1014 = vector.shape_cast %1004 : vector<8x128xbf16> to vector<1x8x128xbf16>
    tpu.vector_store %arg12[%1011, %c0_288, %c0_289], %1014 {strides = array<i32>} : memref<16x8x128xbf16, #tpu.memory_space<vmem>>, vector<1x8x128xbf16>,
    %1015 = arith.truncf %998 : vector<8x128xf32> to vector<8x128xbf16>
    %1016 = arith.index_cast %c12_i32 : i32 to index
    %c0_290 = arith.constant 0 : index
    %c0_291 = arith.constant 0 : index
    %1017 = vector.load %arg13[%1016, %c0_290, %c0_291] : memref<16x8x128xbf16, #tpu.memory_space<vmem>>, vector<1x8x128xbf16>
    %1018 = vector.shape_cast %1017 : vector<1x8x128xbf16> to vector<8x128xbf16>
    %1019 = vector.shape_cast %1015 : vector<8x128xbf16> to vector<1x8x128xbf16>
    tpu.vector_store %arg13[%1016, %c0_290, %c0_291], %1019 {strides = array<i32>} : memref<16x8x128xbf16, #tpu.memory_space<vmem>>, vector<1x8x128xbf16>,
    %1020 = arith.index_cast %c12_i32 : i32 to index
    %c0_292 = arith.constant 0 : index
    %c0_293 = arith.constant 0 : index
    %1021 = vector.load %arg14[%1020, %c0_292, %c0_293] : memref<16x8x20xf32, #tpu.memory_space<vmem>>, vector<1x8x20xf32>
    %1022 = vector.shape_cast %1021 : vector<1x8x20xf32> to vector<8x20xf32>
    %1023 = vector.shape_cast %1010 : vector<8x20xf32> to vector<1x8x20xf32>
    tpu.vector_store %arg14[%1020, %c0_292, %c0_293], %1023 {strides = array<i32>} : memref<16x8x20xf32, #tpu.memory_space<vmem>>, vector<1x8x20xf32>,
    %c13_i32 = arith.constant 13 : i32
    %1024 = arith.index_cast %c13_i32 : i32 to index
    %c0_294 = arith.constant 0 : index
    %c0_295 = arith.constant 0 : index
    %1025 = vector.load %arg2[%1024, %c0_294, %c0_295] : memref<16x8x128xf32, #tpu.memory_space<vmem>>, vector<1x8x128xf32>
    %1026 = vector.shape_cast %1025 : vector<1x8x128xf32> to vector<8x128xf32>
    %cst_296 = arith.constant dense<0.000000e+00> : vector<8x128xf32>
    %1027 = tpu.matmul %975, %12, %cst_296 {dimension_numbers = #tpu.dot_dimension_numbers<[1], [0], [0], [1], [0, 0, 1, 1], [], []>} : vector<8x128xbf16>, vector<128x128xbf16>, vector<8x128xf32> -> vector<8x128xf32>
    %1028 = arith.addf %1026, %1027 : vector<8x128xf32>
    %1029 = vector.broadcast %4 : vector<1x128xf32> to vector<8x128xf32>
    %1030 = arith.mulf %1029, %957 : vector<8x128xf32>
    %1031 = arith.extf %975 : vector<8x128xbf16> to vector<8x128xf32>
    %1032 = vector.broadcast %5 : vector<1x128xf32> to vector<8x128xf32>
    %1033 = arith.mulf %1032, %1031 : vector<8x128xf32>
    %1034 = arith.addf %1030, %1033 : vector<8x128xf32>
    %cst_297 = arith.constant 1.800000e+00 : f32
    %1035 = vector.broadcast %cst_297 : f32 to vector<8x128xf32>
    %1036 = arith.mulf %1035, %1034 : vector<8x128xf32>
    %cst_298 = arith.constant 0.00999999977 : f32
    %1037 = vector.broadcast %cst_298 : f32 to vector<8x128xf32>
    %1038 = arith.addf %1037, %1036 : vector<8x128xf32>
    %1039 = vector.broadcast %3 : vector<1x128xf32> to vector<8x128xf32>
    %1040 = arith.mulf %969, %1039 : vector<8x128xf32>
    %1041 = arith.addf %1040, %1028 : vector<8x128xf32>
    %1042 = arith.extf %975 : vector<8x128xbf16> to vector<8x128xf32>
    %1043 = arith.mulf %1038, %1042 : vector<8x128xf32>
    %cst_299 = arith.constant 1.000000e+00 : f32
    %1044 = vector.broadcast %cst_299 : f32 to vector<8x128xf32>
    %1045 = arith.mulf %1043, %1044 : vector<8x128xf32>
    %1046 = arith.subf %1041, %1045 : vector<8x128xf32>
    %1047 = arith.subf %1046, %1038 : vector<8x128xf32>
    %cst_300 = arith.constant 0.000000e+00 : f32
    %1048 = vector.broadcast %cst_300 : f32 to vector<8x128xf32>
    %1049 = arith.cmpf ogt, %1047, %1048 : vector<8x128xf32>
    %1050 = arith.extui %1049 : vector<8x128xi1> to vector<8x128xi32>
    %1051 = arith.sitofp %1050 : vector<8x128xi32> to vector<8x128xf32>
    %1052 = arith.truncf %1051 : vector<8x128xf32> to vector<8x128xbf16>
    %cst_301 = arith.constant dense<0.000000e+00> : vector<8x128xf32>
    %1053 = tpu.matmul %1052, %13, %cst_301 {dimension_numbers = #tpu.dot_dimension_numbers<[1], [0], [0], [1], [0, 0, 1, 1], [], []>} : vector<8x128xbf16>, vector<128x128xbf16>, vector<8x128xf32> -> vector<8x128xf32>
    %cst_302 = arith.constant dense<0.000000e+00> : vector<8x128xf32>
    %1054 = tpu.matmul %1004, %14, %cst_302 {dimension_numbers = #tpu.dot_dimension_numbers<[1], [0], [0], [1], [0, 0, 1, 1], [], []>} : vector<8x128xbf16>, vector<128x128xbf16>, vector<8x128xf32> -> vector<8x128xf32>
    %1055 = arith.addf %1053, %1054 : vector<8x128xf32>
    %1056 = vector.broadcast %9 : vector<1x128xf32> to vector<8x128xf32>
    %1057 = arith.addf %1055, %1056 : vector<8x128xf32>
    %1058 = vector.broadcast %7 : vector<1x128xf32> to vector<8x128xf32>
    %1059 = arith.mulf %1058, %986 : vector<8x128xf32>
    %1060 = arith.extf %1004 : vector<8x128xbf16> to vector<8x128xf32>
    %1061 = vector.broadcast %8 : vector<1x128xf32> to vector<8x128xf32>
    %1062 = arith.mulf %1061, %1060 : vector<8x128xf32>
    %1063 = arith.addf %1059, %1062 : vector<8x128xf32>
    %cst_303 = arith.constant 1.800000e+00 : f32
    %1064 = vector.broadcast %cst_303 : f32 to vector<8x128xf32>
    %1065 = arith.mulf %1064, %1063 : vector<8x128xf32>
    %cst_304 = arith.constant 0.00999999977 : f32
    %1066 = vector.broadcast %cst_304 : f32 to vector<8x128xf32>
    %1067 = arith.addf %1066, %1065 : vector<8x128xf32>
    %1068 = vector.broadcast %6 : vector<1x128xf32> to vector<8x128xf32>
    %1069 = arith.mulf %998, %1068 : vector<8x128xf32>
    %1070 = arith.addf %1069, %1057 : vector<8x128xf32>
    %1071 = arith.extf %1004 : vector<8x128xbf16> to vector<8x128xf32>
    %1072 = arith.mulf %1067, %1071 : vector<8x128xf32>
    %cst_305 = arith.constant 1.000000e+00 : f32
    %1073 = vector.broadcast %cst_305 : f32 to vector<8x128xf32>
    %1074 = arith.mulf %1072, %1073 : vector<8x128xf32>
    %1075 = arith.subf %1070, %1074 : vector<8x128xf32>
    %1076 = arith.subf %1075, %1067 : vector<8x128xf32>
    %cst_306 = arith.constant 0.000000e+00 : f32
    %1077 = vector.broadcast %cst_306 : f32 to vector<8x128xf32>
    %1078 = arith.cmpf ogt, %1076, %1077 : vector<8x128xf32>
    %1079 = arith.extui %1078 : vector<8x128xi1> to vector<8x128xi32>
    %1080 = arith.sitofp %1079 : vector<8x128xi32> to vector<8x128xf32>
    %1081 = arith.truncf %1080 : vector<8x128xf32> to vector<8x128xbf16>
    %1082 = vector.broadcast %10 : vector<1x20xf32> to vector<8x20xf32>
    %1083 = arith.mulf %1010, %1082 : vector<8x20xf32>
    %cst_307 = arith.constant dense<0.000000e+00> : vector<8x20xf32>
    %1084 = tpu.matmul %1081, %15, %cst_307 {dimension_numbers = #tpu.dot_dimension_numbers<[1], [0], [0], [1], [0, 0, 1, 1], [], []>} : vector<8x128xbf16>, vector<128x20xbf16>, vector<8x20xf32> -> vector<8x20xf32>
    %1085 = arith.addf %1083, %1084 : vector<8x20xf32>
    %1086 = vector.broadcast %11 : vector<1x20xf32> to vector<8x20xf32>
    %1087 = arith.addf %1085, %1086 : vector<8x20xf32>
    %1088 = arith.index_cast %c13_i32 : i32 to index
    %c0_308 = arith.constant 0 : index
    %c0_309 = arith.constant 0 : index
    %1089 = vector.load %arg12[%1088, %c0_308, %c0_309] : memref<16x8x128xbf16, #tpu.memory_space<vmem>>, vector<1x8x128xbf16>
    %1090 = vector.shape_cast %1089 : vector<1x8x128xbf16> to vector<8x128xbf16>
    %1091 = vector.shape_cast %1081 : vector<8x128xbf16> to vector<1x8x128xbf16>
    tpu.vector_store %arg12[%1088, %c0_308, %c0_309], %1091 {strides = array<i32>} : memref<16x8x128xbf16, #tpu.memory_space<vmem>>, vector<1x8x128xbf16>,
    %1092 = arith.truncf %1075 : vector<8x128xf32> to vector<8x128xbf16>
    %1093 = arith.index_cast %c13_i32 : i32 to index
    %c0_310 = arith.constant 0 : index
    %c0_311 = arith.constant 0 : index
    %1094 = vector.load %arg13[%1093, %c0_310, %c0_311] : memref<16x8x128xbf16, #tpu.memory_space<vmem>>, vector<1x8x128xbf16>
    %1095 = vector.shape_cast %1094 : vector<1x8x128xbf16> to vector<8x128xbf16>
    %1096 = vector.shape_cast %1092 : vector<8x128xbf16> to vector<1x8x128xbf16>
    tpu.vector_store %arg13[%1093, %c0_310, %c0_311], %1096 {strides = array<i32>} : memref<16x8x128xbf16, #tpu.memory_space<vmem>>, vector<1x8x128xbf16>,
    %1097 = arith.index_cast %c13_i32 : i32 to index
    %c0_312 = arith.constant 0 : index
    %c0_313 = arith.constant 0 : index
    %1098 = vector.load %arg14[%1097, %c0_312, %c0_313] : memref<16x8x20xf32, #tpu.memory_space<vmem>>, vector<1x8x20xf32>
    %1099 = vector.shape_cast %1098 : vector<1x8x20xf32> to vector<8x20xf32>
    %1100 = vector.shape_cast %1087 : vector<8x20xf32> to vector<1x8x20xf32>
    tpu.vector_store %arg14[%1097, %c0_312, %c0_313], %1100 {strides = array<i32>} : memref<16x8x20xf32, #tpu.memory_space<vmem>>, vector<1x8x20xf32>,
    %c14_i32 = arith.constant 14 : i32
    %1101 = arith.index_cast %c14_i32 : i32 to index
    %c0_314 = arith.constant 0 : index
    %c0_315 = arith.constant 0 : index
    %1102 = vector.load %arg2[%1101, %c0_314, %c0_315] : memref<16x8x128xf32, #tpu.memory_space<vmem>>, vector<1x8x128xf32>
    %1103 = vector.shape_cast %1102 : vector<1x8x128xf32> to vector<8x128xf32>
    %cst_316 = arith.constant dense<0.000000e+00> : vector<8x128xf32>
    %1104 = tpu.matmul %1052, %12, %cst_316 {dimension_numbers = #tpu.dot_dimension_numbers<[1], [0], [0], [1], [0, 0, 1, 1], [], []>} : vector<8x128xbf16>, vector<128x128xbf16>, vector<8x128xf32> -> vector<8x128xf32>
    %1105 = arith.addf %1103, %1104 : vector<8x128xf32>
    %1106 = vector.broadcast %4 : vector<1x128xf32> to vector<8x128xf32>
    %1107 = arith.mulf %1106, %1034 : vector<8x128xf32>
    %1108 = arith.extf %1052 : vector<8x128xbf16> to vector<8x128xf32>
    %1109 = vector.broadcast %5 : vector<1x128xf32> to vector<8x128xf32>
    %1110 = arith.mulf %1109, %1108 : vector<8x128xf32>
    %1111 = arith.addf %1107, %1110 : vector<8x128xf32>
    %cst_317 = arith.constant 1.800000e+00 : f32
    %1112 = vector.broadcast %cst_317 : f32 to vector<8x128xf32>
    %1113 = arith.mulf %1112, %1111 : vector<8x128xf32>
    %cst_318 = arith.constant 0.00999999977 : f32
    %1114 = vector.broadcast %cst_318 : f32 to vector<8x128xf32>
    %1115 = arith.addf %1114, %1113 : vector<8x128xf32>
    %1116 = vector.broadcast %3 : vector<1x128xf32> to vector<8x128xf32>
    %1117 = arith.mulf %1046, %1116 : vector<8x128xf32>
    %1118 = arith.addf %1117, %1105 : vector<8x128xf32>
    %1119 = arith.extf %1052 : vector<8x128xbf16> to vector<8x128xf32>
    %1120 = arith.mulf %1115, %1119 : vector<8x128xf32>
    %cst_319 = arith.constant 1.000000e+00 : f32
    %1121 = vector.broadcast %cst_319 : f32 to vector<8x128xf32>
    %1122 = arith.mulf %1120, %1121 : vector<8x128xf32>
    %1123 = arith.subf %1118, %1122 : vector<8x128xf32>
    %1124 = arith.subf %1123, %1115 : vector<8x128xf32>
    %cst_320 = arith.constant 0.000000e+00 : f32
    %1125 = vector.broadcast %cst_320 : f32 to vector<8x128xf32>
    %1126 = arith.cmpf ogt, %1124, %1125 : vector<8x128xf32>
    %1127 = arith.extui %1126 : vector<8x128xi1> to vector<8x128xi32>
    %1128 = arith.sitofp %1127 : vector<8x128xi32> to vector<8x128xf32>
    %1129 = arith.truncf %1128 : vector<8x128xf32> to vector<8x128xbf16>
    %cst_321 = arith.constant dense<0.000000e+00> : vector<8x128xf32>
    %1130 = tpu.matmul %1129, %13, %cst_321 {dimension_numbers = #tpu.dot_dimension_numbers<[1], [0], [0], [1], [0, 0, 1, 1], [], []>} : vector<8x128xbf16>, vector<128x128xbf16>, vector<8x128xf32> -> vector<8x128xf32>
    %cst_322 = arith.constant dense<0.000000e+00> : vector<8x128xf32>
    %1131 = tpu.matmul %1081, %14, %cst_322 {dimension_numbers = #tpu.dot_dimension_numbers<[1], [0], [0], [1], [0, 0, 1, 1], [], []>} : vector<8x128xbf16>, vector<128x128xbf16>, vector<8x128xf32> -> vector<8x128xf32>
    %1132 = arith.addf %1130, %1131 : vector<8x128xf32>
    %1133 = vector.broadcast %9 : vector<1x128xf32> to vector<8x128xf32>
    %1134 = arith.addf %1132, %1133 : vector<8x128xf32>
    %1135 = vector.broadcast %7 : vector<1x128xf32> to vector<8x128xf32>
    %1136 = arith.mulf %1135, %1063 : vector<8x128xf32>
    %1137 = arith.extf %1081 : vector<8x128xbf16> to vector<8x128xf32>
    %1138 = vector.broadcast %8 : vector<1x128xf32> to vector<8x128xf32>
    %1139 = arith.mulf %1138, %1137 : vector<8x128xf32>
    %1140 = arith.addf %1136, %1139 : vector<8x128xf32>
    %cst_323 = arith.constant 1.800000e+00 : f32
    %1141 = vector.broadcast %cst_323 : f32 to vector<8x128xf32>
    %1142 = arith.mulf %1141, %1140 : vector<8x128xf32>
    %cst_324 = arith.constant 0.00999999977 : f32
    %1143 = vector.broadcast %cst_324 : f32 to vector<8x128xf32>
    %1144 = arith.addf %1143, %1142 : vector<8x128xf32>
    %1145 = vector.broadcast %6 : vector<1x128xf32> to vector<8x128xf32>
    %1146 = arith.mulf %1075, %1145 : vector<8x128xf32>
    %1147 = arith.addf %1146, %1134 : vector<8x128xf32>
    %1148 = arith.extf %1081 : vector<8x128xbf16> to vector<8x128xf32>
    %1149 = arith.mulf %1144, %1148 : vector<8x128xf32>
    %cst_325 = arith.constant 1.000000e+00 : f32
    %1150 = vector.broadcast %cst_325 : f32 to vector<8x128xf32>
    %1151 = arith.mulf %1149, %1150 : vector<8x128xf32>
    %1152 = arith.subf %1147, %1151 : vector<8x128xf32>
    %1153 = arith.subf %1152, %1144 : vector<8x128xf32>
    %cst_326 = arith.constant 0.000000e+00 : f32
    %1154 = vector.broadcast %cst_326 : f32 to vector<8x128xf32>
    %1155 = arith.cmpf ogt, %1153, %1154 : vector<8x128xf32>
    %1156 = arith.extui %1155 : vector<8x128xi1> to vector<8x128xi32>
    %1157 = arith.sitofp %1156 : vector<8x128xi32> to vector<8x128xf32>
    %1158 = arith.truncf %1157 : vector<8x128xf32> to vector<8x128xbf16>
    %1159 = vector.broadcast %10 : vector<1x20xf32> to vector<8x20xf32>
    %1160 = arith.mulf %1087, %1159 : vector<8x20xf32>
    %cst_327 = arith.constant dense<0.000000e+00> : vector<8x20xf32>
    %1161 = tpu.matmul %1158, %15, %cst_327 {dimension_numbers = #tpu.dot_dimension_numbers<[1], [0], [0], [1], [0, 0, 1, 1], [], []>} : vector<8x128xbf16>, vector<128x20xbf16>, vector<8x20xf32> -> vector<8x20xf32>
    %1162 = arith.addf %1160, %1161 : vector<8x20xf32>
    %1163 = vector.broadcast %11 : vector<1x20xf32> to vector<8x20xf32>
    %1164 = arith.addf %1162, %1163 : vector<8x20xf32>
    %1165 = arith.index_cast %c14_i32 : i32 to index
    %c0_328 = arith.constant 0 : index
    %c0_329 = arith.constant 0 : index
    %1166 = vector.load %arg12[%1165, %c0_328, %c0_329] : memref<16x8x128xbf16, #tpu.memory_space<vmem>>, vector<1x8x128xbf16>
    %1167 = vector.shape_cast %1166 : vector<1x8x128xbf16> to vector<8x128xbf16>
    %1168 = vector.shape_cast %1158 : vector<8x128xbf16> to vector<1x8x128xbf16>
    tpu.vector_store %arg12[%1165, %c0_328, %c0_329], %1168 {strides = array<i32>} : memref<16x8x128xbf16, #tpu.memory_space<vmem>>, vector<1x8x128xbf16>,
    %1169 = arith.truncf %1152 : vector<8x128xf32> to vector<8x128xbf16>
    %1170 = arith.index_cast %c14_i32 : i32 to index
    %c0_330 = arith.constant 0 : index
    %c0_331 = arith.constant 0 : index
    %1171 = vector.load %arg13[%1170, %c0_330, %c0_331] : memref<16x8x128xbf16, #tpu.memory_space<vmem>>, vector<1x8x128xbf16>
    %1172 = vector.shape_cast %1171 : vector<1x8x128xbf16> to vector<8x128xbf16>
    %1173 = vector.shape_cast %1169 : vector<8x128xbf16> to vector<1x8x128xbf16>
    tpu.vector_store %arg13[%1170, %c0_330, %c0_331], %1173 {strides = array<i32>} : memref<16x8x128xbf16, #tpu.memory_space<vmem>>, vector<1x8x128xbf16>,
    %1174 = arith.index_cast %c14_i32 : i32 to index
    %c0_332 = arith.constant 0 : index
    %c0_333 = arith.constant 0 : index
    %1175 = vector.load %arg14[%1174, %c0_332, %c0_333] : memref<16x8x20xf32, #tpu.memory_space<vmem>>, vector<1x8x20xf32>
    %1176 = vector.shape_cast %1175 : vector<1x8x20xf32> to vector<8x20xf32>
    %1177 = vector.shape_cast %1164 : vector<8x20xf32> to vector<1x8x20xf32>
    tpu.vector_store %arg14[%1174, %c0_332, %c0_333], %1177 {strides = array<i32>} : memref<16x8x20xf32, #tpu.memory_space<vmem>>, vector<1x8x20xf32>,
    %c15_i32 = arith.constant 15 : i32
    %1178 = arith.index_cast %c15_i32 : i32 to index
    %c0_334 = arith.constant 0 : index
    %c0_335 = arith.constant 0 : index
    %1179 = vector.load %arg2[%1178, %c0_334, %c0_335] : memref<16x8x128xf32, #tpu.memory_space<vmem>>, vector<1x8x128xf32>
    %1180 = vector.shape_cast %1179 : vector<1x8x128xf32> to vector<8x128xf32>
    %cst_336 = arith.constant dense<0.000000e+00> : vector<8x128xf32>
    %1181 = tpu.matmul %1129, %12, %cst_336 {dimension_numbers = #tpu.dot_dimension_numbers<[1], [0], [0], [1], [0, 0, 1, 1], [], []>} : vector<8x128xbf16>, vector<128x128xbf16>, vector<8x128xf32> -> vector<8x128xf32>
    %1182 = arith.addf %1180, %1181 : vector<8x128xf32>
    %1183 = vector.broadcast %4 : vector<1x128xf32> to vector<8x128xf32>
    %1184 = arith.mulf %1183, %1111 : vector<8x128xf32>
    %1185 = arith.extf %1129 : vector<8x128xbf16> to vector<8x128xf32>
    %1186 = vector.broadcast %5 : vector<1x128xf32> to vector<8x128xf32>
    %1187 = arith.mulf %1186, %1185 : vector<8x128xf32>
    %1188 = arith.addf %1184, %1187 : vector<8x128xf32>
    %cst_337 = arith.constant 1.800000e+00 : f32
    %1189 = vector.broadcast %cst_337 : f32 to vector<8x128xf32>
    %1190 = arith.mulf %1189, %1188 : vector<8x128xf32>
    %cst_338 = arith.constant 0.00999999977 : f32
    %1191 = vector.broadcast %cst_338 : f32 to vector<8x128xf32>
    %1192 = arith.addf %1191, %1190 : vector<8x128xf32>
    %1193 = vector.broadcast %3 : vector<1x128xf32> to vector<8x128xf32>
    %1194 = arith.mulf %1123, %1193 : vector<8x128xf32>
    %1195 = arith.addf %1194, %1182 : vector<8x128xf32>
    %1196 = arith.extf %1129 : vector<8x128xbf16> to vector<8x128xf32>
    %1197 = arith.mulf %1192, %1196 : vector<8x128xf32>
    %cst_339 = arith.constant 1.000000e+00 : f32
    %1198 = vector.broadcast %cst_339 : f32 to vector<8x128xf32>
    %1199 = arith.mulf %1197, %1198 : vector<8x128xf32>
    %1200 = arith.subf %1195, %1199 : vector<8x128xf32>
    %1201 = arith.subf %1200, %1192 : vector<8x128xf32>
    %cst_340 = arith.constant 0.000000e+00 : f32
    %1202 = vector.broadcast %cst_340 : f32 to vector<8x128xf32>
    %1203 = arith.cmpf ogt, %1201, %1202 : vector<8x128xf32>
    %1204 = arith.extui %1203 : vector<8x128xi1> to vector<8x128xi32>
    %1205 = arith.sitofp %1204 : vector<8x128xi32> to vector<8x128xf32>
    %1206 = arith.truncf %1205 : vector<8x128xf32> to vector<8x128xbf16>
    %cst_341 = arith.constant dense<0.000000e+00> : vector<8x128xf32>
    %1207 = tpu.matmul %1206, %13, %cst_341 {dimension_numbers = #tpu.dot_dimension_numbers<[1], [0], [0], [1], [0, 0, 1, 1], [], []>} : vector<8x128xbf16>, vector<128x128xbf16>, vector<8x128xf32> -> vector<8x128xf32>
    %cst_342 = arith.constant dense<0.000000e+00> : vector<8x128xf32>
    %1208 = tpu.matmul %1158, %14, %cst_342 {dimension_numbers = #tpu.dot_dimension_numbers<[1], [0], [0], [1], [0, 0, 1, 1], [], []>} : vector<8x128xbf16>, vector<128x128xbf16>, vector<8x128xf32> -> vector<8x128xf32>
    %1209 = arith.addf %1207, %1208 : vector<8x128xf32>
    %1210 = vector.broadcast %9 : vector<1x128xf32> to vector<8x128xf32>
    %1211 = arith.addf %1209, %1210 : vector<8x128xf32>
    %1212 = vector.broadcast %7 : vector<1x128xf32> to vector<8x128xf32>
    %1213 = arith.mulf %1212, %1140 : vector<8x128xf32>
    %1214 = arith.extf %1158 : vector<8x128xbf16> to vector<8x128xf32>
    %1215 = vector.broadcast %8 : vector<1x128xf32> to vector<8x128xf32>
    %1216 = arith.mulf %1215, %1214 : vector<8x128xf32>
    %1217 = arith.addf %1213, %1216 : vector<8x128xf32>
    %cst_343 = arith.constant 1.800000e+00 : f32
    %1218 = vector.broadcast %cst_343 : f32 to vector<8x128xf32>
    %1219 = arith.mulf %1218, %1217 : vector<8x128xf32>
    %cst_344 = arith.constant 0.00999999977 : f32
    %1220 = vector.broadcast %cst_344 : f32 to vector<8x128xf32>
    %1221 = arith.addf %1220, %1219 : vector<8x128xf32>
    %1222 = vector.broadcast %6 : vector<1x128xf32> to vector<8x128xf32>
    %1223 = arith.mulf %1152, %1222 : vector<8x128xf32>
    %1224 = arith.addf %1223, %1211 : vector<8x128xf32>
    %1225 = arith.extf %1158 : vector<8x128xbf16> to vector<8x128xf32>
    %1226 = arith.mulf %1221, %1225 : vector<8x128xf32>
    %cst_345 = arith.constant 1.000000e+00 : f32
    %1227 = vector.broadcast %cst_345 : f32 to vector<8x128xf32>
    %1228 = arith.mulf %1226, %1227 : vector<8x128xf32>
    %1229 = arith.subf %1224, %1228 : vector<8x128xf32>
    %1230 = arith.subf %1229, %1221 : vector<8x128xf32>
    %cst_346 = arith.constant 0.000000e+00 : f32
    %1231 = vector.broadcast %cst_346 : f32 to vector<8x128xf32>
    %1232 = arith.cmpf ogt, %1230, %1231 : vector<8x128xf32>
    %1233 = arith.extui %1232 : vector<8x128xi1> to vector<8x128xi32>
    %1234 = arith.sitofp %1233 : vector<8x128xi32> to vector<8x128xf32>
    %1235 = arith.truncf %1234 : vector<8x128xf32> to vector<8x128xbf16>
    %1236 = vector.broadcast %10 : vector<1x20xf32> to vector<8x20xf32>
    %1237 = arith.mulf %1164, %1236 : vector<8x20xf32>
    %cst_347 = arith.constant dense<0.000000e+00> : vector<8x20xf32>
    %1238 = tpu.matmul %1235, %15, %cst_347 {dimension_numbers = #tpu.dot_dimension_numbers<[1], [0], [0], [1], [0, 0, 1, 1], [], []>} : vector<8x128xbf16>, vector<128x20xbf16>, vector<8x20xf32> -> vector<8x20xf32>
    %1239 = arith.addf %1237, %1238 : vector<8x20xf32>
    %1240 = vector.broadcast %11 : vector<1x20xf32> to vector<8x20xf32>
    %1241 = arith.addf %1239, %1240 : vector<8x20xf32>
    %1242 = arith.index_cast %c15_i32 : i32 to index
    %c0_348 = arith.constant 0 : index
    %c0_349 = arith.constant 0 : index
    %1243 = vector.load %arg12[%1242, %c0_348, %c0_349] : memref<16x8x128xbf16, #tpu.memory_space<vmem>>, vector<1x8x128xbf16>
    %1244 = vector.shape_cast %1243 : vector<1x8x128xbf16> to vector<8x128xbf16>
    %1245 = vector.shape_cast %1235 : vector<8x128xbf16> to vector<1x8x128xbf16>
    tpu.vector_store %arg12[%1242, %c0_348, %c0_349], %1245 {strides = array<i32>} : memref<16x8x128xbf16, #tpu.memory_space<vmem>>, vector<1x8x128xbf16>,
    %1246 = arith.truncf %1229 : vector<8x128xf32> to vector<8x128xbf16>
    %1247 = arith.index_cast %c15_i32 : i32 to index
    %c0_350 = arith.constant 0 : index
    %c0_351 = arith.constant 0 : index
    %1248 = vector.load %arg13[%1247, %c0_350, %c0_351] : memref<16x8x128xbf16, #tpu.memory_space<vmem>>, vector<1x8x128xbf16>
    %1249 = vector.shape_cast %1248 : vector<1x8x128xbf16> to vector<8x128xbf16>
    %1250 = vector.shape_cast %1246 : vector<8x128xbf16> to vector<1x8x128xbf16>
    tpu.vector_store %arg13[%1247, %c0_350, %c0_351], %1250 {strides = array<i32>} : memref<16x8x128xbf16, #tpu.memory_space<vmem>>, vector<1x8x128xbf16>,
    %1251 = arith.index_cast %c15_i32 : i32 to index
    %c0_352 = arith.constant 0 : index
    %c0_353 = arith.constant 0 : index
    %1252 = vector.load %arg14[%1251, %c0_352, %c0_353] : memref<16x8x20xf32, #tpu.memory_space<vmem>>, vector<1x8x20xf32>
    %1253 = vector.shape_cast %1252 : vector<1x8x20xf32> to vector<8x20xf32>
    %1254 = vector.shape_cast %1241 : vector<8x20xf32> to vector<1x8x20xf32>
    tpu.vector_store %arg14[%1251, %c0_352, %c0_353], %1254 {strides = array<i32>} : memref<16x8x20xf32, #tpu.memory_space<vmem>>, vector<1x8x20xf32>,
    %c16_i32 = arith.constant 16 : i32
    %c0_354 = arith.constant 0 : index
    %c0_355 = arith.constant 0 : index
    %1255 = vector.load %arg15[%c0_354, %c0_355] : memref<8x128xf32, #tpu.memory_space<vmem>>, vector<8x128xf32>
    tpu.vector_store %arg15[%c0_354, %c0_355], %1200 {strides = array<i32>} : memref<8x128xf32, #tpu.memory_space<vmem>>, vector<8x128xf32>,
    %c0_356 = arith.constant 0 : index
    %c0_357 = arith.constant 0 : index
    %1256 = vector.load %arg16[%c0_356, %c0_357] : memref<8x128xbf16, #tpu.memory_space<vmem>>, vector<8x128xbf16>
    tpu.vector_store %arg16[%c0_356, %c0_357], %1206 {strides = array<i32>} : memref<8x128xbf16, #tpu.memory_space<vmem>>, vector<8x128xbf16>,
    %c0_358 = arith.constant 0 : index
    %c0_359 = arith.constant 0 : index
    %1257 = vector.load %arg17[%c0_358, %c0_359] : memref<8x128xf32, #tpu.memory_space<vmem>>, vector<8x128xf32>
    tpu.vector_store %arg17[%c0_358, %c0_359], %1229 {strides = array<i32>} : memref<8x128xf32, #tpu.memory_space<vmem>>, vector<8x128xf32>,
    %c0_360 = arith.constant 0 : index
    %c0_361 = arith.constant 0 : index
    %1258 = vector.load %arg18[%c0_360, %c0_361] : memref<8x128xbf16, #tpu.memory_space<vmem>>, vector<8x128xbf16>
    tpu.vector_store %arg18[%c0_360, %c0_361], %1235 {strides = array<i32>} : memref<8x128xbf16, #tpu.memory_space<vmem>>, vector<8x128xbf16>,
    %c0_362 = arith.constant 0 : index
    %c0_363 = arith.constant 0 : index
    %1259 = vector.load %arg19[%c0_362, %c0_363] : memref<8x20xf32, #tpu.memory_space<vmem>>, vector<8x20xf32>
    tpu.vector_store %arg19[%c0_362, %c0_363], %1241 {strides = array<i32>} : memref<8x20xf32, #tpu.memory_space<vmem>>, vector<8x20xf32>,
    %c0_364 = arith.constant 0 : index
    %c0_365 = arith.constant 0 : index
    %1260 = vector.load %arg20[%c0_364, %c0_365] : memref<8x128xf32, #tpu.memory_space<vmem>>, vector<8x128xf32>
    tpu.vector_store %arg20[%c0_364, %c0_365], %1188 {strides = array<i32>} : memref<8x128xf32, #tpu.memory_space<vmem>>, vector<8x128xf32>,
    %c0_366 = arith.constant 0 : index
    %c0_367 = arith.constant 0 : index
    %1261 = vector.load %arg21[%c0_366, %c0_367] : memref<8x128xf32, #tpu.memory_space<vmem>>, vector<8x128xf32>
    tpu.vector_store %arg21[%c0_366, %c0_367], %1217 {strides = array<i32>} : memref<8x128xf32, #tpu.memory_space<vmem>>, vector<8x128xf32>,
    return
  }
  func.func @transform_0(%arg0: i32, %arg1: i32) -> (i32, i32, i32) {
    %c0_i32 = arith.constant 0 : i32
    %c0_i32_0 = arith.constant 0 : i32
    return %arg1, %arg0, %c0_i32 : i32, i32, i32
  }
  func.func @transform_1(%arg0: i32, %arg1: i32) -> (i32, i32) {
    %c0_i32 = arith.constant 0 : i32
    %c0_i32_0 = arith.constant 0 : i32
    %c0_i32_1 = arith.constant 0 : i32
    return %c0_i32, %c0_i32_0 : i32, i32
  }
  func.func @transform_2(%arg0: i32, %arg1: i32) -> (i32, i32) {
    %c0_i32 = arith.constant 0 : i32
    %c0_i32_0 = arith.constant 0 : i32
    %c0_i32_1 = arith.constant 0 : i32
    return %c0_i32, %c0_i32_0 : i32, i32
  }
  func.func @transform_3(%arg0: i32, %arg1: i32) -> (i32, i32) {
    %c0_i32 = arith.constant 0 : i32
    %c0_i32_0 = arith.constant 0 : i32
    %c0_i32_1 = arith.constant 0 : i32
    return %c0_i32, %c0_i32_0 : i32, i32
  }
  func.func @transform_4(%arg0: i32, %arg1: i32) -> (i32, i32) {
    %c0_i32 = arith.constant 0 : i32
    %c0_i32_0 = arith.constant 0 : i32
    %c0_i32_1 = arith.constant 0 : i32
    return %c0_i32, %c0_i32_0 : i32, i32
  }
  func.func @transform_5(%arg0: i32, %arg1: i32) -> (i32, i32) {
    %c0_i32 = arith.constant 0 : i32
    %c0_i32_0 = arith.constant 0 : i32
    %c0_i32_1 = arith.constant 0 : i32
    return %c0_i32, %c0_i32_0 : i32, i32
  }
  func.func @transform_6(%arg0: i32, %arg1: i32) -> (i32, i32) {
    %c0_i32 = arith.constant 0 : i32
    %c0_i32_0 = arith.constant 0 : i32
    %c0_i32_1 = arith.constant 0 : i32
    return %c0_i32, %c0_i32_0 : i32, i32
  }
  func.func @transform_7(%arg0: i32, %arg1: i32) -> (i32, i32) {
    %c0_i32 = arith.constant 0 : i32
    %c0_i32_0 = arith.constant 0 : i32
    return %arg0, %c0_i32 : i32, i32
  }
  func.func @transform_8(%arg0: i32, %arg1: i32) -> (i32, i32) {
    %c0_i32 = arith.constant 0 : i32
    %c0_i32_0 = arith.constant 0 : i32
    return %arg0, %c0_i32 : i32, i32
  }
  func.func @transform_9(%arg0: i32, %arg1: i32) -> (i32, i32) {
    %c0_i32 = arith.constant 0 : i32
    %c0_i32_0 = arith.constant 0 : i32
    return %arg0, %c0_i32 : i32, i32
  }
  func.func @transform_10(%arg0: i32, %arg1: i32) -> (i32, i32, i32) {
    %c0_i32 = arith.constant 0 : i32
    %c0_i32_0 = arith.constant 0 : i32
    return %arg1, %arg0, %c0_i32 : i32, i32, i32
  }
  func.func @transform_11(%arg0: i32, %arg1: i32) -> (i32, i32, i32) {
    %c0_i32 = arith.constant 0 : i32
    %c0_i32_0 = arith.constant 0 : i32
    return %arg1, %arg0, %c0_i32 : i32, i32, i32
  }
  func.func @transform_12(%arg0: i32, %arg1: i32) -> (i32, i32, i32) {
    %c0_i32 = arith.constant 0 : i32
    %c0_i32_0 = arith.constant 0 : i32
    return %arg1, %arg0, %c0_i32 : i32, i32, i32
  }
}

</mosaic_0001>

<bundles_post_ra>
// kernel: tpu_custom_call.1
= control target key start
LH: loop header
LB: loop body
LE: loop exit
PB: predicated region body
PF: predicated region fallthrough
CT: control target
= control target key end

     0   :  { %18 = vsyncpa [#allocation10], 0  ;;  %s4378_s0 = inlined_call_operand.hbm [shape: f32[16,8,128], index: 0, kind: input, shape index: {}]   ;;  %s4379_s1 = inlined_call_operand.vmem [shape: bf16[128,128], index: 1, kind: input, shape index: {}]   ;;  %s4380_s2 = inlined_call_operand.hbm [shape: bf16[128,128], index: 2, kind: input, shape index: {}]   ;;  %s4381_s3 = inlined_call_operand.hbm [shape: bf16[128,128], index: 3, kind: input, shape index: {}]   ;;  %s4382_s4 = inlined_call_operand.vmem [shape: bf16[128,20], index: 4, kind: input, shape index: {}]   ;;  %s4383_s5 = inlined_call_operand.vmem [shape: f32[7,128], index: 5, kind: input, shape index: {}]   ;;  %s4384_s6 = inlined_call_operand.hbm [shape: f32[2,20], index: 6, kind: input, shape index: {}]   ;;  %s4385_s7 = inlined_call_operand.vmem [shape: f32[8,128], index: 7, kind: input, shape index: {}]   ;;  %s4386_s8 = inlined_call_operand.hbm [shape: f32[8,128], index: 8, kind: input, shape index: {}]   ;;  %s4387_s9 = inlined_call_operand.hbm [shape: f32[8,20], index: 9, kind: input, shape index: {}]   ;;  %s4388_s10 = inlined_call_operand.hbm [shape: bf16[16,8,128], index: 10, kind: output, shape index: {0}]   ;;  %s4389_s11 = inlined_call_operand.hbm [shape: bf16[16,8,128], index: 11, kind: output, shape index: {1}]   ;;  %s4390_s12 = inlined_call_operand.hbm [shape: f32[16,8,20], index: 12, kind: output, shape index: {2}]  }
   0x1   :  { %19 = vsyncpa [#allocation13], 0 }
   0x2   :  { %20 = vsyncpa [#allocation16], 0 }
   0x3   :  { %21 = vsyncpa [#allocation19], 0 }
   0x4   :  { %22 = vsyncpa [#allocation11], 0  ;;  %s43_s23 = sshll.u32 %s4380_s2, 4  ;;  %s44_s23 = int_to_ptr.hbm [resolvable:$true] %s43_s23 }
   0x5   :  { %23 = vsyncpa [#allocation22], 0  ;;  %s2672_s24 = smov [#allocation12]   ;;  %s74_s28 = sshll.u32 %s4384_s6, 4  ;;  %s75_s28 = int_to_ptr.hbm [resolvable:$true] %s74_s28 }
   0x6   :  { %s45_s25 = sshll.u32 %s2672_s24, 4  ;;  %s2673_s29 = smov 64   ;;  %s46_s25 = int_to_ptr.vmem [resolvable:$true] %s45_s25 }
   0x7   :  { %s2674_s30 = smov 4   ;;  %s2675_s13 = smov [#allocation15]  }
   0x8   :  { %51 = dma.hbm_to_vmem [thread:$0]  %s44_s23, 1024, %s46_s25, [#allocation13], %s2673_s29, %s2673_s29, %s2674_s30  }
   0x9   :  { %s76_s14 = sshll.u32 %s2675_s13, 4  ;;  %s28_s16 = sshll.u32 %s4378_s0, 4  ;;  %s77_s14 = int_to_ptr.vmem [resolvable:$true] %s76_s14  ;;  %s29_s16 = int_to_ptr.hbm [resolvable:$true] %s28_s16 }
   0xa   :  { %79 = dma.hbm_to_vmem [thread:$0]  %s75_s28, 32, %s77_s14, [#allocation16]  }
   0xb   :  { %s2676_s17 = smov [#allocation9]   ;;  %s56_s20 = sshll.u32 %s4381_s3, 4  ;;  %s57_s20 = int_to_ptr.hbm [resolvable:$true] %s56_s20 }
   0xc   :  { %s30_s18 = sshll.u32 %s2676_s17, 4  ;;  %s2677_s21 = smov 128   ;;  %s31_s18 = int_to_ptr.vmem [resolvable:$true] %s30_s18 }
   0xd   :  { %s2678_s22 = smov 8   ;;  %s2679_s23 = smov [#allocation14]  }
   0xe   :  { %36 = dma.hbm_to_vmem [thread:$0]  %s29_s16, 2048, %s31_s18, [#allocation10], %s2677_s21, %s2677_s21, %s2678_s22  }
   0xf   :  { %s58_s24 = sshll.u32 %s2679_s23, 4  ;;  %s87_s26 = sshll.u32 %s4386_s8, 4  ;;  %s59_s24 = int_to_ptr.vmem [resolvable:$true] %s58_s24  ;;  %s88_s26 = int_to_ptr.hbm [resolvable:$true] %s87_s26 }
  0x10   :  { %64 = dma.hbm_to_vmem [thread:$0]  %s57_s20, 1024, %s59_s24, [#allocation13], %s2673_s29, %s2673_s29, %s2674_s30  }
  0x11   :  { %s98_s28 = sshll.u32 %s4387_s9, 4  ;;  %s2680_s13 = smov [#allocation17]   ;;  %s99_s28 = int_to_ptr.hbm [resolvable:$true] %s98_s28 }
  0x12   :  { %s89_s14 = sshll.u32 %s2680_s13, 4  ;;  %s2681_s15 = smov [#allocation18]   ;;  %s90_s14 = int_to_ptr.vmem [resolvable:$true] %s89_s14 }
  0x13   :  { %92 = dma.hbm_to_vmem [thread:$0]  %s88_s26, 128, %s90_s14, [#allocation16]  }
  0x14   :  { %s100_s2 = sshll.u32 %s2681_s15, 4  ;;  %s101_s2 = int_to_ptr.vmem [resolvable:$true] %s100_s2 }
  0x15   :  { %103 = dma.hbm_to_vmem [thread:$0]  %s99_s28, 128, %s101_s2, [#allocation19]  }
  0x16   :  { %2660 = dma.done.wait [#allocation10], 2048  }
  0x17   :  { %2661 = vsyncadd [#allocation10], 4294965248 }
  0x18   :  { %2662 = dma.done.wait [#allocation13], 2048  }
  0x19   :  { %2663 = vsyncadd [#allocation13], 4294965248 }
  0x1a   :  { %2664 = dma.done.wait [#allocation16], 160  }
  0x1b   :  { %2665 = vsyncadd [#allocation16], 4294967136 }
  0x1c   :  { %2666 = dma.done.wait [#allocation19], 128  }
  0x1d   :  { %2667 = vsyncadd [#allocation19], 4294967168  ;;  %v2682_v0 = vmov 0   ;;  %v2783_v1 = vld [vmem:[%s4379_s1 + $0x38] sm:$0xff]  ;;  %v2789_v2 = vld [vmem:[%s4379_s1 + $0x30] sm:$0xff]  ;;  %v2683_v50 = vmov 0.0  }
  0x1e   :  { %140 = vst [vmem:[#allocation3] sm:$0xf] %v2682_v0  ;;  %273 = vmatpush.bf16.msra.mxu0 %v2783_v1  ;;  %v2791_v3 = vld [vmem:[#allocation14 + $0x38] sm:$0xff]  ;;  %v2802_v6 = vld [vmem:[#allocation14 + $0x30] sm:$0xff]  ;;  %v2814_v9 = vld [vmem:[#allocation14 + $0x28] sm:$0xff]  ;;  %vm138_vm6 = vcmask 162816  }
  0x1f   :  { %141 = vst [vmem:[#allocation5] sm:$0xf] %v2682_v0  ;;  %v2793_v4 = vld [vmem:[#allocation12 + $0x38] sm:$0xff]  ;;  %353 = vmatpush.bf16.msra.mxu1 %v2791_v3  ;;  %v2805_v7 = vld [vmem:[#allocation12 + $0x30] sm:$0xff]  ;;  %v2817_v10 = vld [vmem:[#allocation12 + $0x28] sm:$0xff]  ;;  %s1984_s27 = sshll.u32 %s4389_s11, 4  ;;  %s1985_s27 = int_to_ptr.hbm [resolvable:$true] %s1984_s27 }
  0x20   :  { %v2798_v5 = vld [vmem:[%s4379_s1 + $0x28] sm:$0xff]  ;;  %414 = vmatpush.bf16.msra.mxu2 %v2793_v4  ;;  %v2811_v8 = vld [vmem:[%s4379_s1 + $0x20] sm:$0xff]  ;;  %v2823_v11 = vld [vmem:[%s4379_s1 + $0x18] sm:$0xff]  ;;  %v2684_v52 = vmov 1.0|1.0   ;;  %s1971_s14 = sshll.u32 %s4388_s10, 4  ;;  %s1972_s14 = int_to_ptr.hbm [resolvable:$true] %s1971_s14 }
  0x21   :  { %v2826_v12 = vld [vmem:[#allocation14 + $0x20] sm:$0xff]  ;;  %v2838_v15 = vld [vmem:[#allocation14 + $0x18] sm:$0xff]  ;;  %v2850_v18 = vld [vmem:[#allocation14 + $0x10] sm:$0xff]  ;;  %s2686_s15 = smov [#allocation20]   ;;  %s2687_s11 = smov [#allocation23]  }
  0x22   :  { %274 = vmatpush.bf16.msra.mxu0 %v2789_v2  ;;  %v2829_v13 = vld [vmem:[#allocation12 + $0x20] sm:$0xff]  ;;  %v2841_v16 = vld [vmem:[#allocation12 + $0x18] sm:$0xff]  ;;  %v2857_v19 = vld [vmem:[%s4379_s1] sm:$0xff]  ;;  %s1969_s2 = sshll.u32 %s2686_s15, 4  ;;  %s1995_s8 = sshll.u32 %s2687_s11, 4  ;;  %s1970_s2 = int_to_ptr.vmem [resolvable:$true] %s1969_s2  ;;  %s1996_s8 = int_to_ptr.vmem [resolvable:$true] %s1995_s8 }
  0x23   :  { %354 = vmatpush.bf16.msra.mxu1 %v2802_v6  ;;  %v2835_v14 = vld [vmem:[%s4379_s1 + $0x10] sm:$0xff]  ;;  %v2847_v17 = vld [vmem:[%s4379_s1 + $0x8] sm:$0xff]  ;;  %v2880_v21 = vld [vmem:[#allocation12 + $0x10] sm:$0xff]  ;;  %s1997_s17 = sshll.u32 %s4390_s12, 4  ;;  %s1998_s17 = int_to_ptr.hbm [resolvable:$true] %s1997_s17 }
  0x24   :  { %415 = vmatpush.bf16.msra.mxu2 %v2805_v7  ;;  %v2883_v22 = vld [vmem:[#allocation14 + $0x8] sm:$0xff]  ;;  %v2889_v24 = vld [vmem:[#allocation14] sm:$0xff]  ;;  %v2904_v27 = vld [vmem:[%s4383_s5 + $0x1] ss:$0 sm:$0xff] }
  0x25   :  { %v2861_v20 = vld [vmem:[#allocation3] sm:$0xf]  ;;  %v2886_v23 = vld [vmem:[#allocation12 + $0x8] sm:$0xff]  ;;  %v2892_v25 = vld [vmem:[#allocation12] sm:$0xff]  ;;  %v288_v30 = vmul.f32 0.01, %v2904_v27 }
  0x26   :  { %275 = vmatpush.bf16.msra.mxu0 %v2798_v5  ;;  %v2896_v26 = vld [vmem:[#allocation5] sm:$0xf]  ;;  %v289_v28 = vunpack.c.l.bf16 %v2861_v20  ;;  %v2910_v29 = vld [vmem:[%s4383_s5 + $0x2] ss:$0 sm:$0xff]  ;;  %v2920_v32 = vld [vmem:[%s4382_s4 + $0x38] sm:$0xff] }
  0x27   :  { %355 = vmatpush.bf16.msra.mxu1 %v2814_v9  ;;  %497 = vmatpush.bf16.msra.mxu3 %v2920_v32  ;;  %v2927_v34 = vld [vmem:[%s4382_s4 + $0x30] sm:$0xff]  ;;  %v2935_v36 = vld [vmem:[%s4382_s4 + $0x28] sm:$0xff]  ;;  %v2941_v37 = vld [vmem:[%s4383_s5] ss:$0 sm:$0xff] }
  0x28   :  { %416 = vmatpush.bf16.msra.mxu2 %v2817_v10  ;;  %v291_v31 = vmul.f32 %v2910_v29, %v289_v28  ;;  %v133_v38 = vld [vmem:[%s4385_s7] sm:$0xff]  ;;  %v224_v40 = vld [vmem:[#allocation9] sm:$0xff]  ;;  %v2998_v60 = vld [vmem:[%s4382_s4 + $0x18] sm:$0xff] }
  0x29   :  { %v296_v41 = vmul.f32 %v2941_v37, %v133_v38  ;;  %v2992_v58 = vld [vmem:[%s4382_s4 + $0x20] sm:$0xff]  ;;  %v3004_v62 = vld [vmem:[%s4382_s4 + $0x10] sm:$0xff]  ;;  %v3010_v63 = vld [vmem:[%s4382_s4 + $0x8] sm:$0xff] }
  0x2a   :  { %276 = vmatpush.bf16.msra.mxu0 %v2811_v8  ;;  %v292_v33 = vadd.f32 %v291_v31, %v288_v30  ;;  %v3016_v0 = vld [vmem:[%s4382_s4] sm:$0xff] }
  0x2b   :  { %356 = vmatpush.bf16.msra.mxu1 %v2826_v12  ;;  %498 = vmatpush.bf16.msra.mxu3 %v2927_v34  ;;  %v3029_v30 = vld [vmem:[%s4383_s5 + $0x4] ss:$0 sm:$0xff] }
  0x2c   :  { %417 = vmatpush.bf16.msra.mxu2 %v2829_v13  ;;  %v293_v35 = vmul.f32 1.8, %v292_v33  ;;  %v534_v49 = vmul.f32 %v2904_v27, %v292_v33  ;;  %v430_v33 = vmul.f32 0.01, %v3029_v30 }
  0x2e   :  { %277 = vmatpush.bf16.msra.mxu0 %v2823_v11  ;;  %v294_v39 = vadd.f32 0.01, %v293_v35 }
  0x2f   :  { %357 = vmatpush.bf16.msra.mxu1 %v2838_v15  ;;  %499 = vmatpush.bf16.msra.mxu3 %v2935_v36 }
  0x30   :  { %418 = vmatpush.bf16.msra.mxu2 %v2841_v16  ;;  %v298_v44 = vmul.f32 %v294_v39, %v289_v28  ;;  %v3024_v28 = vld [vmem:[%s4383_s5 + $0x5] ss:$0 sm:$0xff] }
  0x32   :  { %278 = vmatpush.bf16.msra.mxu0 %v2835_v14 }
  0x33   :  { %358 = vmatpush.bf16.msra.mxu1 %v2850_v18  ;;  %500 = vmatpush.bf16.msra.mxu3 %v2992_v58 }
  0x34   :  { %419 = vmatpush.bf16.msra.mxu2 %v2880_v21 }
  0x36   :  { %279 = vmatpush.bf16.msra.mxu0 %v2847_v17 }
  0x37   :  { %359 = vmatpush.bf16.msra.mxu1 %v2883_v22  ;;  %501 = vmatpush.bf16.msra.mxu3 %v2998_v60 }
  0x38   :  { %420 = vmatpush.bf16.msra.mxu2 %v2886_v23 }
  0x3a   :  { %280 = vmatpush.bf16.msra.mxu0 %v2857_v19 }
  0x3b   :  { %360 = vmatpush.bf16.msra.mxu1 %v2889_v24  ;;  %502 = vmatpush.bf16.msra.mxu3 %v3004_v62 }
  0x3c   :  { %421 = vmatpush.bf16.msra.mxu2 %v2892_v25 }
  0x3d   :  { %281 = vmatmul.bf16.vlgmr.msra.gmra.mxu0 %v2861_v20  ;;  %v431_v20 = vunpack.c.l.bf16 %v2896_v26 }
  0x3e   :  { %520 = vmatpush.bf16.msrb.mxu0 %v2783_v1  ;;  %361 = vmatmul.bf16.vlgmr.msra.gmra.mxu1 %v2896_v26  ;;  %v519_v26 = vld [vmem:[#allocation9 + $0x8] sm:$0xff] }
  0x3f   :  { %549 = vmatpush.bf16.msrb.mxu1 %v2791_v3  ;;  %503 = vmatpush.bf16.msra.mxu3 %v3010_v63  ;;  %v433_v31 = vmul.f32 %v3024_v28, %v431_v20 }
  0x40   :  { %562 = vmatpush.bf16.msrb.mxu2 %v2793_v4 }
  0x41   :  { %v434_v35 = vadd.f32 %v433_v31, %v430_v33 }
  0x42   :  { %521 = vmatpush.bf16.msrb.mxu0 %v2789_v2 }
  0x43   :  { %550 = vmatpush.bf16.msrb.mxu1 %v2802_v6  ;;  %504 = vmatpush.bf16.msra.mxu3 %v3016_v0 }
  0x44   :  { %563 = vmatpush.bf16.msrb.mxu2 %v2805_v7 }
  0x46   :  { %522 = vmatpush.bf16.msrb.mxu0 %v2798_v5 }
  0x47   :  { %551 = vmatpush.bf16.msrb.mxu1 %v2814_v9  ;;  %592 = vmatpush.bf16.msrb.mxu3 %v2920_v32 }
  0x48   :  { %564 = vmatpush.bf16.msrb.mxu2 %v2817_v10 }
  0x4a   :  { %523 = vmatpush.bf16.msrb.mxu0 %v2811_v8 }
  0x4b   :  { %552 = vmatpush.bf16.msrb.mxu1 %v2826_v12  ;;  %593 = vmatpush.bf16.msrb.mxu3 %v2927_v34 }
  0x4c   :  { %565 = vmatpush.bf16.msrb.mxu2 %v2829_v13 }
  0x4e   :  { %524 = vmatpush.bf16.msrb.mxu0 %v2823_v11 }
  0x4f   :  { %553 = vmatpush.bf16.msrb.mxu1 %v2838_v15  ;;  %594 = vmatpush.bf16.msrb.mxu3 %v2935_v36 }
  0x50   :  { %566 = vmatpush.bf16.msrb.mxu2 %v2841_v16 }
  0x52   :  { %525 = vmatpush.bf16.msrb.mxu0 %v2835_v14 }
  0x53   :  { %554 = vmatpush.bf16.msrb.mxu1 %v2850_v18  ;;  %595 = vmatpush.bf16.msrb.mxu3 %v2992_v58 }
  0x54   :  { %567 = vmatpush.bf16.msrb.mxu2 %v2880_v21 }
  0x56   :  { %526 = vmatpush.bf16.msrb.mxu0 %v2847_v17 }
  0x57   :  { %555 = vmatpush.bf16.msrb.mxu1 %v2883_v22  ;;  %596 = vmatpush.bf16.msrb.mxu3 %v2998_v60 }
  0x58   :  { %568 = vmatpush.bf16.msrb.mxu2 %v2886_v23 }
  0x5a   :  { %527 = vmatpush.bf16.msrb.mxu0 %v2857_v19 }
  0x5b   :  { %556 = vmatpush.bf16.msrb.mxu1 %v2889_v24  ;;  %597 = vmatpush.bf16.msrb.mxu3 %v3004_v62 }
  0x5c   :  { %569 = vmatpush.bf16.msrb.mxu2 %v2892_v25 }
  0x5e   :  { %616 = vmatpush.bf16.msra.mxu0 %v2783_v1 }
  0x5f   :  { %645 = vmatpush.bf16.msra.mxu1 %v2791_v3  ;;  %598 = vmatpush.bf16.msrb.mxu3 %v3010_v63 }
  0x62   :  { %617 = vmatpush.bf16.msra.mxu0 %v2789_v2 }
  0x63   :  { %646 = vmatpush.bf16.msra.mxu1 %v2802_v6  ;;  %599 = vmatpush.bf16.msrb.mxu3 %v3016_v0 }
  0x66   :  { %618 = vmatpush.bf16.msra.mxu0 %v2798_v5 }
  0x67   :  { %647 = vmatpush.bf16.msra.mxu1 %v2814_v9 }
  0x6a   :  { %619 = vmatpush.bf16.msra.mxu0 %v2811_v8 }
  0x6b   :  { %648 = vmatpush.bf16.msra.mxu1 %v2826_v12 }
  0x6e   :  { %620 = vmatpush.bf16.msra.mxu0 %v2823_v11 }
  0x6f   :  { %649 = vmatpush.bf16.msra.mxu1 %v2838_v15 }
  0x72   :  { %621 = vmatpush.bf16.msra.mxu0 %v2835_v14 }
  0x73   :  { %650 = vmatpush.bf16.msra.mxu1 %v2850_v18 }
  0x76   :  { %622 = vmatpush.bf16.msra.mxu0 %v2847_v17 }
  0x77   :  { %651 = vmatpush.bf16.msra.mxu1 %v2883_v22 }
  0x7a   :  { %623 = vmatpush.bf16.msra.mxu0 %v2857_v19 }
  0x7b   :  { %652 = vmatpush.bf16.msra.mxu1 %v2889_v24 }
  0xba   :  { %v282_v42 = vpop.f32.mrf.mxu0 }
  0xbb   :  { %v286_v43 = vadd.f32 %v282_v42, %v224_v40  ;;  %v362_v59 = vpop.f32.mrf.mxu1 }
  0xbd   :  { %v297_v45 = vadd.f32 %v296_v41, %v286_v43  ;;  %v435_v41 = vmul.f32 1.8, %v434_v35  ;;  %v3042_v43 = vld [vmem:[%s4383_s5 + $0x3] ss:$0 sm:$0xff] }
  0xbf   :  { %v2954_v46 = vsub.f32 %v297_v45, %v298_v44  ;;  %v135_v44 = vld [vmem:[#allocation17] sm:$0xff] }
  0xc1   :  { %v300_v47 = vsub.f32 %v2954_v46, %v294_v39  ;;  %v540_v40 = vmul.f32 %v2941_v37, %v2954_v46 }
  0xc2   :  { %v284_v48 = vpop.f32.mrf.mxu0 }
  0xc3   :  { %vm301_vm0 = vcmp.gt.f32.partialorder %v300_v47, 0.0  ;;  %v364_v61 = vpop.f32.mrf.mxu1  ;;  %v3049_v47 = vld [vmem:[%s4383_s5 + $0x6] ss:$0 sm:$0xff]  ;;  %v436_v48 = vadd.f32 0.01, %v435_v41  ;;  %v576_v41 = vmul.f32 %v3029_v30, %v434_v35 }
  0xc4   :  { %v2054_v51 = vsel %vm301_vm0, 1.0, %v2683_v50  ;;  %vm2119_vm1 = vmpackc.low %vm301_vm0, %vm301_vm0 }
  0xc5   :  { %2120 = vmatmul.msk.bf16.vlgmr.msra.gmra.mxu2 %vm2119_vm1, %v2684_v52  ;;  %v536_v53 = vmul.f32 %v2910_v29, %v2054_v51  ;;  %2157 = vmatmul.msk.bf16.vlgmr.msrb.gmra.mxu0 %vm2119_vm1, %v2684_v52 }
  0xc6   :  { %658 = vmatpush.bf16.msra.mxu2 %v2793_v4  ;;  %712 = vmatpush.bf16.msrb.mxu0 %v2783_v1 }
  0xc7   :  { %v2966_v54 = vadd.f32 %v536_v53, %v534_v49 }
  0xc9   :  { %v538_v55 = vmul.f32 1.8, %v2966_v54  ;;  %v630_v33 = vmul.f32 %v2904_v27, %v2966_v54 }
  0xca   :  { %659 = vmatpush.bf16.msra.mxu2 %v2805_v7  ;;  %713 = vmatpush.bf16.msrb.mxu0 %v2789_v2 }
  0xcb   :  { %v539_v56 = vadd.f32 0.01, %v538_v55 }
  0xcd   :  { %v542_v57 = vmul.f32 %v2054_v51, %v539_v56  ;;  %v438_v51 = vmul.f32 %v3042_v43, %v135_v44 }
  0xce   :  { %660 = vmatpush.bf16.msra.mxu2 %v2817_v10  ;;  %714 = vmatpush.bf16.msrb.mxu0 %v2798_v5 }
  0xd2   :  { %661 = vmatpush.bf16.msra.mxu2 %v2829_v13  ;;  %715 = vmatpush.bf16.msrb.mxu0 %v2811_v8 }
  0xd6   :  { %662 = vmatpush.bf16.msra.mxu2 %v2841_v16  ;;  %716 = vmatpush.bf16.msrb.mxu0 %v2823_v11 }
  0xda   :  { %663 = vmatpush.bf16.msra.mxu2 %v2880_v21  ;;  %717 = vmatpush.bf16.msrb.mxu0 %v2835_v14 }
  0xde   :  { %664 = vmatpush.bf16.msra.mxu2 %v2886_v23  ;;  %718 = vmatpush.bf16.msrb.mxu0 %v2847_v17 }
  0xe2   :  { %665 = vmatpush.bf16.msra.mxu2 %v2892_v25  ;;  %719 = vmatpush.bf16.msrb.mxu0 %v2857_v19 }
 0x142   :  { %v529_v38 = vpop.f32.mrf.mxu0 }
 0x143   :  { %v533_v39 = vadd.f32 %v529_v38, %v519_v26 }
 0x145   :  { %v541_v42 = vadd.f32 %v540_v40, %v533_v39 }
 0x147   :  { %v3044_v45 = vsub.f32 %v541_v42, %v542_v57  ;;  %v440_v57 = vmul.f32 %v436_v48, %v431_v20 }
 0x148   :  { %v423_v46 = vpop.f32.mrf.mxu2 }
 0x149   :  { %v424_v49 = vadd.f32 %v423_v46, %v362_v59  ;;  %v544_v53 = vsub.f32 %v3044_v45, %v539_v56 }
 0x14a   :  { %v531_v55 = vpop.f32.mrf.mxu0 }
 0x14b   :  { %v428_v61 = vadd.f32 %v3049_v47, %v424_v49  ;;  %vm545_vm2 = vcmp.gt.f32.partialorder %v544_v53, 0.0 }
 0x14c   :  { %v2158_v31 = vsel %vm545_vm2, 1.0, %v2683_v50  ;;  %vm2161_vm3 = vmpackc.low %vm545_vm2, %vm545_vm2 }
 0x14d   :  { %v439_v26 = vadd.f32 %v438_v51, %v428_v61  ;;  %2162 = vmatmul.msk.bf16.vlgmr.msrb.gmra.mxu2 %vm2161_vm3, %v2684_v52  ;;  %v632_v59 = vmul.f32 %v2910_v29, %v2158_v31  ;;  %2167 = vmatmul.msk.bf16.vlgmr.msra.gmra.mxu0 %vm2161_vm3, %v2684_v52  ;;  %v137_v61 = vld [vmem:[#allocation18] sm:$0xff] }
 0x14e   :  { %754 = vmatpush.bf16.msrb.mxu2 %v2793_v4  ;;  %808 = vmatpush.bf16.msra.mxu0 %v2783_v1  ;;  %139 = vst.msk [vmem:[#allocation6] sm:$0xff] %vm138_vm6, %v137_v61 }
 0x14f   :  { %v3064_v56 = vadd.f32 %v632_v59, %v630_v33  ;;  %v3066_v20 = vsub.f32 %v439_v26, %v440_v57  ;;  %v615_v57 = vld [vmem:[#allocation9 + $0x10] sm:$0xff]  ;;  %v636_v26 = vmul.f32 %v2941_v37, %v3044_v45 }
 0x150   :  { %v425_v38 = vpop.f32.mrf.mxu2 }
 0x151   :  { %v442_v54 = vsub.f32 %v3066_v20, %v436_v48  ;;  %v514_v39 = vpack.c.bf16 %v3066_v20, %v3066_v20  ;;  %v634_v40 = vmul.f32 1.8, %v3064_v56  ;;  %v582_v61 = vmul.f32 %v3042_v43, %v3066_v20 }
 0x152   :  { %755 = vmatpush.bf16.msrb.mxu2 %v2805_v7  ;;  %809 = vmatpush.bf16.msra.mxu0 %v2789_v2 }
 0x153   :  { %vm443_vm4 = vcmp.gt.f32.partialorder %v442_v54, 0.0  ;;  %515 = vst [vmem:[#allocation21] sm:$0xf] %v514_v39  ;;  %v635_v42 = vadd.f32 0.01, %v634_v40 }
 0x154   :  { %v2121_v44 = vsel %vm443_vm4, 1.0, %v2683_v50  ;;  %vm2154_vm5 = vmpackc.low %vm443_vm4, %vm443_vm4  ;;  %v3120_v40 = vld [vmem:[#allocation15] ss:$0 sm:$0xff] }
 0x155   :  { %v446_v46 = vpack.c.bf16 %v2121_v44, %v2121_v44  ;;  %2155 = vmatmul.msk.bf16.vlgmr.msra.gmra.mxu3 %vm2154_vm5, %v2684_v52  ;;  %v578_v48 = vmul.f32 %v3024_v28, %v2121_v44  ;;  %2160 = vmatmul.msk.bf16.vlgmr.msrb.gmra.mxu1 %vm2154_vm5, %v2684_v52  ;;  %v638_v49 = vmul.f32 %v2158_v31, %v635_v42 }
 0x156   :  { %756 = vmatpush.bf16.msrb.mxu2 %v2817_v10  ;;  %810 = vmatpush.bf16.msra.mxu0 %v2798_v5 }
 0x157   :  { %513 = vst [vmem:[#allocation20] sm:$0xf] %v446_v46  ;;  %v3082_v51 = vadd.f32 %v578_v48, %v576_v41  ;;  %688 = vmatpush.bf16.msra.mxu3 %v2920_v32  ;;  %741 = vmatpush.bf16.msrb.mxu1 %v2791_v3  ;;  %v221_v46 = vld [vmem:[#allocation6] sm:$0xff] }
 0x159   :  { %v580_v35 = vmul.f32 1.8, %v3082_v51 }
 0x15a   :  { %757 = vmatpush.bf16.msrb.mxu2 %v2829_v13  ;;  %811 = vmatpush.bf16.msra.mxu0 %v2811_v8 }
 0x15b   :  { %v3089_v53 = vadd.f32 0.01, %v580_v35  ;;  %689 = vmatpush.bf16.msra.mxu3 %v2927_v34  ;;  %742 = vmatpush.bf16.msrb.mxu1 %v2802_v6  ;;  %v726_v35 = vmul.f32 %v2904_v27, %v3064_v56 }
 0x15d   :  { %v584_v55 = vmul.f32 %v2121_v44, %v3089_v53 }
 0x15e   :  { %758 = vmatpush.bf16.msrb.mxu2 %v2841_v16  ;;  %812 = vmatpush.bf16.msra.mxu0 %v2823_v11 }
 0x15f   :  { %690 = vmatpush.bf16.msra.mxu3 %v2935_v36  ;;  %743 = vmatpush.bf16.msrb.mxu1 %v2814_v9 }
 0x162   :  { %759 = vmatpush.bf16.msrb.mxu2 %v2880_v21  ;;  %813 = vmatpush.bf16.msra.mxu0 %v2835_v14 }
 0x163   :  { %691 = vmatpush.bf16.msra.mxu3 %v2992_v58  ;;  %744 = vmatpush.bf16.msrb.mxu1 %v2826_v12 }
 0x166   :  { %760 = vmatpush.bf16.msrb.mxu2 %v2886_v23  ;;  %814 = vmatpush.bf16.msra.mxu0 %v2847_v17 }
 0x167   :  { %692 = vmatpush.bf16.msra.mxu3 %v2998_v60  ;;  %745 = vmatpush.bf16.msrb.mxu1 %v2838_v15 }
 0x16a   :  { %761 = vmatpush.bf16.msrb.mxu2 %v2892_v25  ;;  %815 = vmatpush.bf16.msra.mxu0 %v2857_v19 }
 0x16b   :  { %693 = vmatpush.bf16.msra.mxu3 %v3004_v62  ;;  %746 = vmatpush.bf16.msrb.mxu1 %v2850_v18 }
 0x16f   :  { %694 = vmatpush.bf16.msra.mxu3 %v3010_v63  ;;  %747 = vmatpush.bf16.msrb.mxu1 %v2883_v22 }
 0x173   :  { %695 = vmatpush.bf16.msra.mxu3 %v3016_v0  ;;  %748 = vmatpush.bf16.msrb.mxu1 %v2889_v24 }
 0x1ca   :  { %v625_v31 = vpop.f32.mrf.mxu0 }
 0x1cb   :  { %v629_v33 = vadd.f32 %v625_v31, %v615_v57  ;;  %v3134_v31 = vld [vmem:[#allocation15 + $0x1] ss:$0 sm:$0xff] }
 0x1cd   :  { %v637_v59 = vadd.f32 %v636_v26, %v629_v33 }
 0x1cf   :  { %v3117_v38 = vsub.f32 %v637_v59, %v638_v49 }
 0x1d0   :  { %v571_v54 = vpop.f32.mrf.mxu2 }
 0x1d1   :  { %v640_v39 = vsub.f32 %v3117_v38, %v635_v42  ;;  %v448_v42 = vmul.f32 %v3120_v40, %v221_v46 }
 0x1d2   :  { %v558_v41 = vpop.f32.mrf.mxu1  ;;  %v627_v44 = vpop.f32.mrf.mxu0 }
 0x1d3   :  { %v572_v48 = vadd.f32 %v571_v54, %v558_v41  ;;  %vm641_vm7 = vcmp.gt.f32.partialorder %v640_v39, 0.0 }
 0x1d4   :  { %vm2171_vm8 = vmpackc.low %vm641_vm7, %vm641_vm7  ;;  %v2168_v45 = vsel %vm641_vm7, 1.0, %v2683_v50 }
 0x1d5   :  { %v575_v49 = vadd.f32 %v3049_v47, %v572_v48  ;;  %2172 = vmatmul.msk.bf16.vlgmr.msra.gmra.mxu2 %vm2171_vm8, %v2684_v52  ;;  %2177 = vmatmul.msk.bf16.vlgmr.msrb.gmra.mxu0 %vm2171_vm8, %v2684_v52  ;;  %v728_v57 = vmul.f32 %v2910_v29, %v2168_v45 }
 0x1d6   :  { %850 = vmatpush.bf16.msra.mxu2 %v2793_v4  ;;  %904 = vmatpush.bf16.msrb.mxu0 %v2783_v1 }
 0x1d7   :  { %v583_v56 = vadd.f32 %v582_v61, %v575_v49  ;;  %v3136_v20 = vadd.f32 %v728_v57, %v726_v35  ;;  %v672_v49 = vmul.f32 %v3029_v30, %v3082_v51 }
 0x1d8   :  { %v506_v33 = vpop.f32.mrf.mxu3  ;;  %v573_v26 = vpop.f32.mrf.mxu2 }
 0x1d9   :  { %v3138_v59 = vsub.f32 %v583_v56, %v584_v55  ;;  %v510_v54 = vadd.f32 %v506_v33, %v448_v42  ;;  %v730_v39 = vmul.f32 1.8, %v3136_v20  ;;  %v711_v26 = vld [vmem:[#allocation9 + $0x18] sm:$0xff] }
 0x1da   :  { %v560_v41 = vpop.f32.mrf.mxu1  ;;  %851 = vmatpush.bf16.msra.mxu2 %v2805_v7  ;;  %905 = vmatpush.bf16.msrb.mxu0 %v2789_v2 }
 0x1db   :  { %v609_v44 = vpack.c.bf16 %v3138_v59, %v3138_v59  ;;  %v3146_v46 = vadd.f32 %v3134_v31, %v510_v54  ;;  %v586_v48 = vsub.f32 %v3138_v59, %v3089_v53  ;;  %v731_v35 = vadd.f32 0.01, %v730_v39 }
 0x1dc   :  { %v732_v41 = vmul.f32 %v2941_v37, %v3117_v38  ;;  %v822_v38 = vmul.f32 %v2904_v27, %v3136_v20 }
 0x1dd   :  { %611 = vst [vmem:[#allocation21 + $0x4] sm:$0xf] %v609_v44  ;;  %vm587_vm9 = vcmp.gt.f32.partialorder %v586_v48, 0.0  ;;  %v734_v55 = vmul.f32 %v2168_v45, %v731_v35 }
 0x1de   :  { %517 = vst.msk [vmem:[#allocation23] sm:$0xff] %vm138_vm6, %v3146_v46  ;;  %v2163_v61 = vsel %vm587_vm9, 1.0, %v2683_v50  ;;  %vm2164_vm10 = vmpackc.low %vm587_vm9, %vm587_vm9  ;;  %852 = vmatpush.bf16.msra.mxu2 %v2817_v10  ;;  %906 = vmatpush.bf16.msrb.mxu0 %v2798_v5 }
 0x1df   :  { %v590_v42 = vpack.c.bf16 %v2163_v61, %v2163_v61  ;;  %2165 = vmatmul.msk.bf16.vlgmr.msrb.gmra.mxu3 %vm2164_vm10, %v2684_v52  ;;  %v674_v53 = vmul.f32 %v3024_v28, %v2163_v61  ;;  %2170 = vmatmul.msk.bf16.vlgmr.msra.gmra.mxu1 %vm2164_vm10, %v2684_v52 }
 0x1e0   :  { %v508_v45 = vpop.f32.mrf.mxu3  ;;  %784 = vmatpush.bf16.msrb.mxu3 %v2920_v32  ;;  %837 = vmatpush.bf16.msra.mxu1 %v2791_v3 }
 0x1e1   :  { %608 = vst [vmem:[#allocation20 + $0x4] sm:$0xf] %v590_v42  ;;  %v3162_v57 = vadd.f32 %v674_v53, %v672_v49 }
 0x1e2   :  { %853 = vmatpush.bf16.msra.mxu2 %v2829_v13  ;;  %907 = vmatpush.bf16.msrb.mxu0 %v2811_v8 }
 0x1e3   :  { %v676_v51 = vmul.f32 1.8, %v3162_v57 }
 0x1e4   :  { %785 = vmatpush.bf16.msrb.mxu3 %v2927_v34  ;;  %838 = vmatpush.bf16.msra.mxu1 %v2802_v6 }
 0x1e5   :  { %v3169_v56 = vadd.f32 0.01, %v676_v51 }
 0x1e6   :  { %854 = vmatpush.bf16.msra.mxu2 %v2841_v16  ;;  %908 = vmatpush.bf16.msrb.mxu0 %v2823_v11 }
 0x1e7   :  { %v680_v33 = vmul.f32 %v2163_v61, %v3169_v56 }
 0x1e8   :  { %786 = vmatpush.bf16.msrb.mxu3 %v2935_v36  ;;  %839 = vmatpush.bf16.msra.mxu1 %v2814_v9 }
 0x1ea   :  { %855 = vmatpush.bf16.msra.mxu2 %v2880_v21  ;;  %909 = vmatpush.bf16.msrb.mxu0 %v2835_v14 }
 0x1ec   :  { %787 = vmatpush.bf16.msrb.mxu3 %v2992_v58  ;;  %840 = vmatpush.bf16.msra.mxu1 %v2826_v12 }
 0x1ee   :  { %856 = vmatpush.bf16.msra.mxu2 %v2886_v23  ;;  %910 = vmatpush.bf16.msrb.mxu0 %v2847_v17 }
 0x1f0   :  { %788 = vmatpush.bf16.msrb.mxu3 %v2998_v60  ;;  %841 = vmatpush.bf16.msra.mxu1 %v2838_v15 }
 0x1f2   :  { %857 = vmatpush.bf16.msra.mxu2 %v2892_v25  ;;  %911 = vmatpush.bf16.msrb.mxu0 %v2857_v19 }
 0x1f4   :  { %789 = vmatpush.bf16.msrb.mxu3 %v3004_v62  ;;  %842 = vmatpush.bf16.msra.mxu1 %v2850_v18 }
 0x1f8   :  { %790 = vmatpush.bf16.msrb.mxu3 %v3010_v63  ;;  %843 = vmatpush.bf16.msra.mxu1 %v2883_v22 }
 0x1fc   :  { %791 = vmatpush.bf16.msrb.mxu3 %v3016_v0  ;;  %844 = vmatpush.bf16.msra.mxu1 %v2889_v24 }
 0x252   :  { %v721_v54 = vpop.f32.mrf.mxu0 }
 0x253   :  { %v725_v39 = vadd.f32 %v721_v54, %v711_v26  ;;  %v678_v26 = vmul.f32 %v3042_v43, %v3138_v59 }
 0x255   :  { %v733_v44 = vadd.f32 %v732_v41, %v725_v39 }
 0x257   :  { %v3194_v48 = vsub.f32 %v733_v44, %v734_v55  ;;  %v591_v44 = vmul.f32 %v3120_v40, %v3146_v46 }
 0x258   :  { %v667_v61 = vpop.f32.mrf.mxu2 }
 0x259   :  { %v736_v49 = vsub.f32 %v3194_v48, %v731_v35 }
 0x25a   :  { %v723_v42 = vpop.f32.mrf.mxu0 }
 0x25b   :  { %vm737_vm11 = vcmp.gt.f32.partialorder %v736_v49, 0.0 }
 0x25c   :  { %v654_v53 = vpop.f32.mrf.mxu1  ;;  %vm2181_vm12 = vmpackc.low %vm737_vm11, %vm737_vm11  ;;  %v2178_v45 = vsel %vm737_vm11, 1.0, %v2683_v50 }
 0x25d   :  { %v668_v51 = vadd.f32 %v667_v61, %v654_v53  ;;  %2182 = vmatmul.msk.bf16.vlgmr.msrb.gmra.mxu2 %vm2181_vm12, %v2684_v52  ;;  %2187 = vmatmul.msk.bf16.vlgmr.msra.gmra.mxu0 %vm2181_vm12, %v2684_v52  ;;  %v824_v55 = vmul.f32 %v2910_v29, %v2178_v45 }
 0x25e   :  { %946 = vmatpush.bf16.msrb.mxu2 %v2793_v4  ;;  %1000 = vmatpush.bf16.msra.mxu0 %v2783_v1 }
 0x25f   :  { %v671_v35 = vadd.f32 %v3049_v47, %v668_v51  ;;  %v3208_v54 = vadd.f32 %v824_v55, %v822_v38 }
 0x260   :  { %v669_v39 = vpop.f32.mrf.mxu2 }
 0x261   :  { %v679_v41 = vadd.f32 %v678_v26, %v671_v35  ;;  %v826_v20 = vmul.f32 1.8, %v3208_v54  ;;  %v768_v35 = vmul.f32 %v3029_v30, %v3162_v57 }
 0x262   :  { %v601_v61 = vpop.f32.mrf.mxu3  ;;  %947 = vmatpush.bf16.msrb.mxu2 %v2805_v7  ;;  %1001 = vmatpush.bf16.msra.mxu0 %v2789_v2 }
 0x263   :  { %v3215_v49 = vsub.f32 %v679_v41, %v680_v33  ;;  %v605_v42 = vadd.f32 %v601_v61, %v591_v44  ;;  %v827_v53 = vadd.f32 0.01, %v826_v20  ;;  %v807_v20 = vld [vmem:[#allocation9 + $0x20] sm:$0xff] }
 0x264   :  { %v656_v51 = vpop.f32.mrf.mxu1 }
 0x265   :  { %v705_v59 = vpack.c.bf16 %v3215_v49, %v3215_v49  ;;  %v3220_v38 = vadd.f32 %v3134_v31, %v605_v42  ;;  %v682_v46 = vsub.f32 %v3215_v49, %v3169_v56  ;;  %v830_v55 = vmul.f32 %v2178_v45, %v827_v53 }
 0x266   :  { %948 = vmatpush.bf16.msrb.mxu2 %v2817_v10  ;;  %1002 = vmatpush.bf16.msra.mxu0 %v2798_v5  ;;  %v828_v51 = vmul.f32 %v2941_v37, %v3194_v48 }
 0x267   :  { %707 = vst [vmem:[#allocation21 + $0x8] sm:$0xf] %v705_v59  ;;  %vm683_vm13 = vcmp.gt.f32.partialorder %v682_v46, 0.0 }
 0x268   :  { %613 = vst.msk [vmem:[#allocation23 + $0x8] sm:$0xff] %vm138_vm6, %v3220_v38  ;;  %v2173_v33 = vsel %vm683_vm13, 1.0, %v2683_v50  ;;  %vm2174_vm14 = vmpackc.low %vm683_vm13, %vm683_vm13 }
 0x269   :  { %v686_v26 = vpack.c.bf16 %v2173_v33, %v2173_v33  ;;  %2175 = vmatmul.msk.bf16.vlgmr.msra.gmra.mxu3 %vm2174_vm14, %v2684_v52  ;;  %v770_v56 = vmul.f32 %v3024_v28, %v2173_v33  ;;  %2180 = vmatmul.msk.bf16.vlgmr.msrb.gmra.mxu1 %vm2174_vm14, %v2684_v52 }
 0x26a   :  { %v603_v45 = vpop.f32.mrf.mxu3  ;;  %949 = vmatpush.bf16.msrb.mxu2 %v2829_v13  ;;  %1003 = vmatpush.bf16.msra.mxu0 %v2811_v8 }
 0x26b   :  { %704 = vst [vmem:[#allocation20 + $0x8] sm:$0xf] %v686_v26  ;;  %v3236_v39 = vadd.f32 %v770_v56, %v768_v35  ;;  %880 = vmatpush.bf16.msra.mxu3 %v2920_v32  ;;  %933 = vmatpush.bf16.msrb.mxu1 %v2791_v3  ;;  %v918_v45 = vmul.f32 %v2904_v27, %v3208_v54 }
 0x26d   :  { %v772_v57 = vmul.f32 1.8, %v3236_v39 }
 0x26e   :  { %950 = vmatpush.bf16.msrb.mxu2 %v2841_v16  ;;  %1004 = vmatpush.bf16.msra.mxu0 %v2823_v11 }
 0x26f   :  { %v3243_v41 = vadd.f32 0.01, %v772_v57  ;;  %881 = vmatpush.bf16.msra.mxu3 %v2927_v34  ;;  %934 = vmatpush.bf16.msrb.mxu1 %v2802_v6 }
 0x271   :  { %v776_v44 = vmul.f32 %v2173_v33, %v3243_v41 }
 0x272   :  { %951 = vmatpush.bf16.msrb.mxu2 %v2880_v21  ;;  %1005 = vmatpush.bf16.msra.mxu0 %v2835_v14 }
 0x273   :  { %882 = vmatpush.bf16.msra.mxu3 %v2935_v36  ;;  %935 = vmatpush.bf16.msrb.mxu1 %v2814_v9 }
 0x276   :  { %952 = vmatpush.bf16.msrb.mxu2 %v2886_v23  ;;  %1006 = vmatpush.bf16.msra.mxu0 %v2847_v17 }
 0x277   :  { %883 = vmatpush.bf16.msra.mxu3 %v2992_v58  ;;  %936 = vmatpush.bf16.msrb.mxu1 %v2826_v12 }
 0x27a   :  { %953 = vmatpush.bf16.msrb.mxu2 %v2892_v25  ;;  %1007 = vmatpush.bf16.msra.mxu0 %v2857_v19 }
 0x27b   :  { %884 = vmatpush.bf16.msra.mxu3 %v2998_v60  ;;  %937 = vmatpush.bf16.msrb.mxu1 %v2838_v15 }
 0x27f   :  { %885 = vmatpush.bf16.msra.mxu3 %v3004_v62  ;;  %938 = vmatpush.bf16.msrb.mxu1 %v2850_v18 }
 0x283   :  { %886 = vmatpush.bf16.msra.mxu3 %v3010_v63  ;;  %939 = vmatpush.bf16.msrb.mxu1 %v2883_v22 }
 0x287   :  { %887 = vmatpush.bf16.msra.mxu3 %v3016_v0  ;;  %940 = vmatpush.bf16.msrb.mxu1 %v2889_v24 }
 0x2da   :  { %v817_v61 = vpop.f32.mrf.mxu0 }
 0x2db   :  { %v821_v42 = vadd.f32 %v817_v61, %v807_v20 }
 0x2dd   :  { %v829_v59 = vadd.f32 %v828_v51, %v821_v42  ;;  %v774_v42 = vmul.f32 %v3042_v43, %v3215_v49 }
 0x2df   :  { %v3268_v46 = vsub.f32 %v829_v59, %v830_v55 }
 0x2e0   :  { %v763_v33 = vpop.f32.mrf.mxu2 }
 0x2e1   :  { %v832_v35 = vsub.f32 %v3268_v46, %v827_v53 }
 0x2e2   :  { %v819_v26 = vpop.f32.mrf.mxu0 }
 0x2e3   :  { %vm833_vm15 = vcmp.gt.f32.partialorder %v832_v35, 0.0 }
 0x2e4   :  { %vm2191_vm0 = vmpackc.low %vm833_vm15, %vm833_vm15  ;;  %v2188_v56 = vsel %vm833_vm15, 1.0, %v2683_v50 }
 0x2e5   :  { %2192 = vmatmul.msk.bf16.vlgmr.msra.gmra.mxu2 %vm2191_vm0, %v2684_v52  ;;  %2197 = vmatmul.msk.bf16.vlgmr.msrb.gmra.mxu0 %vm2191_vm0, %v2684_v52  ;;  %v920_v48 = vmul.f32 %v2910_v29, %v2188_v56 }
 0x2e6   :  { %v750_v57 = vpop.f32.mrf.mxu1  ;;  %1042 = vmatpush.bf16.msra.mxu2 %v2793_v4  ;;  %1096 = vmatpush.bf16.msrb.mxu0 %v2783_v1  ;;  %v687_v4 = vmul.f32 %v3120_v40, %v3220_v38 }
 0x2e7   :  { %v764_v53 = vadd.f32 %v763_v33, %v750_v57  ;;  %v3279_v55 = vadd.f32 %v920_v48, %v918_v45 }
 0x2e8   :  { %v765_v20 = vpop.f32.mrf.mxu2 }
 0x2e9   :  { %v767_v61 = vadd.f32 %v3049_v47, %v764_v53  ;;  %v922_v51 = vmul.f32 1.8, %v3279_v55 }
 0x2ea   :  { %1043 = vmatpush.bf16.msra.mxu2 %v2805_v7  ;;  %1097 = vmatpush.bf16.msrb.mxu0 %v2789_v2 }
 0x2eb   :  { %v775_v54 = vadd.f32 %v774_v42, %v767_v61  ;;  %v923_v1 = vadd.f32 0.01, %v922_v51 }
 0x2ec   :  { %v697_v59 = vpop.f32.mrf.mxu3 }
 0x2ed   :  { %v3289_v33 = vsub.f32 %v775_v54, %v776_v44  ;;  %v701_v35 = vadd.f32 %v697_v59, %v687_v4  ;;  %v926_v26 = vmul.f32 %v2188_v56, %v923_v1 }
 0x2ee   :  { %v752_v45 = vpop.f32.mrf.mxu1  ;;  %1044 = vmatpush.bf16.msra.mxu2 %v2817_v10  ;;  %1098 = vmatpush.bf16.msrb.mxu0 %v2798_v5  ;;  %v864_v10 = vmul.f32 %v3029_v30, %v3236_v39  ;;  %v3351_v39 = vld [vmem:[#allocation12 + $0x38] sm:$0xff] }
 0x2ef   :  { %v801_v7 = vpack.c.bf16 %v3289_v33, %v3289_v33  ;;  %v3296_v2 = vadd.f32 %v3134_v31, %v701_v35  ;;  %v778_v49 = vsub.f32 %v3289_v33, %v3243_v41  ;;  %v870_v42 = vmul.f32 %v3042_v43, %v3289_v33  ;;  %v3382_v35 = vld [vmem:[#allocation12 + $0x28] sm:$0xff] }
 0x2f1   :  { %803 = vst [vmem:[#allocation21 + $0xc] sm:$0xf] %v801_v7  ;;  %vm779_vm1 = vcmp.gt.f32.partialorder %v778_v49, 0.0  ;;  %v783_v4 = vmul.f32 %v3120_v40, %v3296_v2 }
 0x2f2   :  { %709 = vst.msk [vmem:[#allocation23 + $0x10] sm:$0xff] %vm138_vm6, %v3296_v2  ;;  %v2183_v38 = vsel %vm779_vm1, 1.0, %v2683_v50  ;;  %vm2184_vm2 = vmpackc.low %vm779_vm1, %vm779_vm1  ;;  %1045 = vmatpush.bf16.msra.mxu2 %v2829_v13  ;;  %1099 = vmatpush.bf16.msrb.mxu0 %v2811_v8 }
 0x2f3   :  { %v782_v5 = vpack.c.bf16 %v2183_v38, %v2183_v38  ;;  %2185 = vmatmul.msk.bf16.vlgmr.msrb.gmra.mxu3 %vm2184_vm2, %v2684_v52  ;;  %v866_v41 = vmul.f32 %v3024_v28, %v2183_v38  ;;  %2190 = vmatmul.msk.bf16.vlgmr.msra.gmra.mxu1 %vm2184_vm2, %v2684_v52 }
 0x2f4   :  { %v699_v44 = vpop.f32.mrf.mxu3  ;;  %976 = vmatpush.bf16.msrb.mxu3 %v2920_v32  ;;  %1029 = vmatpush.bf16.msra.mxu1 %v2791_v3 }
 0x2f5   :  { %800 = vst [vmem:[#allocation20 + $0xc] sm:$0xf] %v782_v5  ;;  %v3312_v56 = vadd.f32 %v866_v41, %v864_v10  ;;  %v3400_v5 = vld [vmem:[#allocation12 + $0x20] sm:$0xff]  ;;  %v3406_v10 = vld [vmem:[%s4379_s1 + $0x20] sm:$0xff] }
 0x2f6   :  { %1046 = vmatpush.bf16.msra.mxu2 %v2841_v16  ;;  %1100 = vmatpush.bf16.msrb.mxu0 %v2823_v11 }
 0x2f7   :  { %v868_v8 = vmul.f32 1.8, %v3312_v56 }
 0x2f8   :  { %977 = vmatpush.bf16.msrb.mxu3 %v2927_v34  ;;  %1030 = vmatpush.bf16.msra.mxu1 %v2802_v6  ;;  %v903_v6 = vld [vmem:[#allocation9 + $0x28] sm:$0xff] }
 0x2f9   :  { %v3319_v13 = vadd.f32 0.01, %v868_v8  ;;  %v960_v8 = vmul.f32 %v3029_v30, %v3312_v56  ;;  %v3429_v56 = vld [vmem:[#allocation14 + $0x38] sm:$0xff] }
 0x2fa   :  { %1047 = vmatpush.bf16.msra.mxu2 %v2880_v21  ;;  %1101 = vmatpush.bf16.msrb.mxu0 %v2835_v14 }
 0x2fb   :  { %v872_v3 = vmul.f32 %v2183_v38, %v3319_v13 }
 0x2fc   :  { %978 = vmatpush.bf16.msrb.mxu3 %v2935_v36  ;;  %1031 = vmatpush.bf16.msra.mxu1 %v2814_v9 }
 0x2fe   :  { %1048 = vmatpush.bf16.msra.mxu2 %v2886_v23  ;;  %1102 = vmatpush.bf16.msrb.mxu0 %v2847_v17 }
 0x300   :  { %979 = vmatpush.bf16.msrb.mxu3 %v2992_v58  ;;  %1032 = vmatpush.bf16.msra.mxu1 %v2826_v12  ;;  %v924_v12 = vmul.f32 %v2941_v37, %v3268_v46  ;;  %v3357_v46 = vld [vmem:[%s4379_s1 + $0x38] sm:$0xff] }
 0x302   :  { %1049 = vmatpush.bf16.msra.mxu2 %v2892_v25  ;;  %1103 = vmatpush.bf16.msrb.mxu0 %v2857_v19 }
 0x304   :  { %980 = vmatpush.bf16.msrb.mxu3 %v2998_v60  ;;  %1033 = vmatpush.bf16.msra.mxu1 %v2838_v15 }
 0x308   :  { %981 = vmatpush.bf16.msrb.mxu3 %v3004_v62  ;;  %1034 = vmatpush.bf16.msra.mxu1 %v2850_v18 }
 0x30c   :  { %982 = vmatpush.bf16.msrb.mxu3 %v3010_v63  ;;  %1035 = vmatpush.bf16.msra.mxu1 %v2883_v22  ;;  %v1014_v22 = vmul.f32 %v2904_v27, %v3279_v55  ;;  %v3363_v55 = vld [vmem:[#allocation12 + $0x30] sm:$0xff] }
 0x310   :  { %983 = vmatpush.bf16.msrb.mxu3 %v3016_v0  ;;  %1036 = vmatpush.bf16.msra.mxu1 %v2889_v24 }
 0x362   :  { %v913_v9 = vpop.f32.mrf.mxu0 }
 0x363   :  { %v917_v11 = vadd.f32 %v913_v9, %v903_v6  ;;  %v3417_v6 = vld [vmem:[#allocation12 + $0x18] sm:$0xff]  ;;  %v3423_v9 = vld [vmem:[%s4379_s1 + $0x18] sm:$0xff] }
 0x365   :  { %v925_v14 = vadd.f32 %v924_v12, %v917_v11 }
 0x367   :  { %v3342_v15 = vsub.f32 %v925_v14, %v926_v26  ;;  %v3388_v26 = vld [vmem:[%s4379_s1 + $0x28] sm:$0xff]  ;;  %v3437_v14 = vld [vmem:[%s4379_s1 + $0x10] sm:$0xff] }
 0x368   :  { %v859_v16 = vpop.f32.mrf.mxu2 }
 0x369   :  { %v928_v17 = vsub.f32 %v3342_v15, %v923_v1 }
 0x36a   :  { %v915_v18 = vpop.f32.mrf.mxu0 }
 0x36b   :  { %vm929_vm3 = vcmp.gt.f32.partialorder %v928_v17, 0.0  ;;  %v3455_v18 = vld [vmem:[#allocation14 + $0x28] sm:$0xff] }
 0x36c   :  { %vm2201_vm4 = vmpackc.low %vm929_vm3, %vm929_vm3  ;;  %v2198_v19 = vsel %vm929_vm3, 1.0, %v2683_v50 }
 0x36d   :  { %2202 = vmatmul.msk.bf16.vlgmr.msrb.gmra.mxu2 %vm2201_vm4, %v2684_v52  ;;  %2207 = vmatmul.msk.bf16.vlgmr.msra.gmra.mxu0 %vm2201_vm4, %v2684_v52  ;;  %v1016_v24 = vmul.f32 %v2910_v29, %v2198_v19  ;;  %v3369_v29 = vld [vmem:[%s4379_s1 + $0x30] sm:$0xff] }
 0x36e   :  { %1138 = vmatpush.bf16.msrb.mxu2 %v3351_v39  ;;  %1192 = vmatpush.bf16.msra.mxu0 %v3357_v46 }
 0x36f   :  { %v3360_v48 = vadd.f32 %v1016_v24, %v1014_v22  ;;  %v999_v22 = vld [vmem:[#allocation9 + $0x30] sm:$0xff] }
 0x370   :  { %v846_v57 = vpop.f32.mrf.mxu1  ;;  %v861_v53 = vpop.f32.mrf.mxu2 }
 0x371   :  { %v860_v20 = vadd.f32 %v859_v16, %v846_v57  ;;  %v1018_v27 = vmul.f32 1.8, %v3360_v48  ;;  %v1020_v53 = vmul.f32 %v2941_v37, %v3342_v15  ;;  %v3498_v37 = vld [vmem:[%s4383_s5 + $0x1] ss:$0 sm:$0xff] }
 0x372   :  { %1139 = vmatpush.bf16.msrb.mxu2 %v3363_v55  ;;  %1193 = vmatpush.bf16.msra.mxu0 %v3369_v29  ;;  %v1110_v15 = vmul.f32 %v3498_v37, %v3360_v48 }
 0x373   :  { %v863_v61 = vadd.f32 %v3049_v47, %v860_v20  ;;  %v3375_v51 = vadd.f32 0.01, %v1018_v27 }
 0x375   :  { %v871_v54 = vadd.f32 %v870_v42, %v863_v61  ;;  %v3380_v1 = vmul.f32 %v2198_v19, %v3375_v51  ;;  %v3478_v19 = vld [vmem:[#allocation14 + $0x8] sm:$0xff] }
 0x376   :  { %v793_v59 = vpop.f32.mrf.mxu3  ;;  %1140 = vmatpush.bf16.msrb.mxu2 %v3382_v35  ;;  %1194 = vmatpush.bf16.msra.mxu0 %v3388_v26 }
 0x377   :  { %v3391_v33 = vsub.f32 %v871_v54, %v872_v3  ;;  %v797_v45 = vadd.f32 %v793_v59, %v783_v4 }
 0x378   :  { %v848_v7 = vpop.f32.mrf.mxu1 }
 0x379   :  { %v897_v2 = vpack.c.bf16 %v3391_v33, %v3391_v33  ;;  %v3396_v49 = vadd.f32 %v3134_v31, %v797_v45  ;;  %v874_v38 = vsub.f32 %v3391_v33, %v3319_v13 }
 0x37a   :  { %1141 = vmatpush.bf16.msrb.mxu2 %v3400_v5  ;;  %1195 = vmatpush.bf16.msra.mxu0 %v3406_v10 }
 0x37b   :  { %899 = vst [vmem:[#allocation21 + $0x10] sm:$0xf] %v897_v2  ;;  %vm875_vm5 = vcmp.gt.f32.partialorder %v874_v38, 0.0 }
 0x37c   :  { %805 = vst.msk [vmem:[#allocation23 + $0x18] sm:$0xff] %vm138_vm6, %v3396_v49  ;;  %v2193_v41 = vsel %vm875_vm5, 1.0, %v2683_v50  ;;  %vm2194_vm7 = vmpackc.low %vm875_vm5, %vm875_vm5 }
 0x37d   :  { %v878_v44 = vpack.c.bf16 %v2193_v41, %v2193_v41  ;;  %2195 = vmatmul.msk.bf16.vlgmr.msra.gmra.mxu3 %vm2194_vm7, %v2684_v52  ;;  %v962_v13 = vmul.f32 %v3024_v28, %v2193_v41  ;;  %2200 = vmatmul.msk.bf16.vlgmr.msrb.gmra.mxu1 %vm2194_vm7, %v2684_v52 }
 0x37e   :  { %v795_v3 = vpop.f32.mrf.mxu3  ;;  %1142 = vmatpush.bf16.msrb.mxu2 %v3417_v6  ;;  %1196 = vmatpush.bf16.msra.mxu0 %v3423_v9 }
 0x37f   :  { %896 = vst [vmem:[#allocation20 + $0x10] sm:$0xf] %v878_v44  ;;  %v3426_v11 = vadd.f32 %v962_v13, %v960_v8  ;;  %1072 = vmatpush.bf16.msra.mxu3 %v2920_v32  ;;  %1125 = vmatpush.bf16.msrb.mxu1 %v3429_v56  ;;  %v3443_v32 = vld [vmem:[#allocation14 + $0x30] sm:$0xff]  ;;  %v966_v44 = vmul.f32 %v3042_v43, %v3391_v33 }
 0x380   :  { %v879_v3 = vmul.f32 %v3120_v40, %v3396_v49 }
 0x381   :  { %v964_v12 = vmul.f32 1.8, %v3426_v11 }
 0x382   :  { %1143 = vmatpush.bf16.msrb.mxu2 %v2880_v21  ;;  %1197 = vmatpush.bf16.msra.mxu0 %v3437_v14  ;;  %v3451_v21 = vld [vmem:[%s4379_s1 + $0x8] sm:$0xff] }
 0x383   :  { %v3440_v16 = vadd.f32 0.01, %v964_v12  ;;  %1073 = vmatpush.bf16.msra.mxu3 %v2927_v34  ;;  %1126 = vmatpush.bf16.msrb.mxu1 %v3443_v32  ;;  %v3462_v34 = vld [vmem:[%s4379_s1] sm:$0xff] }
 0x385   :  { %v968_v17 = vmul.f32 %v2193_v41, %v3440_v16 }
 0x386   :  { %1144 = vmatpush.bf16.msrb.mxu2 %v2886_v23  ;;  %1198 = vmatpush.bf16.msra.mxu0 %v3451_v21  ;;  %v3466_v23 = vld [vmem:[#allocation14 + $0x20] sm:$0xff] }
 0x387   :  { %1074 = vmatpush.bf16.msra.mxu3 %v2935_v36  ;;  %1127 = vmatpush.bf16.msrb.mxu1 %v3455_v18  ;;  %v3470_v36 = vld [vmem:[#allocation14 + $0x18] sm:$0xff] }
 0x38a   :  { %1145 = vmatpush.bf16.msrb.mxu2 %v2892_v25  ;;  %1199 = vmatpush.bf16.msra.mxu0 %v3462_v34  ;;  %v3474_v25 = vld [vmem:[#allocation14 + $0x10] sm:$0xff] }
 0x38b   :  { %1075 = vmatpush.bf16.msra.mxu3 %v2992_v58  ;;  %1128 = vmatpush.bf16.msrb.mxu1 %v3466_v23  ;;  %v3482_v58 = vld [vmem:[#allocation14] sm:$0xff] }
 0x38f   :  { %1076 = vmatpush.bf16.msra.mxu3 %v2998_v60  ;;  %1129 = vmatpush.bf16.msrb.mxu1 %v3470_v36 }
 0x393   :  { %1077 = vmatpush.bf16.msra.mxu3 %v3004_v62  ;;  %1130 = vmatpush.bf16.msrb.mxu1 %v3474_v25 }
 0x397   :  { %1078 = vmatpush.bf16.msra.mxu3 %v3010_v63  ;;  %1131 = vmatpush.bf16.msrb.mxu1 %v3478_v19 }
 0x39b   :  { %1079 = vmatpush.bf16.msra.mxu3 %v3016_v0  ;;  %1132 = vmatpush.bf16.msrb.mxu1 %v3482_v58 }
 0x3ea   :  { %v1009_v24 = vpop.f32.mrf.mxu0 }
 0x3eb   :  { %v1013_v57 = vadd.f32 %v1009_v24, %v999_v22 }
 0x3ed   :  { %v1021_v20 = vadd.f32 %v1020_v53, %v1013_v57  ;;  %v1056_v53 = vmul.f32 %v3029_v30, %v3426_v11  ;;  %v3565_v30 = vld [vmem:[%s4382_s4 + $0x30] sm:$0xff] }
 0x3ef   :  { %v3488_v27 = vsub.f32 %v1021_v20, %v3380_v1 }
 0x3f0   :  { %v955_v61 = vpop.f32.mrf.mxu2 }
 0x3f1   :  { %v1024_v42 = vsub.f32 %v3488_v27, %v3375_v51  ;;  %v3505_v51 = vld [vmem:[%s4383_s5 + $0x2] ss:$0 sm:$0xff] }
 0x3f2   :  { %v1011_v54 = vpop.f32.mrf.mxu0 }
 0x3f3   :  { %vm1025_vm8 = vcmp.gt.f32.partialorder %v1024_v42, 0.0  ;;  %v3557_v54 = vld [vmem:[#allocation12 + $0x10] sm:$0xff] }
 0x3f4   :  { %vm2211_vm9 = vmpackc.low %vm1025_vm8, %vm1025_vm8  ;;  %v2208_v4 = vsel %vm1025_vm8, 1.0, %v2683_v50 }
 0x3f5   :  { %2212 = vmatmul.msk.bf16.vlgmr.msra.gmra.mxu2 %vm2211_vm9, %v2684_v52  ;;  %2217 = vmatmul.msk.bf16.vlgmr.msrb.gmra.mxu0 %vm2211_vm9, %v2684_v52  ;;  %v1112_v1 = vmul.f32 %v3505_v51, %v2208_v4 }
 0x3f6   :  { %1234 = vmatpush.bf16.msra.mxu2 %v3351_v39  ;;  %1288 = vmatpush.bf16.msrb.mxu0 %v3357_v46 }
 0x3f7   :  { %v3510_v59 = vadd.f32 %v1112_v1, %v1110_v15  ;;  %v3579_v1 = vld [vmem:[%s4382_s4 + $0x28] sm:$0xff] }
 0x3f8   :  { %v957_v45 = vpop.f32.mrf.mxu2 }
 0x3f9   :  { %v1114_v7 = vmul.f32 1.8, %v3510_v59  ;;  %v3583_v45 = vld [vmem:[#allocation12] sm:$0xff] }
 0x3fa   :  { %v942_v2 = vpop.f32.mrf.mxu1  ;;  %1235 = vmatpush.bf16.msra.mxu2 %v3363_v55  ;;  %1289 = vmatpush.bf16.msrb.mxu0 %v3369_v29 }
 0x3fb   :  { %v956_v48 = vadd.f32 %v955_v61, %v942_v2  ;;  %v3515_v38 = vadd.f32 0.01, %v1114_v7  ;;  %v3551_v61 = vld [vmem:[%s4382_s4 + $0x38] sm:$0xff]  ;;  %v3590_v7 = vld [vmem:[%s4382_s4 + $0x20] sm:$0xff]  ;;  %v1095_v2 = vld [vmem:[#allocation9 + $0x38] sm:$0xff] }
 0x3fd   :  { %v959_v41 = vadd.f32 %v3049_v47, %v956_v48  ;;  %v3521_v8 = vmul.f32 %v2208_v4, %v3515_v38  ;;  %v3571_v4 = vld [vmem:[#allocation12 + $0x8] sm:$0xff] }
 0x3fe   :  { %1236 = vmatpush.bf16.msra.mxu2 %v3382_v35  ;;  %1290 = vmatpush.bf16.msrb.mxu0 %v3388_v26 }
 0x3ff   :  { %v967_v13 = vadd.f32 %v966_v44, %v959_v41 }
 0x400   :  { %v889_v12 = vpop.f32.mrf.mxu3 }
 0x401   :  { %v3527_v22 = vsub.f32 %v967_v13, %v968_v17  ;;  %v893_v24 = vadd.f32 %v889_v12, %v879_v3 }
 0x402   :  { %v944_v57 = vpop.f32.mrf.mxu1  ;;  %1237 = vmatpush.bf16.msra.mxu2 %v3400_v5  ;;  %1291 = vmatpush.bf16.msrb.mxu0 %v3406_v10 }
 0x403   :  { %v993_v43 = vpack.c.bf16 %v3527_v22, %v3527_v22  ;;  %v3534_v47 = vadd.f32 %v3134_v31, %v893_v24  ;;  %v970_v33 = vsub.f32 %v3527_v22, %v3440_v16 }
 0x405   :  { %995 = vst [vmem:[#allocation21 + $0x14] sm:$0xf] %v993_v43  ;;  %vm971_vm10 = vcmp.gt.f32.partialorder %v970_v33, 0.0 }
 0x406   :  { %901 = vst.msk [vmem:[#allocation23 + $0x20] sm:$0xff] %vm138_vm6, %v3534_v47  ;;  %v2203_v49 = vsel %vm971_vm10, 1.0, %v2683_v50  ;;  %vm2204_vm11 = vmpackc.low %vm971_vm10, %vm971_vm10  ;;  %1238 = vmatpush.bf16.msra.mxu2 %v3417_v6  ;;  %1292 = vmatpush.bf16.msrb.mxu0 %v3423_v9 }
 0x407   :  { %v974_v17 = vpack.c.bf16 %v2203_v49, %v2203_v49  ;;  %2205 = vmatmul.msk.bf16.vlgmr.msrb.gmra.mxu3 %vm2204_vm11, %v2684_v52  ;;  %v1058_v16 = vmul.f32 %v3024_v28, %v2203_v49  ;;  %2210 = vmatmul.msk.bf16.vlgmr.msra.gmra.mxu1 %vm2204_vm11, %v2684_v52 }
 0x408   :  { %v891_v20 = vpop.f32.mrf.mxu3  ;;  %1168 = vmatpush.bf16.msrb.mxu3 %v3551_v61  ;;  %1221 = vmatpush.bf16.msra.mxu1 %v3429_v56 }
 0x409   :  { %992 = vst [vmem:[#allocation20 + $0x14] sm:$0xf] %v974_v17  ;;  %v3555_v42 = vadd.f32 %v1058_v16, %v1056_v53  ;;  %v3637_v17 = vld [vmem:[%s4383_s5 + $0x6] ss:$0 sm:$0xff]  ;;  %v3643_v16 = vld [vmem:[%s4383_s5 + $0x3] ss:$0 sm:$0xff] }
 0x40a   :  { %1239 = vmatpush.bf16.msra.mxu2 %v3557_v54  ;;  %1293 = vmatpush.bf16.msrb.mxu0 %v3437_v14  ;;  %v1062_v20 = vmul.f32 %v3643_v16, %v3527_v22 }
 0x40b   :  { %v1060_v28 = vmul.f32 1.8, %v3555_v42 }
 0x40c   :  { %1169 = vmatpush.bf16.msrb.mxu3 %v3565_v30  ;;  %1222 = vmatpush.bf16.msra.mxu1 %v3443_v32 }
 0x40d   :  { %v3569_v11 = vadd.f32 0.01, %v1060_v28 }
 0x40e   :  { %1240 = vmatpush.bf16.msra.mxu2 %v3571_v4  ;;  %1294 = vmatpush.bf16.msrb.mxu0 %v3451_v21 }
 0x40f   :  { %v1064_v15 = vmul.f32 %v2203_v49, %v3569_v11 }
 0x410   :  { %1170 = vmatpush.bf16.msrb.mxu3 %v3579_v1  ;;  %1223 = vmatpush.bf16.msra.mxu1 %v3455_v18 }
 0x412   :  { %1241 = vmatpush.bf16.msra.mxu2 %v3583_v45  ;;  %1295 = vmatpush.bf16.msrb.mxu0 %v3462_v34 }
 0x414   :  { %1171 = vmatpush.bf16.msrb.mxu3 %v3590_v7  ;;  %1224 = vmatpush.bf16.msra.mxu1 %v3466_v23 }
 0x418   :  { %1172 = vmatpush.bf16.msrb.mxu3 %v2998_v60  ;;  %1225 = vmatpush.bf16.msra.mxu1 %v3470_v36  ;;  %v3605_v60 = vld [vmem:[%s4383_s5] ss:$0 sm:$0xff] }
 0x41c   :  { %1173 = vmatpush.bf16.msrb.mxu3 %v3004_v62  ;;  %1226 = vmatpush.bf16.msra.mxu1 %v3474_v25  ;;  %v1116_v62 = vmul.f32 %v3605_v60, %v3488_v27  ;;  %v1206_v27 = vmul.f32 %v3498_v37, %v3510_v59 }
 0x420   :  { %1174 = vmatpush.bf16.msrb.mxu3 %v3010_v63  ;;  %1227 = vmatpush.bf16.msra.mxu1 %v3478_v19 }
 0x424   :  { %1175 = vmatpush.bf16.msrb.mxu3 %v3016_v0  ;;  %1228 = vmatpush.bf16.msra.mxu1 %v3482_v58 }
 0x472   :  { %v1105_v48 = vpop.f32.mrf.mxu0 }
 0x473   :  { %v1109_v41 = vadd.f32 %v1105_v48, %v1095_v2  ;;  %v975_v2 = vmul.f32 %v3120_v40, %v3534_v47 }
 0x475   :  { %v1117_v44 = vadd.f32 %v1116_v62, %v1109_v41 }
 0x477   :  { %v3610_v63 = vsub.f32 %v1117_v44, %v3521_v8 }
 0x478   :  { %v1051_v13 = vpop.f32.mrf.mxu2 }
 0x479   :  { %v1120_v0 = vsub.f32 %v3610_v63, %v3515_v38 }
 0x47a   :  { %v1107_v3 = vpop.f32.mrf.mxu0 }
 0x47b   :  { %vm1121_vm12 = vcmp.gt.f32.partialorder %v1120_v0, 0.0  ;;  %v3676_v3 = vld [vmem:[%s4383_s5 + $0x5] ss:$0 sm:$0xff] }
 0x47c   :  { %vm2221_vm13 = vmpackc.low %vm1121_vm12, %vm1121_vm12  ;;  %v2218_v12 = vsel %vm1121_vm12, 1.0, %v2683_v50 }
 0x47d   :  { %2222 = vmatmul.msk.bf16.vlgmr.msrb.gmra.mxu2 %vm2221_vm13, %v2684_v52  ;;  %2227 = vmatmul.msk.bf16.vlgmr.msra.gmra.mxu0 %vm2221_vm13, %v2684_v52  ;;  %v1208_v24 = vmul.f32 %v3505_v51, %v2218_v12 }
 0x47e   :  { %1330 = vmatpush.bf16.msrb.mxu2 %v3351_v39  ;;  %1384 = vmatpush.bf16.msra.mxu0 %v3357_v46 }
 0x47f   :  { %v3622_v8 = vadd.f32 %v1208_v24, %v1206_v27 }
 0x480   :  { %v1053_v38 = vpop.f32.mrf.mxu2 }
 0x481   :  { %v1210_v57 = vmul.f32 1.8, %v3622_v8 }
 0x482   :  { %1331 = vmatpush.bf16.msrb.mxu2 %v3363_v55  ;;  %1385 = vmatpush.bf16.msra.mxu0 %v3369_v29 }
 0x483   :  { %v3627_v43 = vadd.f32 0.01, %v1210_v57 }
 0x484   :  { %v1038_v33 = vpop.f32.mrf.mxu1 }
 0x485   :  { %v1052_v49 = vadd.f32 %v1051_v13, %v1038_v33  ;;  %v3630_v59 = vmul.f32 %v2218_v12, %v3627_v43  ;;  %v3703_v33 = vld [vmem:[%s4382_s4 + $0x18] sm:$0xff] }
 0x486   :  { %1332 = vmatpush.bf16.msrb.mxu2 %v3382_v35  ;;  %1386 = vmatpush.bf16.msra.mxu0 %v3388_v26 }
 0x487   :  { %v1055_v53 = vadd.f32 %v3637_v17, %v1052_v49  ;;  %v3710_v49 = vld [vmem:[%s4382_s4 + $0x10] sm:$0xff] }
 0x489   :  { %v1063_v28 = vadd.f32 %v1062_v20, %v1055_v53  ;;  %v3717_v53 = vld [vmem:[%s4382_s4 + $0x8] sm:$0xff]  ;;  %v3724_v20 = vld [vmem:[%s4382_s4] sm:$0xff] }
 0x48a   :  { %v985_v48 = vpop.f32.mrf.mxu3  ;;  %1333 = vmatpush.bf16.msrb.mxu2 %v3400_v5  ;;  %1387 = vmatpush.bf16.msra.mxu0 %v3406_v10 }
 0x48b   :  { %v3651_v41 = vsub.f32 %v1063_v28, %v1064_v15  ;;  %v989_v62 = vadd.f32 %v985_v48, %v975_v2  ;;  %v3669_v15 = vld [vmem:[%s4383_s5 + $0x4] ss:$0 sm:$0xff]  ;;  %v1191_v28 = vld [vmem:[#allocation9 + $0x40] sm:$0xff] }
 0x48c   :  { %v1040_v44 = vpop.f32.mrf.mxu1 }
 0x48d   :  { %v1089_v13 = vpack.c.bf16 %v3651_v41, %v3651_v41  ;;  %v3656_v0 = vadd.f32 %v3134_v31, %v989_v62  ;;  %v1066_v22 = vsub.f32 %v3651_v41, %v3569_v11  ;;  %v1152_v11 = vmul.f32 %v3669_v15, %v3555_v42 }
 0x48e   :  { %1334 = vmatpush.bf16.msrb.mxu2 %v3417_v6  ;;  %1388 = vmatpush.bf16.msra.mxu0 %v3423_v9  ;;  %v1212_v62 = vmul.f32 %v3605_v60, %v3610_v63  ;;  %v1302_v63 = vmul.f32 %v3498_v37, %v3622_v8 }
 0x48f   :  { %1091 = vst [vmem:[#allocation21 + $0x18] sm:$0xf] %v1089_v13  ;;  %vm1067_vm14 = vcmp.gt.f32.partialorder %v1066_v22, 0.0 }
 0x490   :  { %997 = vst.msk [vmem:[#allocation23 + $0x28] sm:$0xff] %vm138_vm6, %v3656_v0  ;;  %v2213_v40 = vsel %vm1067_vm14, 1.0, %v2683_v50  ;;  %vm2214_vm15 = vmpackc.low %vm1067_vm14, %vm1067_vm14 }
 0x491   :  { %v1070_v47 = vpack.c.bf16 %v2213_v40, %v2213_v40  ;;  %2215 = vmatmul.msk.bf16.vlgmr.msra.gmra.mxu3 %vm2214_vm15, %v2684_v52  ;;  %v1154_v12 = vmul.f32 %v3676_v3, %v2213_v40  ;;  %2220 = vmatmul.msk.bf16.vlgmr.msrb.gmra.mxu1 %vm2214_vm15, %v2684_v52 }
 0x492   :  { %v987_v27 = vpop.f32.mrf.mxu3  ;;  %1335 = vmatpush.bf16.msrb.mxu2 %v3557_v54  ;;  %1389 = vmatpush.bf16.msra.mxu0 %v3437_v14 }
 0x493   :  { %1088 = vst [vmem:[#allocation20 + $0x18] sm:$0xf] %v1070_v47  ;;  %v3682_v24 = vadd.f32 %v1154_v12, %v1152_v11  ;;  %1264 = vmatpush.bf16.msra.mxu3 %v3551_v61  ;;  %1317 = vmatpush.bf16.msrb.mxu1 %v3429_v56 }
 0x495   :  { %v1156_v42 = vmul.f32 1.8, %v3682_v24 }
 0x496   :  { %1336 = vmatpush.bf16.msrb.mxu2 %v3571_v4  ;;  %1390 = vmatpush.bf16.msra.mxu0 %v3451_v21 }
 0x497   :  { %v3689_v38 = vadd.f32 0.01, %v1156_v42  ;;  %1265 = vmatpush.bf16.msra.mxu3 %v3565_v30  ;;  %1318 = vmatpush.bf16.msrb.mxu1 %v3443_v32 }
 0x499   :  { %v1160_v57 = vmul.f32 %v2213_v40, %v3689_v38 }
 0x49a   :  { %1337 = vmatpush.bf16.msrb.mxu2 %v3583_v45  ;;  %1391 = vmatpush.bf16.msra.mxu0 %v3462_v34 }
 0x49b   :  { %1266 = vmatpush.bf16.msra.mxu3 %v3579_v1  ;;  %1319 = vmatpush.bf16.msrb.mxu1 %v3455_v18 }
 0x49f   :  { %1267 = vmatpush.bf16.msra.mxu3 %v3590_v7  ;;  %1320 = vmatpush.bf16.msrb.mxu1 %v3466_v23 }
 0x4a3   :  { %1268 = vmatpush.bf16.msra.mxu3 %v3703_v33  ;;  %1321 = vmatpush.bf16.msrb.mxu1 %v3470_v36 }
 0x4a7   :  { %1269 = vmatpush.bf16.msra.mxu3 %v3710_v49  ;;  %1322 = vmatpush.bf16.msrb.mxu1 %v3474_v25 }
 0x4ab   :  { %1270 = vmatpush.bf16.msra.mxu3 %v3717_v53  ;;  %1323 = vmatpush.bf16.msrb.mxu1 %v3478_v19 }
 0x4af   :  { %1271 = vmatpush.bf16.msra.mxu3 %v3724_v20  ;;  %1324 = vmatpush.bf16.msrb.mxu1 %v3482_v58 }
 0x4fa   :  { %v1201_v2 = vpop.f32.mrf.mxu0 }
 0x4fb   :  { %v1205_v48 = vadd.f32 %v1201_v2, %v1191_v28 }
 0x4fd   :  { %v1213_v44 = vadd.f32 %v1212_v62, %v1205_v48  ;;  %v1158_v62 = vmul.f32 %v3643_v16, %v3651_v41 }
 0x4ff   :  { %v3731_v13 = vsub.f32 %v1213_v44, %v3630_v59 }
 0x500   :  { %v1147_v22 = vpop.f32.mrf.mxu2 }
 0x501   :  { %v1216_v40 = vsub.f32 %v3731_v13, %v3627_v43 }
 0x502   :  { %v1203_v47 = vpop.f32.mrf.mxu0 }
 0x503   :  { %vm1217_vm0 = vcmp.gt.f32.partialorder %v1216_v40, 0.0  ;;  %v3760_v40 = vld [vmem:[#allocation15] ss:$0 sm:$0xff] }
 0x504   :  { %vm2231_vm1 = vmpackc.low %vm1217_vm0, %vm1217_vm0  ;;  %v2228_v11 = vsel %vm1217_vm0, 1.0, %v2683_v50  ;;  %v1071_v47 = vmul.f32 %v3760_v40, %v3656_v0 }
 0x505   :  { %2232 = vmatmul.msk.bf16.vlgmr.msra.gmra.mxu2 %vm2231_vm1, %v2684_v52  ;;  %2237 = vmatmul.msk.bf16.vlgmr.msrb.gmra.mxu0 %vm2231_vm1, %v2684_v52  ;;  %v1304_v12 = vmul.f32 %v3505_v51, %v2228_v11 }
 0x506   :  { %1426 = vmatpush.bf16.msra.mxu2 %v3351_v39  ;;  %1480 = vmatpush.bf16.msrb.mxu0 %v3357_v46 }
 0x507   :  { %v3743_v59 = vadd.f32 %v1304_v12, %v1302_v63 }
 0x508   :  { %v1149_v43 = vpop.f32.mrf.mxu2 }
 0x509   :  { %v1306_v27 = vmul.f32 1.8, %v3743_v59 }
 0x50a   :  { %1427 = vmatpush.bf16.msra.mxu2 %v3363_v55  ;;  %1481 = vmatpush.bf16.msrb.mxu0 %v3369_v29 }
 0x50b   :  { %v3748_v42 = vadd.f32 0.01, %v1306_v27 }
 0x50d   :  { %v3751_v28 = vmul.f32 %v2228_v11, %v3748_v42 }
 0x50e   :  { %v1134_v8 = vpop.f32.mrf.mxu1  ;;  %1428 = vmatpush.bf16.msra.mxu2 %v3382_v35  ;;  %1482 = vmatpush.bf16.msrb.mxu0 %v3388_v26 }
 0x50f   :  { %v1148_v2 = vadd.f32 %v1147_v22, %v1134_v8 }
 0x511   :  { %v1151_v48 = vadd.f32 %v3637_v17, %v1148_v2 }
 0x512   :  { %1429 = vmatpush.bf16.msra.mxu2 %v3400_v5  ;;  %1483 = vmatpush.bf16.msrb.mxu0 %v3406_v10 }
 0x513   :  { %v1159_v44 = vadd.f32 %v1158_v62, %v1151_v48 }
 0x514   :  { %v1081_v11 = vpop.f32.mrf.mxu3 }
 0x515   :  { %v3764_v63 = vsub.f32 %v1159_v44, %v1160_v57  ;;  %v1085_v12 = vadd.f32 %v1081_v11, %v1071_v47  ;;  %v1287_v44 = vld [vmem:[#allocation9 + $0x48] sm:$0xff] }
 0x516   :  { %v1136_v22 = vpop.f32.mrf.mxu1  ;;  %1430 = vmatpush.bf16.msra.mxu2 %v3417_v6  ;;  %1484 = vmatpush.bf16.msrb.mxu0 %v3423_v9 }
 0x517   :  { %v1185_v41 = vpack.c.bf16 %v3764_v63, %v3764_v63  ;;  %v3771_v43 = vadd.f32 %v3134_v31, %v1085_v12  ;;  %v1162_v27 = vsub.f32 %v3764_v63, %v3689_v38  ;;  %v1248_v31 = vmul.f32 %v3669_v15, %v3682_v24 }
 0x518   :  { %v1308_v12 = vmul.f32 %v3605_v60, %v3731_v13  ;;  %v1398_v13 = vmul.f32 %v3498_v37, %v3743_v59 }
 0x519   :  { %1187 = vst [vmem:[#allocation21 + $0x1c] sm:$0xf] %v1185_v41  ;;  %vm1163_vm2 = vcmp.gt.f32.partialorder %v1162_v27, 0.0 }
 0x51a   :  { %1093 = vst.msk [vmem:[#allocation23 + $0x30] sm:$0xff] %vm138_vm6, %v3771_v43  ;;  %v2223_v0 = vsel %vm1163_vm2, 1.0, %v2683_v50  ;;  %vm2224_vm3 = vmpackc.low %vm1163_vm2, %vm1163_vm2  ;;  %1431 = vmatpush.bf16.msra.mxu2 %v3557_v54  ;;  %1485 = vmatpush.bf16.msrb.mxu0 %v3437_v14 }
 0x51b   :  { %v1166_v57 = vpack.c.bf16 %v2223_v0, %v2223_v0  ;;  %2225 = vmatmul.msk.bf16.vlgmr.msrb.gmra.mxu3 %vm2224_vm3, %v2684_v52  ;;  %v1250_v38 = vmul.f32 %v3676_v3, %v2223_v0  ;;  %2230 = vmatmul.msk.bf16.vlgmr.msra.gmra.mxu1 %vm2224_vm3, %v2684_v52 }
 0x51c   :  { %v1083_v8 = vpop.f32.mrf.mxu3  ;;  %1360 = vmatpush.bf16.msrb.mxu3 %v3551_v61  ;;  %1413 = vmatpush.bf16.msra.mxu1 %v3429_v56 }
 0x51d   :  { %1184 = vst [vmem:[#allocation20 + $0x1c] sm:$0xf] %v1166_v57  ;;  %v3787_v2 = vadd.f32 %v1250_v38, %v1248_v31 }
 0x51e   :  { %1432 = vmatpush.bf16.msra.mxu2 %v3571_v4  ;;  %1486 = vmatpush.bf16.msrb.mxu0 %v3451_v21 }
 0x51f   :  { %v1252_v48 = vmul.f32 1.8, %v3787_v2 }
 0x520   :  { %1361 = vmatpush.bf16.msrb.mxu3 %v3565_v30  ;;  %1414 = vmatpush.bf16.msra.mxu1 %v3443_v32 }
 0x521   :  { %v3794_v24 = vadd.f32 0.01, %v1252_v48 }
 0x522   :  { %1433 = vmatpush.bf16.msra.mxu2 %v3583_v45  ;;  %1487 = vmatpush.bf16.msrb.mxu0 %v3462_v34 }
 0x523   :  { %v1256_v62 = vmul.f32 %v2223_v0, %v3794_v24 }
 0x524   :  { %1362 = vmatpush.bf16.msrb.mxu3 %v3579_v1  ;;  %1415 = vmatpush.bf16.msra.mxu1 %v3455_v18 }
 0x528   :  { %1363 = vmatpush.bf16.msrb.mxu3 %v3590_v7  ;;  %1416 = vmatpush.bf16.msra.mxu1 %v3466_v23 }
 0x52c   :  { %1364 = vmatpush.bf16.msrb.mxu3 %v3703_v33  ;;  %1417 = vmatpush.bf16.msra.mxu1 %v3470_v36 }
 0x530   :  { %1365 = vmatpush.bf16.msrb.mxu3 %v3710_v49  ;;  %1418 = vmatpush.bf16.msra.mxu1 %v3474_v25 }
 0x534   :  { %1366 = vmatpush.bf16.msrb.mxu3 %v3717_v53  ;;  %1419 = vmatpush.bf16.msra.mxu1 %v3478_v19 }
 0x538   :  { %1367 = vmatpush.bf16.msrb.mxu3 %v3724_v20  ;;  %1420 = vmatpush.bf16.msra.mxu1 %v3482_v58 }
 0x582   :  { %v1297_v47 = vpop.f32.mrf.mxu0 }
 0x583   :  { %v1301_v11 = vadd.f32 %v1297_v47, %v1287_v44 }
 0x585   :  { %v1309_v22 = vadd.f32 %v1308_v12, %v1301_v11  ;;  %v1254_v12 = vmul.f32 %v3643_v16, %v3764_v63 }
 0x587   :  { %v3814_v41 = vsub.f32 %v1309_v22, %v3751_v28 }
 0x588   :  { %v1243_v27 = vpop.f32.mrf.mxu2 }
 0x589   :  { %v1312_v0 = vsub.f32 %v3814_v41, %v3748_v42 }
 0x58a   :  { %v1299_v57 = vpop.f32.mrf.mxu0 }
 0x58b   :  { %vm1313_vm4 = vcmp.gt.f32.partialorder %v1312_v0, 0.0  ;;  %v1167_v0 = vmul.f32 %v3760_v40, %v3771_v43 }
 0x58c   :  { %vm2241_vm5 = vmpackc.low %vm1313_vm4, %vm1313_vm4  ;;  %v2238_v31 = vsel %vm1313_vm4, 1.0, %v2683_v50 }
 0x58d   :  { %2242 = vmatmul.msk.bf16.vlgmr.msrb.gmra.mxu2 %vm2241_vm5, %v2684_v52  ;;  %2247 = vmatmul.msk.bf16.vlgmr.msra.gmra.mxu0 %vm2241_vm5, %v2684_v52  ;;  %v1400_v38 = vmul.f32 %v3505_v51, %v2238_v31 }
 0x58e   :  { %1522 = vmatpush.bf16.msrb.mxu2 %v3351_v39  ;;  %1576 = vmatpush.bf16.msra.mxu0 %v3357_v46 }
 0x58f   :  { %v3826_v28 = vadd.f32 %v1400_v38, %v1398_v13 }
 0x590   :  { %v1245_v42 = vpop.f32.mrf.mxu2 }
 0x591   :  { %v1402_v8 = vmul.f32 1.8, %v3826_v28  ;;  %v3851_v42 = vld [vmem:[#allocation15 + $0x1] ss:$0 sm:$0xff] }
 0x592   :  { %1523 = vmatpush.bf16.msrb.mxu2 %v3363_v55  ;;  %1577 = vmatpush.bf16.msra.mxu0 %v3369_v29 }
 0x593   :  { %v3831_v48 = vadd.f32 0.01, %v1402_v8 }
 0x595   :  { %v3834_v44 = vmul.f32 %v2238_v31, %v3831_v48 }
 0x596   :  { %1524 = vmatpush.bf16.msrb.mxu2 %v3382_v35  ;;  %1578 = vmatpush.bf16.msra.mxu0 %v3388_v26 }
 0x598   :  { %v1230_v59 = vpop.f32.mrf.mxu1 }
 0x599   :  { %v1244_v47 = vadd.f32 %v1243_v27, %v1230_v59  ;;  %v1344_v59 = vmul.f32 %v3669_v15, %v3787_v2 }
 0x59a   :  { %1525 = vmatpush.bf16.msrb.mxu2 %v3400_v5  ;;  %1579 = vmatpush.bf16.msra.mxu0 %v3406_v10 }
 0x59b   :  { %v1247_v11 = vadd.f32 %v3637_v17, %v1244_v47 }
 0x59d   :  { %v1255_v22 = vadd.f32 %v1254_v12, %v1247_v11 }
 0x59e   :  { %v1177_v57 = vpop.f32.mrf.mxu3  ;;  %1526 = vmatpush.bf16.msrb.mxu2 %v3417_v6  ;;  %1580 = vmatpush.bf16.msra.mxu0 %v3423_v9 }
 0x59f   :  { %v3847_v31 = vsub.f32 %v1255_v22, %v1256_v62  ;;  %v1181_v27 = vadd.f32 %v1177_v57, %v1167_v0  ;;  %v1383_v0 = vld [vmem:[#allocation9 + $0x50] sm:$0xff] }
 0x5a0   :  { %v1232_v13 = vpop.f32.mrf.mxu1 }
 0x5a1   :  { %v1281_v38 = vpack.c.bf16 %v3847_v31, %v3847_v31  ;;  %v3854_v63 = vadd.f32 %v3851_v42, %v1181_v27  ;;  %v1258_v43 = vsub.f32 %v3847_v31, %v3794_v24  ;;  %v1404_v13 = vmul.f32 %v3605_v60, %v3814_v41 }
 0x5a2   :  { %1527 = vmatpush.bf16.msrb.mxu2 %v3557_v54  ;;  %1581 = vmatpush.bf16.msra.mxu0 %v3437_v14  ;;  %v1494_v41 = vmul.f32 %v3498_v37, %v3826_v28 }
 0x5a3   :  { %1283 = vst [vmem:[#allocation21 + $0x20] sm:$0xf] %v1281_v38  ;;  %vm1259_vm7 = vcmp.gt.f32.partialorder %v1258_v43, 0.0 }
 0x5a4   :  { %1189 = vst.msk [vmem:[#allocation23 + $0x38] sm:$0xff] %vm138_vm6, %v3854_v63  ;;  %v2233_v62 = vsel %vm1259_vm7, 1.0, %v2683_v50  ;;  %vm2234_vm8 = vmpackc.low %vm1259_vm7, %vm1259_vm7 }
 0x5a5   :  { %v1262_v8 = vpack.c.bf16 %v2233_v62, %v2233_v62  ;;  %2235 = vmatmul.msk.bf16.vlgmr.msra.gmra.mxu3 %vm2234_vm8, %v2684_v52  ;;  %v1346_v24 = vmul.f32 %v3676_v3, %v2233_v62  ;;  %2240 = vmatmul.msk.bf16.vlgmr.msrb.gmra.mxu1 %vm2234_vm8, %v2684_v52 }
 0x5a6   :  { %v1179_v47 = vpop.f32.mrf.mxu3  ;;  %1528 = vmatpush.bf16.msrb.mxu2 %v3571_v4  ;;  %1582 = vmatpush.bf16.msra.mxu0 %v3451_v21 }
 0x5a7   :  { %1280 = vst [vmem:[#allocation20 + $0x20] sm:$0xf] %v1262_v8  ;;  %v3870_v11 = vadd.f32 %v1346_v24, %v1344_v59  ;;  %1456 = vmatpush.bf16.msra.mxu3 %v3551_v61  ;;  %1509 = vmatpush.bf16.msrb.mxu1 %v3429_v56 }
 0x5a9   :  { %v1348_v12 = vmul.f32 1.8, %v3870_v11 }
 0x5aa   :  { %1529 = vmatpush.bf16.msrb.mxu2 %v3583_v45  ;;  %1583 = vmatpush.bf16.msra.mxu0 %v3462_v34 }
 0x5ab   :  { %v3877_v2 = vadd.f32 0.01, %v1348_v12  ;;  %1457 = vmatpush.bf16.msra.mxu3 %v3565_v30  ;;  %1510 = vmatpush.bf16.msrb.mxu1 %v3443_v32 }
 0x5ad   :  { %v1352_v22 = vmul.f32 %v2233_v62, %v3877_v2 }
 0x5af   :  { %1458 = vmatpush.bf16.msra.mxu3 %v3579_v1  ;;  %1511 = vmatpush.bf16.msrb.mxu1 %v3455_v18 }
 0x5b3   :  { %1459 = vmatpush.bf16.msra.mxu3 %v3590_v7  ;;  %1512 = vmatpush.bf16.msrb.mxu1 %v3466_v23 }
 0x5b7   :  { %1460 = vmatpush.bf16.msra.mxu3 %v3703_v33  ;;  %1513 = vmatpush.bf16.msrb.mxu1 %v3470_v36 }
 0x5bb   :  { %1461 = vmatpush.bf16.msra.mxu3 %v3710_v49  ;;  %1514 = vmatpush.bf16.msrb.mxu1 %v3474_v25 }
 0x5bf   :  { %1462 = vmatpush.bf16.msra.mxu3 %v3717_v53  ;;  %1515 = vmatpush.bf16.msrb.mxu1 %v3478_v19 }
 0x5c3   :  { %1463 = vmatpush.bf16.msra.mxu3 %v3724_v20  ;;  %1516 = vmatpush.bf16.msrb.mxu1 %v3482_v58 }
 0x60a   :  { %v1393_v57 = vpop.f32.mrf.mxu0 }
 0x60b   :  { %v1397_v27 = vadd.f32 %v1393_v57, %v1383_v0 }
 0x60d   :  { %v1405_v38 = vadd.f32 %v1404_v13, %v1397_v27 }
 0x60f   :  { %v3897_v43 = vsub.f32 %v1405_v38, %v3834_v44  ;;  %v1350_v38 = vmul.f32 %v3643_v16, %v3847_v31 }
 0x610   :  { %v1339_v62 = vpop.f32.mrf.mxu2 }
 0x611   :  { %v1408_v8 = vsub.f32 %v3897_v43, %v3831_v48 }
 0x612   :  { %v1395_v59 = vpop.f32.mrf.mxu0 }
 0x613   :  { %vm1409_vm9 = vcmp.gt.f32.partialorder %v1408_v8, 0.0  ;;  %v1263_v59 = vmul.f32 %v3760_v40, %v3854_v63 }
 0x614   :  { %vm2251_vm10 = vmpackc.low %vm1409_vm9, %vm1409_vm9  ;;  %v2248_v24 = vsel %vm1409_vm9, 1.0, %v2683_v50 }
 0x615   :  { %2252 = vmatmul.msk.bf16.vlgmr.msra.gmra.mxu2 %vm2251_vm10, %v2684_v52  ;;  %2257 = vmatmul.msk.bf16.vlgmr.msrb.gmra.mxu0 %vm2251_vm10, %v2684_v52  ;;  %v1496_v47 = vmul.f32 %v3505_v51, %v2248_v24 }
 0x616   :  { %1618 = vmatpush.bf16.msra.mxu2 %v3351_v39  ;;  %1672 = vmatpush.bf16.msrb.mxu0 %v3357_v46 }
 0x617   :  { %v3909_v44 = vadd.f32 %v1496_v47, %v1494_v41 }
 0x618   :  { %v1341_v48 = vpop.f32.mrf.mxu2 }
 0x619   :  { %v1498_v12 = vmul.f32 1.8, %v3909_v44 }
 0x61a   :  { %1619 = vmatpush.bf16.msra.mxu2 %v3363_v55  ;;  %1673 = vmatpush.bf16.msrb.mxu0 %v3369_v29 }
 0x61b   :  { %v3914_v0 = vadd.f32 0.01, %v1498_v12 }
 0x61d   :  { %v3917_v57 = vmul.f32 %v2248_v24, %v3914_v0 }
 0x61e   :  { %1620 = vmatpush.bf16.msra.mxu2 %v3382_v35  ;;  %1674 = vmatpush.bf16.msrb.mxu0 %v3388_v26 }
 0x622   :  { %v1326_v28 = vpop.f32.mrf.mxu1  ;;  %1621 = vmatpush.bf16.msra.mxu2 %v3400_v5  ;;  %1675 = vmatpush.bf16.msrb.mxu0 %v3406_v10 }
 0x623   :  { %v1340_v27 = vadd.f32 %v1339_v62, %v1326_v28  ;;  %v1440_v28 = vmul.f32 %v3669_v15, %v3870_v11 }
 0x625   :  { %v1343_v13 = vadd.f32 %v3637_v17, %v1340_v27 }
 0x626   :  { %1622 = vmatpush.bf16.msra.mxu2 %v3417_v6  ;;  %1676 = vmatpush.bf16.msrb.mxu0 %v3423_v9 }
 0x627   :  { %v1351_v8 = vadd.f32 %v1350_v38, %v1343_v13 }
 0x628   :  { %v1273_v24 = vpop.f32.mrf.mxu3 }
 0x629   :  { %v3930_v41 = vsub.f32 %v1351_v8, %v1352_v22  ;;  %v1277_v47 = vadd.f32 %v1273_v24, %v1263_v59  ;;  %v1479_v59 = vld [vmem:[#allocation9 + $0x58] sm:$0xff] }
 0x62a   :  { %v1328_v48 = vpop.f32.mrf.mxu1  ;;  %1623 = vmatpush.bf16.msra.mxu2 %v3557_v54  ;;  %1677 = vmatpush.bf16.msrb.mxu0 %v3437_v14 }
 0x62b   :  { %v1377_v31 = vpack.c.bf16 %v3930_v41, %v3930_v41  ;;  %v3937_v62 = vadd.f32 %v3851_v42, %v1277_v47  ;;  %v1354_v12 = vsub.f32 %v3930_v41, %v3877_v2  ;;  %v1500_v48 = vmul.f32 %v3605_v60, %v3897_v43 }
 0x62c   :  { %v1590_v43 = vmul.f32 %v3498_v37, %v3909_v44 }
 0x62d   :  { %1379 = vst [vmem:[#allocation21 + $0x24] sm:$0xf] %v1377_v31  ;;  %vm1355_vm11 = vcmp.gt.f32.partialorder %v1354_v12, 0.0 }
 0x62e   :  { %1285 = vst.msk [vmem:[#allocation23 + $0x40] sm:$0xff] %vm138_vm6, %v3937_v62  ;;  %v2243_v63 = vsel %vm1355_vm11, 1.0, %v2683_v50  ;;  %vm2244_vm12 = vmpackc.low %vm1355_vm11, %vm1355_vm11  ;;  %1624 = vmatpush.bf16.msra.mxu2 %v3571_v4  ;;  %1678 = vmatpush.bf16.msrb.mxu0 %v3451_v21 }
 0x62f   :  { %v1358_v22 = vpack.c.bf16 %v2243_v63, %v2243_v63  ;;  %2245 = vmatmul.msk.bf16.vlgmr.msrb.gmra.mxu3 %vm2244_vm12, %v2684_v52  ;;  %v1442_v2 = vmul.f32 %v3676_v3, %v2243_v63  ;;  %2250 = vmatmul.msk.bf16.vlgmr.msra.gmra.mxu1 %vm2244_vm12, %v2684_v52 }
 0x630   :  { %v1275_v27 = vpop.f32.mrf.mxu3  ;;  %1552 = vmatpush.bf16.msrb.mxu3 %v3551_v61  ;;  %1605 = vmatpush.bf16.msra.mxu1 %v3429_v56 }
 0x631   :  { %1376 = vst [vmem:[#allocation20 + $0x24] sm:$0xf] %v1358_v22  ;;  %v3953_v13 = vadd.f32 %v1442_v2, %v1440_v28 }
 0x632   :  { %1625 = vmatpush.bf16.msra.mxu2 %v3583_v45  ;;  %1679 = vmatpush.bf16.msrb.mxu0 %v3462_v34 }
 0x633   :  { %v1444_v38 = vmul.f32 1.8, %v3953_v13 }
 0x634   :  { %1553 = vmatpush.bf16.msrb.mxu3 %v3565_v30  ;;  %1606 = vmatpush.bf16.msra.mxu1 %v3443_v32 }
 0x635   :  { %v3960_v11 = vadd.f32 0.01, %v1444_v38 }
 0x637   :  { %v1448_v8 = vmul.f32 %v2243_v63, %v3960_v11 }
 0x638   :  { %1554 = vmatpush.bf16.msrb.mxu3 %v3579_v1  ;;  %1607 = vmatpush.bf16.msra.mxu1 %v3455_v18 }
 0x63c   :  { %1555 = vmatpush.bf16.msrb.mxu3 %v3590_v7  ;;  %1608 = vmatpush.bf16.msra.mxu1 %v3466_v23 }
 0x640   :  { %1556 = vmatpush.bf16.msrb.mxu3 %v3703_v33  ;;  %1609 = vmatpush.bf16.msra.mxu1 %v3470_v36 }
 0x644   :  { %1557 = vmatpush.bf16.msrb.mxu3 %v3710_v49  ;;  %1610 = vmatpush.bf16.msra.mxu1 %v3474_v25 }
 0x648   :  { %1558 = vmatpush.bf16.msrb.mxu3 %v3717_v53  ;;  %1611 = vmatpush.bf16.msra.mxu1 %v3478_v19 }
 0x64c   :  { %1559 = vmatpush.bf16.msrb.mxu3 %v3724_v20  ;;  %1612 = vmatpush.bf16.msra.mxu1 %v3482_v58 }
 0x692   :  { %v1489_v24 = vpop.f32.mrf.mxu0 }
 0x693   :  { %v1493_v47 = vadd.f32 %v1489_v24, %v1479_v59 }
 0x695   :  { %v1501_v31 = vadd.f32 %v1500_v48, %v1493_v47 }
 0x697   :  { %v3978_v12 = vsub.f32 %v1501_v31, %v3917_v57 }
 0x698   :  { %v1435_v63 = vpop.f32.mrf.mxu2 }
 0x699   :  { %v1504_v22 = vsub.f32 %v3978_v12, %v3914_v0 }
 0x69a   :  { %v1491_v28 = vpop.f32.mrf.mxu0 }
 0x69b   :  { %vm1505_vm13 = vcmp.gt.f32.partialorder %v1504_v22, 0.0 }
 0x69c   :  { %vm2261_vm14 = vmpackc.low %vm1505_vm13, %vm1505_vm13  ;;  %v2258_v2 = vsel %vm1505_vm13, 1.0, %v2683_v50 }
 0x69d   :  { %2262 = vmatmul.msk.bf16.vlgmr.msrb.gmra.mxu2 %vm2261_vm14, %v2684_v52  ;;  %2267 = vmatmul.msk.bf16.vlgmr.msra.gmra.mxu0 %vm2261_vm14, %v2684_v52  ;;  %v1592_v27 = vmul.f32 %v3505_v51, %v2258_v2 }
 0x69e   :  { %1714 = vmatpush.bf16.msrb.mxu2 %v3351_v39  ;;  %1768 = vmatpush.bf16.msra.mxu0 %v3357_v46 }
 0x69f   :  { %v3990_v57 = vadd.f32 %v1592_v27, %v1590_v43  ;;  %v2405_v43 = vld [vmem:[%s4379_s1 + $0x38] sm:$0xff] }
 0x6a0   :  { %v1437_v0 = vpop.f32.mrf.mxu2 }
 0x6a1   :  { %v1594_v38 = vmul.f32 1.8, %v3990_v57 }
 0x6a2   :  { %1715 = vmatpush.bf16.msrb.mxu2 %v3363_v55  ;;  %1769 = vmatpush.bf16.msra.mxu0 %v3369_v29  ;;  %v1446_v29 = vmul.f32 %v3643_v16, %v3930_v41 }
 0x6a3   :  { %v3995_v59 = vadd.f32 0.01, %v1594_v38 }
 0x6a5   :  { %v3998_v24 = vmul.f32 %v2258_v2, %v3995_v59  ;;  %v4071_v2 = vld [vmem:[#allocation12 + $0x38] sm:$0xff] }
 0x6a6   :  { %1716 = vmatpush.bf16.msrb.mxu2 %v3382_v35  ;;  %1770 = vmatpush.bf16.msra.mxu0 %v3388_v26  ;;  %v1359_v35 = vmul.f32 %v3760_v40, %v3937_v62 }
 0x6aa   :  { %1717 = vmatpush.bf16.msrb.mxu2 %v3400_v5  ;;  %1771 = vmatpush.bf16.msra.mxu0 %v3406_v10 }
 0x6ac   :  { %v1422_v39 = vpop.f32.mrf.mxu1 }
 0x6ad   :  { %v1436_v46 = vadd.f32 %v1435_v63, %v1422_v39  ;;  %v2409_v39 = vld [vmem:[%s4379_s1 + $0x28] sm:$0xff] }
 0x6ae   :  { %1718 = vmatpush.bf16.msrb.mxu2 %v3417_v6  ;;  %1772 = vmatpush.bf16.msra.mxu0 %v3423_v9 }
 0x6af   :  { %v1439_v55 = vadd.f32 %v3637_v17, %v1436_v46  ;;  %v4097_v46 = vld [vmem:[#allocation12 + $0x20] sm:$0xff] }
 0x6b1   :  { %v1447_v44 = vadd.f32 %v1446_v29, %v1439_v55  ;;  %v2411_v55 = vld [vmem:[%s4379_s1 + $0x20] sm:$0xff] }
 0x6b2   :  { %v1369_v26 = vpop.f32.mrf.mxu3  ;;  %1719 = vmatpush.bf16.msrb.mxu2 %v3557_v54  ;;  %1773 = vmatpush.bf16.msra.mxu0 %v3437_v14 }
 0x6b3   :  { %v4013_v5 = vsub.f32 %v1447_v44, %v1448_v8  ;;  %v1373_v10 = vadd.f32 %v1369_v26, %v1359_v35  ;;  %v1536_v8 = vmul.f32 %v3669_v15, %v3953_v13  ;;  %v4103_v44 = vld [vmem:[#allocation12 + $0x18] sm:$0xff]  ;;  %v2413_v35 = vld [vmem:[%s4379_s1 + $0x18] sm:$0xff] }
 0x6b4   :  { %v1424_v6 = vpop.f32.mrf.mxu1 }
 0x6b5   :  { %v1473_v9 = vpack.c.bf16 %v4013_v5, %v4013_v5  ;;  %v4018_v47 = vadd.f32 %v3851_v42, %v1373_v10  ;;  %v1450_v41 = vsub.f32 %v4013_v5, %v3960_v11  ;;  %v1542_v6 = vmul.f32 %v3643_v16, %v4013_v5 }
 0x6b6   :  { %1720 = vmatpush.bf16.msrb.mxu2 %v3571_v4  ;;  %1774 = vmatpush.bf16.msra.mxu0 %v3451_v21 }
 0x6b7   :  { %1475 = vst [vmem:[#allocation21 + $0x28] sm:$0xf] %v1473_v9  ;;  %vm1451_vm15 = vcmp.gt.f32.partialorder %v1450_v41, 0.0  ;;  %v2414_v9 = vld [vmem:[%s4379_s1 + $0x10] sm:$0xff] }
 0x6b8   :  { %1381 = vst.msk [vmem:[#allocation23 + $0x48] sm:$0xff] %vm138_vm6, %v4018_v47  ;;  %v2253_v14 = vsel %vm1451_vm15, 1.0, %v2683_v50  ;;  %vm2254_vm0 = vmpackc.low %vm1451_vm15, %vm1451_vm15 }
 0x6b9   :  { %v1454_v62 = vpack.c.bf16 %v2253_v14, %v2253_v14  ;;  %2255 = vmatmul.msk.bf16.vlgmr.msra.gmra.mxu3 %vm2254_vm0, %v2684_v52  ;;  %v1538_v11 = vmul.f32 %v3676_v3, %v2253_v14  ;;  %2260 = vmatmul.msk.bf16.vlgmr.msrb.gmra.mxu1 %vm2254_vm0, %v2684_v52 }
 0x6ba   :  { %v1371_v48 = vpop.f32.mrf.mxu3  ;;  %1721 = vmatpush.bf16.msrb.mxu2 %v3583_v45  ;;  %1775 = vmatpush.bf16.msra.mxu0 %v3462_v34  ;;  %v1596_v34 = vmul.f32 %v3605_v60, %v3978_v12 }
 0x6bb   :  { %1472 = vst [vmem:[#allocation20 + $0x28] sm:$0xf] %v1454_v62  ;;  %v4034_v21 = vadd.f32 %v1538_v11, %v1536_v8  ;;  %1648 = vmatpush.bf16.msra.mxu3 %v3551_v61  ;;  %1701 = vmatpush.bf16.msrb.mxu1 %v3429_v56  ;;  %v1575_v56 = vld [vmem:[#allocation9 + $0x60] sm:$0xff] }
 0x6bd   :  { %v1540_v31 = vmul.f32 1.8, %v4034_v21 }
 0x6bf   :  { %v4039_v63 = vadd.f32 0.01, %v1540_v31  ;;  %1649 = vmatpush.bf16.msra.mxu3 %v3565_v30  ;;  %1702 = vmatpush.bf16.msrb.mxu1 %v3443_v32 }
 0x6c1   :  { %v4044_v13 = vmul.f32 %v2253_v14, %v4039_v63  ;;  %v1455_v14 = vmul.f32 %v3760_v40, %v4018_v47 }
 0x6c3   :  { %1650 = vmatpush.bf16.msra.mxu3 %v3579_v1  ;;  %1703 = vmatpush.bf16.msrb.mxu1 %v3455_v18 }
 0x6c7   :  { %1651 = vmatpush.bf16.msra.mxu3 %v3590_v7  ;;  %1704 = vmatpush.bf16.msrb.mxu1 %v3466_v23 }
 0x6cb   :  { %1652 = vmatpush.bf16.msra.mxu3 %v3703_v33  ;;  %1705 = vmatpush.bf16.msrb.mxu1 %v3470_v36 }
 0x6cf   :  { %1653 = vmatpush.bf16.msra.mxu3 %v3710_v49  ;;  %1706 = vmatpush.bf16.msrb.mxu1 %v3474_v25 }
 0x6d3   :  { %1654 = vmatpush.bf16.msra.mxu3 %v3717_v53  ;;  %1707 = vmatpush.bf16.msrb.mxu1 %v3478_v19 }
 0x6d7   :  { %1655 = vmatpush.bf16.msra.mxu3 %v3724_v20  ;;  %1708 = vmatpush.bf16.msrb.mxu1 %v3482_v58  ;;  %v1686_v58 = vmul.f32 %v3498_v37, %v3990_v57  ;;  %v2407_v37 = vld [vmem:[%s4379_s1 + $0x30] sm:$0xff] }
 0x71a   :  { %v1585_v32 = vpop.f32.mrf.mxu0 }
 0x71b   :  { %v1589_v18 = vadd.f32 %v1585_v32, %v1575_v56 }
 0x71d   :  { %v1597_v23 = vadd.f32 %v1596_v34, %v1589_v18  ;;  %v4145_v34 = vld [vmem:[#allocation14 + $0x38] sm:$0xff] }
 0x71f   :  { %v4061_v36 = vsub.f32 %v1597_v23, %v3998_v24  ;;  %v4091_v24 = vld [vmem:[#allocation12 + $0x28] sm:$0xff] }
 0x720   :  { %v1531_v22 = vpop.f32.mrf.mxu2 }
 0x721   :  { %v1600_v25 = vsub.f32 %v4061_v36, %v3995_v59  ;;  %v4080_v59 = vld [vmem:[#allocation12 + $0x30] sm:$0xff] }
 0x722   :  { %v1587_v28 = vpop.f32.mrf.mxu0 }
 0x723   :  { %vm1601_vm1 = vcmp.gt.f32.partialorder %v1600_v25, 0.0  ;;  %v4163_v28 = vld [vmem:[#allocation14 + $0x20] sm:$0xff] }
 0x724   :  { %vm2271_vm2 = vmpackc.low %vm1601_vm1, %vm1601_vm1  ;;  %v2268_v19 = vsel %vm1601_vm1, 1.0, %v2683_v50 }
 0x725   :  { %2272 = vmatmul.msk.bf16.vlgmr.msra.gmra.mxu2 %vm2271_vm2, %v2684_v52  ;;  %2277 = vmatmul.msk.bf16.vlgmr.msrb.gmra.mxu0 %vm2271_vm2, %v2684_v52  ;;  %v1688_v12 = vmul.f32 %v3505_v51, %v2268_v19 }
 0x726   :  { %1810 = vmatpush.bf16.msra.mxu2 %v4071_v2  ;;  %1864 = vmatpush.bf16.msrb.mxu0 %v2405_v43 }
 0x727   :  { %v4077_v27 = vadd.f32 %v1688_v12, %v1686_v58  ;;  %v1671_v58 = vld [vmem:[#allocation9 + $0x68] sm:$0xff] }
 0x728   :  { %v1533_v0 = vpop.f32.mrf.mxu2 }
 0x729   :  { %v1690_v38 = vmul.f32 1.8, %v4077_v27  ;;  %v1692_v0 = vmul.f32 %v3605_v60, %v4061_v36  ;;  %v4195_v60 = vld [vmem:[%s4383_s5 + $0x1] ss:$0 sm:$0xff] }
 0x72a   :  { %1811 = vmatpush.bf16.msra.mxu2 %v4080_v59  ;;  %1865 = vmatpush.bf16.msrb.mxu0 %v2407_v37  ;;  %v1782_v36 = vmul.f32 %v4195_v60, %v4077_v27 }
 0x72b   :  { %v4086_v51 = vadd.f32 0.01, %v1690_v38 }
 0x72d   :  { %v4089_v57 = vmul.f32 %v2268_v19, %v4086_v51  ;;  %v4171_v19 = vld [vmem:[#allocation14 + $0x10] sm:$0xff] }
 0x72e   :  { %1812 = vmatpush.bf16.msra.mxu2 %v4091_v24  ;;  %1866 = vmatpush.bf16.msrb.mxu0 %v2409_v39 }
 0x732   :  { %1813 = vmatpush.bf16.msra.mxu2 %v4097_v46  ;;  %1867 = vmatpush.bf16.msrb.mxu0 %v2411_v55 }
 0x736   :  { %v1518_v29 = vpop.f32.mrf.mxu1  ;;  %1814 = vmatpush.bf16.msra.mxu2 %v4103_v44  ;;  %1868 = vmatpush.bf16.msrb.mxu0 %v2413_v35 }
 0x737   :  { %v1532_v26 = vadd.f32 %v1531_v22, %v1518_v29  ;;  %v4152_v22 = vld [vmem:[#allocation14 + $0x30] sm:$0xff] }
 0x739   :  { %v1535_v10 = vadd.f32 %v3637_v17, %v1532_v26 }
 0x73a   :  { %1815 = vmatpush.bf16.msra.mxu2 %v3557_v54  ;;  %1869 = vmatpush.bf16.msrb.mxu0 %v2414_v9  ;;  %v2415_v54 = vld [vmem:[%s4379_s1 + $0x8] sm:$0xff] }
 0x73b   :  { %v1543_v41 = vadd.f32 %v1542_v6, %v1535_v10 }
 0x73c   :  { %v1465_v62 = vpop.f32.mrf.mxu3 }
 0x73d   :  { %v4119_v8 = vsub.f32 %v1543_v41, %v4044_v13  ;;  %v1469_v11 = vadd.f32 %v1465_v62, %v1455_v14  ;;  %v2416_v13 = vld [vmem:[%s4379_s1] sm:$0xff] }
 0x73e   :  { %v1520_v48 = vpop.f32.mrf.mxu1  ;;  %1816 = vmatpush.bf16.msra.mxu2 %v3571_v4  ;;  %1870 = vmatpush.bf16.msrb.mxu0 %v2415_v54  ;;  %v2427_v14 = vld [vmem:[#allocation12 + $0x10] sm:$0xff] }
 0x73f   :  { %v1569_v5 = vpack.c.bf16 %v4119_v8, %v4119_v8  ;;  %v4128_v31 = vadd.f32 %v3851_v42, %v1469_v11  ;;  %v1546_v47 = vsub.f32 %v4119_v8, %v4039_v63  ;;  %v1632_v63 = vmul.f32 %v3669_v15, %v4034_v21 }
 0x741   :  { %1571 = vst [vmem:[#allocation21 + $0x2c] sm:$0xf] %v1569_v5  ;;  %vm1547_vm3 = vcmp.gt.f32.partialorder %v1546_v47, 0.0  ;;  %v1551_v48 = vmul.f32 %v3760_v40, %v4128_v31  ;;  %v2428_v5 = vld [vmem:[#allocation12 + $0x8] sm:$0xff] }
 0x742   :  { %1477 = vst.msk [vmem:[#allocation23 + $0x50] sm:$0xff] %vm138_vm6, %v4128_v31  ;;  %v2263_v4 = vsel %vm1547_vm3, 1.0, %v2683_v50  ;;  %vm2264_vm4 = vmpackc.low %vm1547_vm3, %vm1547_vm3  ;;  %1817 = vmatpush.bf16.msra.mxu2 %v3583_v45  ;;  %1871 = vmatpush.bf16.msrb.mxu0 %v2416_v13 }
 0x743   :  { %v1550_v56 = vpack.c.bf16 %v2263_v4, %v2263_v4  ;;  %2265 = vmatmul.msk.bf16.vlgmr.msrb.gmra.mxu3 %vm2264_vm4, %v2684_v52  ;;  %v1634_v32 = vmul.f32 %v3676_v3, %v2263_v4  ;;  %2270 = vmatmul.msk.bf16.vlgmr.msra.gmra.mxu1 %vm2264_vm4, %v2684_v52 }
 0x744   :  { %v1467_v18 = vpop.f32.mrf.mxu3  ;;  %1744 = vmatpush.bf16.msrb.mxu3 %v3551_v61  ;;  %1797 = vmatpush.bf16.msra.mxu1 %v4145_v34  ;;  %v4159_v61 = vld [vmem:[#allocation14 + $0x28] sm:$0xff] }
 0x745   :  { %1568 = vst [vmem:[#allocation20 + $0x2c] sm:$0xf] %v1550_v56  ;;  %v4148_v45 = vadd.f32 %v1634_v32, %v1632_v63  ;;  %v4243_v32 = vld [vmem:[%s4382_s4 + $0x38] sm:$0xff] }
 0x747   :  { %v1636_v23 = vmul.f32 1.8, %v4148_v45  ;;  %v1728_v31 = vmul.f32 %v3669_v15, %v4148_v45 }
 0x748   :  { %1745 = vmatpush.bf16.msrb.mxu3 %v3565_v30  ;;  %1798 = vmatpush.bf16.msra.mxu1 %v4152_v22  ;;  %v4167_v30 = vld [vmem:[#allocation14 + $0x18] sm:$0xff] }
 0x749   :  { %v4155_v21 = vadd.f32 0.01, %v1636_v23 }
 0x74b   :  { %v1640_v25 = vmul.f32 %v2263_v4, %v4155_v21 }
 0x74c   :  { %1746 = vmatpush.bf16.msrb.mxu3 %v3579_v1  ;;  %1799 = vmatpush.bf16.msra.mxu1 %v4159_v61  ;;  %v4175_v1 = vld [vmem:[#allocation14 + $0x8] sm:$0xff] }
 0x750   :  { %1747 = vmatpush.bf16.msrb.mxu3 %v3590_v7  ;;  %1800 = vmatpush.bf16.msra.mxu1 %v4163_v28  ;;  %v4179_v7 = vld [vmem:[#allocation14] sm:$0xff] }
 0x754   :  { %1748 = vmatpush.bf16.msrb.mxu3 %v3703_v33  ;;  %1801 = vmatpush.bf16.msra.mxu1 %v4167_v30 }
 0x758   :  { %1749 = vmatpush.bf16.msrb.mxu3 %v3710_v49  ;;  %1802 = vmatpush.bf16.msra.mxu1 %v4171_v19 }
 0x75c   :  { %1750 = vmatpush.bf16.msrb.mxu3 %v3717_v53  ;;  %1803 = vmatpush.bf16.msra.mxu1 %v4175_v1 }
 0x760   :  { %1751 = vmatpush.bf16.msrb.mxu3 %v3724_v20  ;;  %1804 = vmatpush.bf16.msra.mxu1 %v4179_v7 }
 0x7a2   :  { %v1681_v12 = vpop.f32.mrf.mxu0 }
 0x7a3   :  { %v1685_v43 = vadd.f32 %v1681_v12, %v1671_v58 }
 0x7a5   :  { %v1693_v38 = vadd.f32 %v1692_v0, %v1685_v43 }
 0x7a7   :  { %v4185_v37 = vsub.f32 %v1693_v38, %v4089_v57 }
 0x7a8   :  { %v1627_v39 = vpop.f32.mrf.mxu2 }
 0x7a9   :  { %v1696_v55 = vsub.f32 %v4185_v37, %v4086_v51  ;;  %v4202_v51 = vld [vmem:[%s4383_s5 + $0x2] ss:$0 sm:$0xff] }
 0x7aa   :  { %v1683_v29 = vpop.f32.mrf.mxu0 }
 0x7ab   :  { %vm1697_vm5 = vcmp.gt.f32.partialorder %v1696_v55, 0.0  ;;  %v4300_v29 = vld [vmem:[%s4383_s5 + $0x6] ss:$0 sm:$0xff] }
 0x7ac   :  { %vm2281_vm7 = vmpackc.low %vm1697_vm5, %vm1697_vm5  ;;  %v2278_v35 = vsel %vm1697_vm5, 1.0, %v2683_v50 }
 0x7ad   :  { %2282 = vmatmul.msk.bf16.vlgmr.msrb.gmra.mxu2 %vm2281_vm7, %v2684_v52  ;;  %2287 = vmatmul.msk.bf16.vlgmr.msra.gmra.mxu0 %vm2281_vm7, %v2684_v52  ;;  %v1784_v57 = vmul.f32 %v4202_v51, %v2278_v35 }
 0x7ae   :  { %1906 = vmatpush.bf16.msrb.mxu2 %v4071_v2 }
 0x7af   :  { %v4206_v26 = vadd.f32 %v1784_v57, %v1782_v36 }
 0x7b0   :  { %v1629_v10 = vpop.f32.mrf.mxu2 }
 0x7b1   :  { %v1786_v6 = vmul.f32 1.8, %v4206_v26 }
 0x7b2   :  { %1907 = vmatpush.bf16.msrb.mxu2 %v4080_v59  ;;  %v1638_v59 = vmul.f32 %v3643_v16, %v4119_v8  ;;  %v2429_v16 = vld [vmem:[#allocation12] sm:$0xff] }
 0x7b3   :  { %v4210_v9 = vadd.f32 0.01, %v1786_v6 }
 0x7b5   :  { %v4213_v27 = vmul.f32 %v2278_v35, %v4210_v9 }
 0x7b6   :  { %1908 = vmatpush.bf16.msrb.mxu2 %v4091_v24 }
 0x7ba   :  { %1909 = vmatpush.bf16.msrb.mxu2 %v4097_v46 }
 0x7be   :  { %1910 = vmatpush.bf16.msrb.mxu2 %v4103_v44 }
 0x7c0   :  { %v1614_v41 = vpop.f32.mrf.mxu1 }
 0x7c1   :  { %v1628_v2 = vadd.f32 %v1627_v39, %v1614_v41 }
 0x7c2   :  { %1911 = vmatpush.bf16.msrb.mxu2 %v2427_v14 }
 0x7c3   :  { %v1631_v62 = vadd.f32 %v3637_v17, %v1628_v2 }
 0x7c5   :  { %v1639_v11 = vadd.f32 %v1638_v59, %v1631_v62 }
 0x7c6   :  { %v1561_v54 = vpop.f32.mrf.mxu3  ;;  %1912 = vmatpush.bf16.msrb.mxu2 %v2428_v5 }
 0x7c7   :  { %v4223_v24 = vsub.f32 %v1639_v11, %v1640_v25  ;;  %v1565_v46 = vadd.f32 %v1561_v54, %v1551_v48  ;;  %v2438_v11 = vld [vmem:[%s4383_s5 + $0x4] ss:$0 sm:$0xff] }
 0x7c8   :  { %v1616_v44 = vpop.f32.mrf.mxu1 }
 0x7c9   :  { %v1665_v47 = vpack.c.bf16 %v4223_v24, %v4223_v24  ;;  %v4228_v4 = vadd.f32 %v3851_v42, %v1565_v46  ;;  %v1642_v17 = vsub.f32 %v4223_v24, %v4155_v21  ;;  %v4267_v21 = vld [vmem:[%s4382_s4 + $0x20] sm:$0xff] }
 0x7ca   :  { %1913 = vmatpush.bf16.msrb.mxu2 %v2429_v16  ;;  %v2442_v16 = vld [vmem:[%s4382_s4] sm:$0xff] }
 0x7cb   :  { %1667 = vst [vmem:[#allocation21 + $0x30] sm:$0xf] %v1665_v47  ;;  %vm1643_vm8 = vcmp.gt.f32.partialorder %v1642_v17, 0.0  ;;  %v1647_v57 = vmul.f32 %v3760_v40, %v4228_v4  ;;  %v2437_v40 = vld [vmem:[%s4383_s5 + $0x5] ss:$0 sm:$0xff]  ;;  %v2439_v47 = vld [vmem:[%s4382_s4 + $0x18] sm:$0xff] }
 0x7cc   :  { %1573 = vst.msk [vmem:[#allocation23 + $0x58] sm:$0xff] %vm138_vm6, %v4228_v4  ;;  %v2273_v8 = vsel %vm1643_vm8, 1.0, %v2683_v50  ;;  %vm2274_vm9 = vmpackc.low %vm1643_vm8, %vm1643_vm8  ;;  %v2440_v4 = vld [vmem:[%s4382_s4 + $0x10] sm:$0xff]  ;;  %v2441_v17 = vld [vmem:[%s4382_s4 + $0x8] sm:$0xff] }
 0x7cd   :  { %v1646_v13 = vpack.c.bf16 %v2273_v8, %v2273_v8  ;;  %2275 = vmatmul.msk.bf16.vlgmr.msra.gmra.mxu3 %vm2274_vm9, %v2684_v52  ;;  %v1730_v56 = vmul.f32 %v3676_v3, %v2273_v8  ;;  %2280 = vmatmul.msk.bf16.vlgmr.msrb.gmra.mxu1 %vm2274_vm9, %v2684_v52  ;;  %v4253_v3 = vld [vmem:[%s4382_s4 + $0x30] sm:$0xff] }
 0x7ce   :  { %v1563_v63 = vpop.f32.mrf.mxu3  ;;  %1840 = vmatpush.bf16.msra.mxu3 %v4243_v32  ;;  %1893 = vmatpush.bf16.msrb.mxu1 %v4145_v34  ;;  %v4260_v34 = vld [vmem:[%s4382_s4 + $0x28] sm:$0xff]  ;;  %s2685_s4 = smov [#allocation21]  }
 0x7cf   :  { %1664 = vst [vmem:[#allocation20 + $0x30] sm:$0xf] %v1646_v13  ;;  %v4247_v18 = vadd.f32 %v1730_v56, %v1728_v31  ;;  %s1982_s25 = sshll.u32 %s2685_s4, 4  ;;  %s1983_s25 = int_to_ptr.vmem [resolvable:$true] %s1982_s25 }
 0x7d1   :  { %v1732_v15 = vmul.f32 1.8, %v4247_v18  ;;  %v1824_v48 = vmul.f32 %v2438_v11, %v4247_v18 }
 0x7d2   :  { %1841 = vmatpush.bf16.msra.mxu3 %v4253_v3  ;;  %1894 = vmatpush.bf16.msrb.mxu1 %v4152_v22  ;;  %v1767_v22 = vld [vmem:[#allocation9 + $0x70] sm:$0xff] }
 0x7d3   :  { %v1733_v45 = vadd.f32 0.01, %v1732_v15 }
 0x7d5   :  { %v1736_v23 = vmul.f32 %v2273_v8, %v1733_v45  ;;  %v1863_v8 = vld [vmem:[#allocation9 + $0x78] sm:$0xff] }
 0x7d6   :  { %1842 = vmatpush.bf16.msra.mxu3 %v4260_v34  ;;  %1895 = vmatpush.bf16.msrb.mxu1 %v4159_v61 }
 0x7da   :  { %1843 = vmatpush.bf16.msra.mxu3 %v4267_v21  ;;  %1896 = vmatpush.bf16.msrb.mxu1 %v4163_v28 }
 0x7de   :  { %1844 = vmatpush.bf16.msra.mxu3 %v3703_v33  ;;  %1897 = vmatpush.bf16.msrb.mxu1 %v4167_v30  ;;  %v4282_v33 = vld [vmem:[%s4383_s5] ss:$0 sm:$0xff] }
 0x7e2   :  { %1845 = vmatpush.bf16.msra.mxu3 %v3710_v49  ;;  %1898 = vmatpush.bf16.msrb.mxu1 %v4171_v19  ;;  %v1788_v49 = vmul.f32 %v4282_v33, %v4185_v37 }
 0x7e6   :  { %1846 = vmatpush.bf16.msra.mxu3 %v3717_v53  ;;  %1899 = vmatpush.bf16.msrb.mxu1 %v4175_v1 }
 0x7ea   :  { %1847 = vmatpush.bf16.msra.mxu3 %v3724_v20  ;;  %1900 = vmatpush.bf16.msrb.mxu1 %v4179_v7  ;;  %v1878_v7 = vmul.f32 %v4195_v60, %v4206_v26  ;;  %v4306_v60 = vld [vmem:[%s4383_s5 + $0x3] ss:$0 sm:$0xff] }
 0x7eb   :  { %v1734_v36 = vmul.f32 %v4306_v60, %v4223_v24 }
 0x82a   :  { %v1777_v25 = vpop.f32.mrf.mxu0 }
 0x82b   :  { %v1781_v61 = vadd.f32 %v1777_v25, %v1767_v22 }
 0x82d   :  { %v1789_v28 = vadd.f32 %v1788_v49, %v1781_v61  ;;  %v2443_v49 = vld [vmem:[#allocation15] ss:$0 sm:$0xff] }
 0x82f   :  { %v4287_v53 = vsub.f32 %v1789_v28, %v4213_v27 }
 0x830   :  { %v1723_v30 = vpop.f32.mrf.mxu2 }
 0x831   :  { %v1792_v20 = vsub.f32 %v4287_v53, %v4210_v9  ;;  %v1884_v56 = vmul.f32 %v4282_v33, %v4287_v53 }
 0x832   :  { %v1779_v19 = vpop.f32.mrf.mxu0 }
 0x833   :  { %vm1793_vm10 = vcmp.gt.f32.partialorder %v1792_v20, 0.0 }
 0x834   :  { %vm2291_vm11 = vmpackc.low %vm1793_vm10, %vm1793_vm10  ;;  %v2288_v1 = vsel %vm1793_vm10, 1.0, %v2683_v50 }
 0x835   :  { %2292 = vmatmul.msk.bf16.vlgmr.msra.gmra.mxu2 %vm2291_vm11, %v2684_v52  ;;  %2297 = vmatmul.msk.bf16.vlgmr.msrb.gmra.mxu0 %vm2291_vm11, %v2684_v52  ;;  %v1880_v58 = vmul.f32 %v4202_v51, %v2288_v1 }
 0x837   :  { %v1881_v12 = vadd.f32 %v1880_v58, %v1878_v7 }
 0x838   :  { %v1725_v43 = vpop.f32.mrf.mxu2 }
 0x839   :  { %v1882_v0 = vmul.f32 1.8, %v1881_v12 }
 0x83b   :  { %v1883_v38 = vadd.f32 0.01, %v1882_v0 }
 0x83d   :  { %v1886_v37 = vmul.f32 %v2288_v1, %v1883_v38 }
 0x84a   :  { %v1710_v39 = vpop.f32.mrf.mxu1 }
 0x84b   :  { %v1724_v55 = vadd.f32 %v1723_v30, %v1710_v39 }
 0x84d   :  { %v1727_v35 = vadd.f32 %v4300_v29, %v1724_v55 }
 0x84f   :  { %v1735_v51 = vadd.f32 %v1734_v36, %v1727_v35 }
 0x850   :  { %v1657_v26 = vpop.f32.mrf.mxu3 }
 0x851   :  { %v1737_v10 = vsub.f32 %v1735_v51, %v1736_v23  ;;  %v1661_v6 = vadd.f32 %v1657_v26, %v1647_v57 }
 0x852   :  { %v1712_v9 = vpop.f32.mrf.mxu1 }
 0x853   :  { %v1761_v27 = vpack.c.bf16 %v1737_v10, %v1737_v10  ;;  %v1662_v41 = vadd.f32 %v3851_v42, %v1661_v6  ;;  %v1738_v2 = vsub.f32 %v1737_v10, %v1733_v45  ;;  %v1830_v61 = vmul.f32 %v4306_v60, %v1737_v10 }
 0x855   :  { %1763 = vst [vmem:[#allocation21 + $0x34] sm:$0xf] %v1761_v27  ;;  %vm1739_vm12 = vcmp.gt.f32.partialorder %v1738_v2, 0.0  ;;  %v1743_v28 = vmul.f32 %v2443_v49, %v1662_v41 }
 0x856   :  { %1669 = vst.msk [vmem:[#allocation23 + $0x60] sm:$0xff] %vm138_vm6, %v1662_v41  ;;  %v2283_v14 = vsel %vm1739_vm12, 1.0, %v2683_v50  ;;  %vm2284_vm13 = vmpackc.low %vm1739_vm12, %vm1739_vm12 }
 0x857   :  { %v1742_v62 = vpack.c.bf16 %v2283_v14, %v2283_v14  ;;  %2285 = vmatmul.msk.bf16.vlgmr.msrb.gmra.mxu3 %vm2284_vm13, %v2684_v52  ;;  %v1826_v59 = vmul.f32 %v2437_v40, %v2283_v14  ;;  %2290 = vmatmul.msk.bf16.vlgmr.msra.gmra.mxu1 %vm2284_vm13, %v2684_v52 }
 0x858   :  { %v1659_v54 = vpop.f32.mrf.mxu3  ;;  %1936 = vmatpush.bf16.msrb.mxu3 %v4243_v32 }
 0x859   :  { %1760 = vst [vmem:[#allocation20 + $0x34] sm:$0xf] %v1742_v62  ;;  %v1827_v5 = vadd.f32 %v1826_v59, %v1824_v48 }
 0x85b   :  { %v1828_v24 = vmul.f32 1.8, %v1827_v5 }
 0x85c   :  { %1937 = vmatpush.bf16.msrb.mxu3 %v4253_v3 }
 0x85d   :  { %v1829_v46 = vadd.f32 0.01, %v1828_v24 }
 0x85f   :  { %v1832_v44 = vmul.f32 %v2283_v14, %v1829_v46 }
 0x860   :  { %1938 = vmatpush.bf16.msrb.mxu3 %v4260_v34 }
 0x864   :  { %1939 = vmatpush.bf16.msrb.mxu3 %v4267_v21 }
 0x868   :  { %1940 = vmatpush.bf16.msrb.mxu3 %v2439_v47 }
 0x86c   :  { %1941 = vmatpush.bf16.msrb.mxu3 %v2440_v4 }
 0x870   :  { %1942 = vmatpush.bf16.msrb.mxu3 %v2441_v17 }
 0x874   :  { %1943 = vmatpush.bf16.msrb.mxu3 %v2442_v16 }
 0x8b2   :  { %v1873_v31 = vpop.f32.mrf.mxu0 }
 0x8b3   :  { %v1877_v13 = vadd.f32 %v1873_v31, %v1863_v8 }
 0x8b5   :  { %v1885_v63 = vadd.f32 %v1884_v56, %v1877_v13 }
 0x8b7   :  { %v1887_v32 = vsub.f32 %v1885_v63, %v1886_v37 }
 0x8b8   :  { %v1819_v18 = vpop.f32.mrf.mxu2 }
 0x8b9   :  { %v1888_v15 = vsub.f32 %v1887_v32, %v1883_v38  ;;  %v1920_v38 = vmul.f32 %v2438_v11, %v1827_v5 }
 0x8ba   :  { %v1875_v3 = vpop.f32.mrf.mxu0 }
 0x8bb   :  { %vm1889_vm14 = vcmp.gt.f32.partialorder %v1888_v15, 0.0 }
 0x8bc   :  { %v2298_v45 = vsel %vm1889_vm14, 1.0, %v2683_v50  ;;  %vm2301_vm15 = vmpackc.low %vm1889_vm14, %vm1889_vm14 }
 0x8bd   :  { %v1892_v23 = vpack.c.bf16 %v2298_v45, %v2298_v45  ;;  %2302 = vmatmul.msk.bf16.vlgmr.msrb.gmra.mxu2 %vm2301_vm15, %v2684_v52 }
 0x8bf   :  { %1959 = vst [vmem:[#allocation3] sm:$0xf] %v1892_v23 }
 0x8c0   :  { %v1821_v34 = vpop.f32.mrf.mxu2 }
 0x8d4   :  { %v1806_v21 = vpop.f32.mrf.mxu1 }
 0x8d5   :  { %v1820_v22 = vadd.f32 %v1819_v18, %v1806_v21 }
 0x8d7   :  { %v1823_v25 = vadd.f32 %v4300_v29, %v1820_v22 }
 0x8d9   :  { %v1831_v33 = vadd.f32 %v1830_v61, %v1823_v25 }
 0x8da   :  { %v1753_v53 = vpop.f32.mrf.mxu3 }
 0x8db   :  { %v1833_v30 = vsub.f32 %v1831_v33, %v1832_v44  ;;  %v1757_v20 = vadd.f32 %v1753_v53, %v1743_v28 }
 0x8dc   :  { %v1808_v19 = vpop.f32.mrf.mxu1 }
 0x8dd   :  { %v1857_v1 = vpack.c.bf16 %v1833_v30, %v1833_v30  ;;  %v1758_v7 = vadd.f32 %v3851_v42, %v1757_v20  ;;  %v1834_v58 = vsub.f32 %v1833_v30, %v1829_v46  ;;  %v1926_v9 = vmul.f32 %v4306_v60, %v1833_v30 }
 0x8df   :  { %1859 = vst [vmem:[#allocation21 + $0x38] sm:$0xf] %v1857_v1  ;;  %vm1835_vm0 = vcmp.gt.f32.partialorder %v1834_v58, 0.0  ;;  %v1839_v41 = vmul.f32 %v2443_v49, %v1758_v7 }
 0x8e0   :  { %1765 = vst.msk [vmem:[#allocation23 + $0x68] sm:$0xff] %vm138_vm6, %v1758_v7  ;;  %v2293_v12 = vsel %vm1835_vm0, 1.0, %v2683_v50  ;;  %vm2294_vm1 = vmpackc.low %vm1835_vm0, %vm1835_vm0 }
 0x8e1   :  { %v1838_v43 = vpack.c.bf16 %v2293_v12, %v2293_v12  ;;  %2295 = vmatmul.msk.bf16.vlgmr.msra.gmra.mxu3 %vm2294_vm1, %v2684_v52  ;;  %v1922_v0 = vmul.f32 %v2437_v40, %v2293_v12  ;;  %2300 = vmatmul.msk.bf16.vlgmr.msrb.gmra.mxu1 %vm2294_vm1, %v2684_v52 }
 0x8e2   :  { %v1755_v37 = vpop.f32.mrf.mxu3 }
 0x8e3   :  { %1856 = vst [vmem:[#allocation20 + $0x38] sm:$0xf] %v1838_v43  ;;  %v1923_v39 = vadd.f32 %v1922_v0, %v1920_v38 }
 0x8e5   :  { %v1924_v55 = vmul.f32 1.8, %v1923_v39 }
 0x8e7   :  { %v1925_v35 = vadd.f32 0.01, %v1924_v55 }
 0x8e9   :  { %v1928_v36 = vmul.f32 %v2293_v12, %v1925_v35 }
 0x940   :  { %v1915_v51 = vpop.f32.mrf.mxu2 }
 0x948   :  { %v1917_v57 = vpop.f32.mrf.mxu2 }
 0x95e   :  { %v1902_v26 = vpop.f32.mrf.mxu1 }
 0x95f   :  { %v1916_v10 = vadd.f32 %v1915_v51, %v1902_v26 }
 0x961   :  { %v1919_v6 = vadd.f32 %v4300_v29, %v1916_v10 }
 0x963   :  { %v1927_v27 = vadd.f32 %v1926_v9, %v1919_v6 }
 0x964   :  { %v1849_v2 = vpop.f32.mrf.mxu3 }
 0x965   :  { %v1929_v14 = vsub.f32 %v1927_v27, %v1928_v36  ;;  %v1853_v62 = vadd.f32 %v1849_v2, %v1839_v41 }
 0x966   :  { %v1904_v40 = vpop.f32.mrf.mxu1 }
 0x967   :  { %v1930_v59 = vsub.f32 %v1929_v14, %v1925_v35  ;;  %v1953_v11 = vpack.c.bf16 %v1929_v14, %v1929_v14  ;;  %v1854_v48 = vadd.f32 %v3851_v42, %v1853_v62 }
 0x969   :  { %vm1931_vm2 = vcmp.gt.f32.partialorder %v1930_v59, 0.0  ;;  %1955 = vst [vmem:[#allocation21 + $0x3c] sm:$0xf] %v1953_v11 }
 0x96a   :  { %v2303_v54 = vsel %vm1931_vm2, 1.0, %v2683_v50  ;;  %1861 = vst.msk [vmem:[#allocation23 + $0x70] sm:$0xff] %vm138_vm6, %v1854_v48  ;;  %vm2304_vm3 = vmpackc.low %vm1931_vm2, %vm1931_vm2  ;;  %1990 = dma.vmem_to_hbm [thread:$0]  %s1983_s25, 1024, %s1985_s27, [#allocation22], %s2673_s29, %s2673_s29, %s2674_s30   ;;  %v1935_v50 = vmul.f32 %v2443_v49, %v1854_v48 }
 0x96b   :  { %v1934_v29 = vpack.c.bf16 %v2303_v54, %v2303_v54  ;;  %2305 = vmatmul.msk.bf16.vlgmr.msrb.gmra.mxu3 %vm2304_vm3, %v2684_v52 }
 0x96c   :  { %v1851_v60 = vpop.f32.mrf.mxu3 }
 0x96d   :  { %1952 = vst [vmem:[#allocation20 + $0x3c] sm:$0xf] %v1934_v29 }
 0x96e   :  { %1961 = vst [vmem:[#allocation5] sm:$0xf] %v1934_v29  ;;  %1977 = dma.vmem_to_hbm [thread:$0]  %s1970_s2, 1024, %s1972_s14, [#allocation11], %s2673_s29, %s2673_s29, %s2674_s30  }
 0x9ee   :  { %v1945_v52 = vpop.f32.mrf.mxu3 }
 0x9ef   :  { %v1949_v5 = vadd.f32 %v1945_v52, %v1935_v50 }
 0x9f1   :  { %v1950_v24 = vadd.f32 %v3851_v42, %v1949_v5 }
 0x9f3   :  { %1957 = vst.msk [vmem:[#allocation23 + $0x78] sm:$0xff] %vm138_vm6, %v1950_v24 }
 0x9f4   :  { %1962 = vst.msk [vmem:[#allocation6] sm:$0xff] %vm138_vm6, %v1950_v24  ;;  %2003 = dma.vmem_to_hbm [thread:$0]  %s1996_s8, 2048, %s1998_s17, [#allocation22], %s2677_s21, %s2677_s21, %s2678_s22  }
 0x9f6   :  { %v1947_v46 = vpop.f32.mrf.mxu3 }
 0x9f7   :  { %2668 = dma.done.wait [#allocation11], 1024  }
 0x9f8   :  { %2669 = vsyncadd [#allocation11], 4294966272 }
 0x9f9   :  { %2670 = dma.done.wait [#allocation22], 3072  }
 0x9fa   :  { %2671 = vsyncadd [#allocation22], 4294964224 }
 0x9fb   :  { %2016 = vsyncpa [#allocation10], 1 }
 0x9fc   :  { %2017 = vsyncpa [#allocation13], 1 }
 0x9fd   :  { %2018 = vsyncpa [#allocation16], 1 }
 0x9fe   :  { %2019 = vsyncpa [#allocation19], 1 }
 0x9ff   :  { %2020 = vsyncpa [#allocation11], 1 }
 0xa00   :  { %2021 = vsyncpa [#allocation22], 1 }

</bundles_post_ra>
